<compile_context>
chip_gen: v6e
topology: v6e:2x2x1
jax: 0.10.0
libtpu: 0.0.40
codegen_flags: <defaults>
</compile_context>

<pallas_src>
import math
import jax
import jax.numpy as jnp
from jax import lax
from jax.experimental import pallas as pl
from jax.experimental.pallas import tpu as pltpu  # noqa: F401  (TPU backend)

# ----------------------------- config (small) -------------------------------
B = 2          # batch
S = 8          # sequence length
D = 32         # model dim (layer.size)
H = 4          # attention heads
DFF = 64       # feed-forward hidden dim
N_LAYERS = 2   # Encoder depth N
EPS = 1e-6
DK = D // H
BS = B * S

# TODO(synk): dropout inside the sublayer connections is omitted (eval mode).


# ------------------------------ Pallas kernel --------------------------------
def _layer_norm_in_kernel(x, a, b):
    # matches PyTorch LayerNorm: unbiased std, eps added to std (not var)
    mean = jnp.mean(x, axis=-1, keepdims=True)
    xc = x - mean
    var = jnp.sum(xc * xc, axis=-1, keepdims=True) * (1.0 / (D - 1))
    inv = pl.reciprocal(jnp.sqrt(var) + EPS, approx=False)
    return xc * (a * inv) + b


def encoder_kernel(x_ref, bias_ref,
                   ln1a_ref, ln1b_ref,
                   wq_ref, bq_ref, wk_ref, bk_ref, wv_ref, bv_ref,
                   wo_ref, bo_ref,
                   ln2a_ref, ln2b_ref,
                   w1_ref, b1_ref, w2_ref, b2_ref,
                   fa_ref, fb_ref,
                   out_ref):
    x = x_ref[...].astype(jnp.float32)      # [BS, D]  whole batch, resident
    bias = bias_ref[...]                    # [BS, BS] additive mask bias (read once)
    scale = jnp.float32(1.0 / math.sqrt(DK))

    for l in range(N_LAYERS):               # static unroll over layers
        # ---- sublayer 1: pre-norm + multi-head self-attention + residual ----
        xn = _layer_norm_in_kernel(x, ln1a_ref[l], ln1b_ref[l])
        acc = None
        for h in range(H):                  # static unroll; weights pre-split per head
            qh = jnp.dot(xn, wq_ref[l, h], preferred_element_type=jnp.float32) + bq_ref[l, h]
            kh = jnp.dot(xn, wk_ref[l, h], preferred_element_type=jnp.float32) + bk_ref[l, h]
            vh = jnp.dot(xn, wv_ref[l, h], preferred_element_type=jnp.float32) + bv_ref[l, h]
            # contract K on its last dim directly (no explicit transpose)
            scores = lax.dot_general(qh, kh, (((1,), (1,)), ((), ())),
                                     preferred_element_type=jnp.float32)
            scores = scores * scale + bias
            m = jnp.max(scores, axis=-1, keepdims=True)
            e = jnp.exp(scores - m)
            p = e * pl.reciprocal(jnp.sum(e, axis=-1, keepdims=True), approx=False)
            oh = jnp.dot(p, vh, preferred_element_type=jnp.float32)             # [BS, DK]
            contrib = jnp.dot(oh, wo_ref[l, h], preferred_element_type=jnp.float32)  # [BS, D]
            acc = contrib if acc is None else acc + contrib
        x = x + acc + bo_ref[l]

        # ---- sublayer 2: pre-norm + position-wise FFN + residual ----
        xn2 = _layer_norm_in_kernel(x, ln2a_ref[l], ln2b_ref[l])
        h1 = jnp.dot(xn2, w1_ref[l], preferred_element_type=jnp.float32) + b1_ref[l]
        h1 = jnp.maximum(h1, 0.0)
        x = x + jnp.dot(h1, w2_ref[l], preferred_element_type=jnp.float32) + b2_ref[l]

    # ---- final LayerNorm ----
    out_ref[...] = _layer_norm_in_kernel(x, fa_ref[...], fb_ref[...]).astype(out_ref.dtype)


# ------------------------------ wrapper ---------------------------------------
def encoder_forward(x, mask, layer_params, final_a, final_b):
    # flatten batch into rows; build a per-batch additive attention bias so that
    # rows of one batch never attend to another batch (and masked keys get -1e9)
    x2d = x.reshape(BS, D)
    key_keep = mask[:, 0, :] > 0                                          # [B, S]
    same_batch = jnp.arange(B)[:, None] == jnp.arange(B)[None, :]         # [B, B]
    allowed = same_batch[:, None, :, None] & key_keep[None, None, :, :]   # [B,1,B,S]
    allowed = jnp.broadcast_to(allowed, (B, S, B, S)).reshape(BS, BS)
    attn_bias = jnp.where(allowed, 0.0, -1e9).astype(jnp.float32)         # [BS, BS]

    def stack(fn):
        return jnp.stack([fn(p) for p in layer_params], axis=0)

    # stack per-layer weights; pre-split attention projections per head on the
    # host so the kernel never lane-slices activations.
    ln1a = stack(lambda p: p["ln1a"])                                     # [N,1,D]
    ln1b = stack(lambda p: p["ln1b"])
    wq = stack(lambda p: p["wq"].reshape(D, H, DK).transpose(1, 0, 2))    # [N,H,D,DK]
    bq = stack(lambda p: p["bq"].reshape(H, DK)[:, None, :])              # [N,H,1,DK]
    wk = stack(lambda p: p["wk"].reshape(D, H, DK).transpose(1, 0, 2))
    bk = stack(lambda p: p["bk"].reshape(H, DK)[:, None, :])
    wv = stack(lambda p: p["wv"].reshape(D, H, DK).transpose(1, 0, 2))
    bv = stack(lambda p: p["bv"].reshape(H, DK)[:, None, :])
    wo = stack(lambda p: p["wo"].reshape(H, DK, D))                       # [N,H,DK,D]
    bo = stack(lambda p: p["bo"])                                         # [N,1,D]
    ln2a = stack(lambda p: p["ln2a"])
    ln2b = stack(lambda p: p["ln2b"])
    w1 = stack(lambda p: p["w1"])                                         # [N,D,DFF]
    b1 = stack(lambda p: p["b1"])                                         # [N,1,DFF]
    w2 = stack(lambda p: p["w2"])                                         # [N,DFF,D]
    b2 = stack(lambda p: p["b2"])                                         # [N,1,D]

    # single fused kernel, no grid: every array is one full VMEM block
    out2d = pl.pallas_call(
        encoder_kernel,
        out_shape=jax.ShapeDtypeStruct((BS, D), x.dtype),
    )(x2d, attn_bias,
      ln1a, ln1b, wq, bq, wk, bk, wv, bv, wo, bo,
      ln2a, ln2b, w1, b1, w2, b2, final_a, final_b)
    return out2d.reshape(B, S, D)


# ------------------------------ reference (plain JAX) -------------------------
def _layer_norm_ref(x, a, b):
    mean = jnp.mean(x, axis=-1, keepdims=True)
    var = jnp.sum((x - mean) ** 2, axis=-1, keepdims=True) / (D - 1)
    std = jnp.sqrt(var)
    return a * (x - mean) / (std + EPS) + b


def encoder_reference(x, mask, layer_params, final_a, final_b):
    key_mask = mask[:, 0, :][:, None, None, :]          # [B,1,1,S]
    for p in layer_params:
        xn = _layer_norm_ref(x, p["ln1a"], p["ln1b"])
        q = xn @ p["wq"] + p["bq"]
        k = xn @ p["wk"] + p["bk"]
        v = xn @ p["wv"] + p["bv"]
        qh = q.reshape(B, S, H, DK).transpose(0, 2, 1, 3)
        kh = k.reshape(B, S, H, DK).transpose(0, 2, 1, 3)
        vh = v.reshape(B, S, H, DK).transpose(0, 2, 1, 3)
        scores = jnp.einsum("bhqd,bhkd->bhqk", qh, kh) / math.sqrt(DK)
        scores = jnp.where(key_mask > 0, scores, -1e9)
        pattn = jax.nn.softmax(scores, axis=-1)
        o = jnp.einsum("bhqk,bhkd->bhqd", pattn, vh)
        o = o.transpose(0, 2, 1, 3).reshape(B, S, D)
        x = x + (o @ p["wo"] + p["bo"])
        xn2 = _layer_norm_ref(x, p["ln2a"], p["ln2b"])
        x = x + (jnp.maximum(xn2 @ p["w1"] + p["b1"], 0.0) @ p["w2"] + p["b2"])
    return _layer_norm_ref(x, final_a, final_b)


# ------------------------------ param init ------------------------------------
def make_layer_params(key):
    ks = jax.random.split(key, 8)
    s = 0.02
    return {
        "ln1a": jnp.ones((1, D), jnp.float32),
        "ln1b": jnp.zeros((1, D), jnp.float32),
        "wq": s * jax.random.normal(ks[0], (D, D), jnp.float32),
        "bq": jnp.zeros((1, D), jnp.float32),
        "wk": s * jax.random.normal(ks[1], (D, D), jnp.float32),
        "bk": jnp.zeros((1, D), jnp.float32),
        "wv": s * jax.random.normal(ks[2], (D, D), jnp.float32),
        "bv": jnp.zeros((1, D), jnp.float32),
        "wo": s * jax.random.normal(ks[3], (D, D), jnp.float32),
        "bo": jnp.zeros((1, D), jnp.float32),
        "ln2a": jnp.ones((1, D), jnp.float32),
        "ln2b": jnp.zeros((1, D), jnp.float32),
        "w1": s * jax.random.normal(ks[4], (D, DFF), jnp.float32),
        "b1": jnp.zeros((1, DFF), jnp.float32),
        "w2": s * jax.random.normal(ks[5], (DFF, D), jnp.float32),
        "b2": jnp.zeros((1, D), jnp.float32),
    }


if __name__ == "__main__":
    key = jax.random.PRNGKey(0)
    kx, *klayers = jax.random.split(key, 1 + N_LAYERS)

    x = jax.random.normal(kx, (B, S, D), jnp.float32)
    # mask: keep everything for batch 0, mask the last 2 key positions of batch 1
    mask = jnp.ones((B, 1, S), jnp.float32)
    mask = mask.at[1, 0, S - 2:].set(0.0)

    layer_params = [make_layer_params(k) for k in klayers]
    final_a = jnp.ones((1, D), jnp.float32)
    final_b = jnp.zeros((1, D), jnp.float32)

    out = encoder_forward(x, mask, layer_params, final_a, final_b)
    out = jax.block_until_ready(out)

    ref = encoder_reference(x, mask, layer_params, final_a, final_b)
    assert out.shape == (B, S, D)
    assert jnp.allclose(out, ref, rtol=1e-4, atol=1e-4), "mismatch vs reference"

    print("KERNEL_OK")
</pallas_src>

<mosaic_0001>
module attributes {stable_mosaic.version = 11 : i64} {
  func.func @encoder_kernel(%arg0: memref<16x32xf32, #tpu.memory_space<vmem>>, %arg1: memref<16x16xf32, #tpu.memory_space<vmem>>, %arg2: memref<2x1x32xf32, #tpu.memory_space<vmem>>, %arg3: memref<2x1x32xf32, #tpu.memory_space<vmem>>, %arg4: memref<2x4x32x8xf32, #tpu.memory_space<vmem>>, %arg5: memref<2x4x1x8xf32, #tpu.memory_space<vmem>>, %arg6: memref<2x4x32x8xf32, #tpu.memory_space<vmem>>, %arg7: memref<2x4x1x8xf32, #tpu.memory_space<vmem>>, %arg8: memref<2x4x32x8xf32, #tpu.memory_space<vmem>>, %arg9: memref<2x4x1x8xf32, #tpu.memory_space<vmem>>, %arg10: memref<2x4x8x32xf32, #tpu.memory_space<vmem>>, %arg11: memref<2x1x32xf32, #tpu.memory_space<vmem>>, %arg12: memref<2x1x32xf32, #tpu.memory_space<vmem>>, %arg13: memref<2x1x32xf32, #tpu.memory_space<vmem>>, %arg14: memref<2x32x64xf32, #tpu.memory_space<vmem>>, %arg15: memref<2x1x64xf32, #tpu.memory_space<vmem>>, %arg16: memref<2x64x32xf32, #tpu.memory_space<vmem>>, %arg17: memref<2x1x32xf32, #tpu.memory_space<vmem>>, %arg18: memref<1x32xf32, #tpu.memory_space<vmem>>, %arg19: memref<1x32xf32, #tpu.memory_space<vmem>>, %arg20: memref<16x32xf32, #tpu.memory_space<vmem>>) attributes {dimension_semantics = [], scalar_prefetch = 0 : i64, scratch_operands = 0 : i64, tpu.core_type = #tpu.core_type<tc>} {
    %c0 = arith.constant 0 : index
    %c0_0 = arith.constant 0 : index
    %0 = vector.load %arg0[%c0, %c0_0] : memref<16x32xf32, #tpu.memory_space<vmem>>, vector<16x32xf32>
    %c0_1 = arith.constant 0 : index
    %c0_2 = arith.constant 0 : index
    %1 = vector.load %arg1[%c0_1, %c0_2] : memref<16x16xf32, #tpu.memory_space<vmem>>, vector<16x16xf32>
    %c0_3 = arith.constant 0 : index
    %c0_4 = arith.constant 0 : index
    %c0_5 = arith.constant 0 : index
    %2 = vector.load %arg2[%c0_3, %c0_4, %c0_5] : memref<2x1x32xf32, #tpu.memory_space<vmem>>, vector<1x1x32xf32>
    %3 = vector.shape_cast %2 : vector<1x1x32xf32> to vector<1x32xf32>
    %c0_6 = arith.constant 0 : index
    %c0_7 = arith.constant 0 : index
    %c0_8 = arith.constant 0 : index
    %4 = vector.load %arg3[%c0_6, %c0_7, %c0_8] : memref<2x1x32xf32, #tpu.memory_space<vmem>>, vector<1x1x32xf32>
    %5 = vector.shape_cast %4 : vector<1x1x32xf32> to vector<1x32xf32>
    %cst = arith.constant dense<0.000000e+00> : vector<16xf32>
    %6 = vector.multi_reduction <add>, %0, %cst [1] : vector<16x32xf32> to vector<16xf32>
    %7 = vector.shape_cast %6 : vector<16xf32> to vector<16x1xf32>
    %cst_9 = arith.constant 3.200000e+01 : f32
    %8 = vector.broadcast %cst_9 : f32 to vector<16x1xf32>
    %9 = arith.divf %7, %8 : vector<16x1xf32>
    %10 = vector.broadcast %9 : vector<16x1xf32> to vector<16x32xf32>
    %11 = arith.subf %0, %10 : vector<16x32xf32>
    %12 = arith.mulf %11, %11 : vector<16x32xf32>
    %cst_10 = arith.constant dense<0.000000e+00> : vector<16xf32>
    %13 = vector.multi_reduction <add>, %12, %cst_10 [1] : vector<16x32xf32> to vector<16xf32>
    %14 = vector.shape_cast %13 : vector<16xf32> to vector<16x1xf32>
    %cst_11 = arith.constant 0.0322580636 : f32
    %15 = vector.broadcast %cst_11 : f32 to vector<16x1xf32>
    %16 = arith.mulf %14, %15 : vector<16x1xf32>
    %17 = math.sqrt %16 : vector<16x1xf32>
    %cst_12 = arith.constant 9.99999997E-7 : f32
    %18 = vector.broadcast %cst_12 : f32 to vector<16x1xf32>
    %19 = arith.addf %17, %18 : vector<16x1xf32>
    %20 = tpu.reciprocal %19 : vector<16x1xf32> -> vector<16x1xf32>
    %21 = vector.broadcast %3 : vector<1x32xf32> to vector<16x32xf32>
    %22 = vector.broadcast %20 : vector<16x1xf32> to vector<16x32xf32>
    %23 = arith.mulf %21, %22 : vector<16x32xf32>
    %24 = arith.mulf %11, %23 : vector<16x32xf32>
    %25 = vector.broadcast %5 : vector<1x32xf32> to vector<16x32xf32>
    %26 = arith.addf %24, %25 : vector<16x32xf32>
    %c0_13 = arith.constant 0 : index
    %c0_14 = arith.constant 0 : index
    %c0_15 = arith.constant 0 : index
    %c0_16 = arith.constant 0 : index
    %27 = vector.load %arg4[%c0_13, %c0_14, %c0_15, %c0_16] : memref<2x4x32x8xf32, #tpu.memory_space<vmem>>, vector<1x1x32x8xf32>
    %28 = vector.shape_cast %27 : vector<1x1x32x8xf32> to vector<32x8xf32>
    %cst_17 = arith.constant dense<0.000000e+00> : vector<16x8xf32>
    %29 = tpu.matmul %26, %28, %cst_17 {dimension_numbers = #tpu.dot_dimension_numbers<[1], [0], [0], [1], [0, 0, 1, 1], [], []>} : vector<16x32xf32>, vector<32x8xf32>, vector<16x8xf32> -> vector<16x8xf32>
    %c0_18 = arith.constant 0 : index
    %c0_19 = arith.constant 0 : index
    %c0_20 = arith.constant 0 : index
    %c0_21 = arith.constant 0 : index
    %30 = vector.load %arg5[%c0_18, %c0_19, %c0_20, %c0_21] : memref<2x4x1x8xf32, #tpu.memory_space<vmem>>, vector<1x1x1x8xf32>
    %31 = vector.shape_cast %30 : vector<1x1x1x8xf32> to vector<1x8xf32>
    %32 = vector.broadcast %31 : vector<1x8xf32> to vector<16x8xf32>
    %33 = arith.addf %29, %32 : vector<16x8xf32>
    %c0_22 = arith.constant 0 : index
    %c0_23 = arith.constant 0 : index
    %c0_24 = arith.constant 0 : index
    %c0_25 = arith.constant 0 : index
    %34 = vector.load %arg6[%c0_22, %c0_23, %c0_24, %c0_25] : memref<2x4x32x8xf32, #tpu.memory_space<vmem>>, vector<1x1x32x8xf32>
    %35 = vector.shape_cast %34 : vector<1x1x32x8xf32> to vector<32x8xf32>
    %cst_26 = arith.constant dense<0.000000e+00> : vector<16x8xf32>
    %36 = tpu.matmul %26, %35, %cst_26 {dimension_numbers = #tpu.dot_dimension_numbers<[1], [0], [0], [1], [0, 0, 1, 1], [], []>} : vector<16x32xf32>, vector<32x8xf32>, vector<16x8xf32> -> vector<16x8xf32>
    %c0_27 = arith.constant 0 : index
    %c0_28 = arith.constant 0 : index
    %c0_29 = arith.constant 0 : index
    %c0_30 = arith.constant 0 : index
    %37 = vector.load %arg7[%c0_27, %c0_28, %c0_29, %c0_30] : memref<2x4x1x8xf32, #tpu.memory_space<vmem>>, vector<1x1x1x8xf32>
    %38 = vector.shape_cast %37 : vector<1x1x1x8xf32> to vector<1x8xf32>
    %39 = vector.broadcast %38 : vector<1x8xf32> to vector<16x8xf32>
    %40 = arith.addf %36, %39 : vector<16x8xf32>
    %c0_31 = arith.constant 0 : index
    %c0_32 = arith.constant 0 : index
    %c0_33 = arith.constant 0 : index
    %c0_34 = arith.constant 0 : index
    %41 = vector.load %arg8[%c0_31, %c0_32, %c0_33, %c0_34] : memref<2x4x32x8xf32, #tpu.memory_space<vmem>>, vector<1x1x32x8xf32>
    %42 = vector.shape_cast %41 : vector<1x1x32x8xf32> to vector<32x8xf32>
    %cst_35 = arith.constant dense<0.000000e+00> : vector<16x8xf32>
    %43 = tpu.matmul %26, %42, %cst_35 {dimension_numbers = #tpu.dot_dimension_numbers<[1], [0], [0], [1], [0, 0, 1, 1], [], []>} : vector<16x32xf32>, vector<32x8xf32>, vector<16x8xf32> -> vector<16x8xf32>
    %c0_36 = arith.constant 0 : index
    %c0_37 = arith.constant 0 : index
    %c0_38 = arith.constant 0 : index
    %c0_39 = arith.constant 0 : index
    %44 = vector.load %arg9[%c0_36, %c0_37, %c0_38, %c0_39] : memref<2x4x1x8xf32, #tpu.memory_space<vmem>>, vector<1x1x1x8xf32>
    %45 = vector.shape_cast %44 : vector<1x1x1x8xf32> to vector<1x8xf32>
    %46 = vector.broadcast %45 : vector<1x8xf32> to vector<16x8xf32>
    %47 = arith.addf %43, %46 : vector<16x8xf32>
    %cst_40 = arith.constant dense<0.000000e+00> : vector<16x16xf32>
    %48 = tpu.matmul %33, %40, %cst_40 {dimension_numbers = #tpu.dot_dimension_numbers<[1], [1], [0], [0], [0, 0, 1, 0], [], []>} : vector<16x8xf32>, vector<16x8xf32>, vector<16x16xf32> -> vector<16x16xf32>
    %cst_41 = arith.constant 0.353553385 : f32
    %49 = vector.broadcast %cst_41 : f32 to vector<16x16xf32>
    %50 = arith.mulf %48, %49 : vector<16x16xf32>
    %51 = arith.addf %50, %1 : vector<16x16xf32>
    %cst_42 = arith.constant dense<0xFF800000> : vector<16xf32>
    %52 = vector.multi_reduction <maximumf>, %51, %cst_42 [1] : vector<16x16xf32> to vector<16xf32>
    %53 = vector.shape_cast %52 : vector<16xf32> to vector<16x1xf32>
    %54 = vector.broadcast %53 : vector<16x1xf32> to vector<16x16xf32>
    %55 = arith.subf %51, %54 : vector<16x16xf32>
    %56 = math.exp %55 : vector<16x16xf32>
    %cst_43 = arith.constant dense<0.000000e+00> : vector<16xf32>
    %57 = vector.multi_reduction <add>, %56, %cst_43 [1] : vector<16x16xf32> to vector<16xf32>
    %58 = vector.shape_cast %57 : vector<16xf32> to vector<16x1xf32>
    %59 = tpu.reciprocal %58 : vector<16x1xf32> -> vector<16x1xf32>
    %60 = vector.broadcast %59 : vector<16x1xf32> to vector<16x16xf32>
    %61 = arith.mulf %56, %60 : vector<16x16xf32>
    %cst_44 = arith.constant dense<0.000000e+00> : vector<16x8xf32>
    %62 = tpu.matmul %61, %47, %cst_44 {dimension_numbers = #tpu.dot_dimension_numbers<[1], [0], [0], [1], [0, 0, 1, 1], [], []>} : vector<16x16xf32>, vector<16x8xf32>, vector<16x8xf32> -> vector<16x8xf32>
    %c0_45 = arith.constant 0 : index
    %c0_46 = arith.constant 0 : index
    %c0_47 = arith.constant 0 : index
    %c0_48 = arith.constant 0 : index
    %63 = vector.load %arg10[%c0_45, %c0_46, %c0_47, %c0_48] : memref<2x4x8x32xf32, #tpu.memory_space<vmem>>, vector<1x1x8x32xf32>
    %64 = vector.shape_cast %63 : vector<1x1x8x32xf32> to vector<8x32xf32>
    %cst_49 = arith.constant dense<0.000000e+00> : vector<16x32xf32>
    %65 = tpu.matmul %62, %64, %cst_49 {dimension_numbers = #tpu.dot_dimension_numbers<[1], [0], [0], [1], [0, 0, 1, 1], [], []>} : vector<16x8xf32>, vector<8x32xf32>, vector<16x32xf32> -> vector<16x32xf32>
    %c0_50 = arith.constant 0 : index
    %c1 = arith.constant 1 : index
    %c0_51 = arith.constant 0 : index
    %c0_52 = arith.constant 0 : index
    %66 = vector.load %arg4[%c0_50, %c1, %c0_51, %c0_52] : memref<2x4x32x8xf32, #tpu.memory_space<vmem>>, vector<1x1x32x8xf32>
    %67 = vector.shape_cast %66 : vector<1x1x32x8xf32> to vector<32x8xf32>
    %cst_53 = arith.constant dense<0.000000e+00> : vector<16x8xf32>
    %68 = tpu.matmul %26, %67, %cst_53 {dimension_numbers = #tpu.dot_dimension_numbers<[1], [0], [0], [1], [0, 0, 1, 1], [], []>} : vector<16x32xf32>, vector<32x8xf32>, vector<16x8xf32> -> vector<16x8xf32>
    %c0_54 = arith.constant 0 : index
    %c1_55 = arith.constant 1 : index
    %c0_56 = arith.constant 0 : index
    %c0_57 = arith.constant 0 : index
    %69 = vector.load %arg5[%c0_54, %c1_55, %c0_56, %c0_57] : memref<2x4x1x8xf32, #tpu.memory_space<vmem>>, vector<1x1x1x8xf32>
    %70 = vector.shape_cast %69 : vector<1x1x1x8xf32> to vector<1x8xf32>
    %71 = vector.broadcast %70 : vector<1x8xf32> to vector<16x8xf32>
    %72 = arith.addf %68, %71 : vector<16x8xf32>
    %c0_58 = arith.constant 0 : index
    %c1_59 = arith.constant 1 : index
    %c0_60 = arith.constant 0 : index
    %c0_61 = arith.constant 0 : index
    %73 = vector.load %arg6[%c0_58, %c1_59, %c0_60, %c0_61] : memref<2x4x32x8xf32, #tpu.memory_space<vmem>>, vector<1x1x32x8xf32>
    %74 = vector.shape_cast %73 : vector<1x1x32x8xf32> to vector<32x8xf32>
    %cst_62 = arith.constant dense<0.000000e+00> : vector<16x8xf32>
    %75 = tpu.matmul %26, %74, %cst_62 {dimension_numbers = #tpu.dot_dimension_numbers<[1], [0], [0], [1], [0, 0, 1, 1], [], []>} : vector<16x32xf32>, vector<32x8xf32>, vector<16x8xf32> -> vector<16x8xf32>
    %c0_63 = arith.constant 0 : index
    %c1_64 = arith.constant 1 : index
    %c0_65 = arith.constant 0 : index
    %c0_66 = arith.constant 0 : index
    %76 = vector.load %arg7[%c0_63, %c1_64, %c0_65, %c0_66] : memref<2x4x1x8xf32, #tpu.memory_space<vmem>>, vector<1x1x1x8xf32>
    %77 = vector.shape_cast %76 : vector<1x1x1x8xf32> to vector<1x8xf32>
    %78 = vector.broadcast %77 : vector<1x8xf32> to vector<16x8xf32>
    %79 = arith.addf %75, %78 : vector<16x8xf32>
    %c0_67 = arith.constant 0 : index
    %c1_68 = arith.constant 1 : index
    %c0_69 = arith.constant 0 : index
    %c0_70 = arith.constant 0 : index
    %80 = vector.load %arg8[%c0_67, %c1_68, %c0_69, %c0_70] : memref<2x4x32x8xf32, #tpu.memory_space<vmem>>, vector<1x1x32x8xf32>
    %81 = vector.shape_cast %80 : vector<1x1x32x8xf32> to vector<32x8xf32>
    %cst_71 = arith.constant dense<0.000000e+00> : vector<16x8xf32>
    %82 = tpu.matmul %26, %81, %cst_71 {dimension_numbers = #tpu.dot_dimension_numbers<[1], [0], [0], [1], [0, 0, 1, 1], [], []>} : vector<16x32xf32>, vector<32x8xf32>, vector<16x8xf32> -> vector<16x8xf32>
    %c0_72 = arith.constant 0 : index
    %c1_73 = arith.constant 1 : index
    %c0_74 = arith.constant 0 : index
    %c0_75 = arith.constant 0 : index
    %83 = vector.load %arg9[%c0_72, %c1_73, %c0_74, %c0_75] : memref<2x4x1x8xf32, #tpu.memory_space<vmem>>, vector<1x1x1x8xf32>
    %84 = vector.shape_cast %83 : vector<1x1x1x8xf32> to vector<1x8xf32>
    %85 = vector.broadcast %84 : vector<1x8xf32> to vector<16x8xf32>
    %86 = arith.addf %82, %85 : vector<16x8xf32>
    %cst_76 = arith.constant dense<0.000000e+00> : vector<16x16xf32>
    %87 = tpu.matmul %72, %79, %cst_76 {dimension_numbers = #tpu.dot_dimension_numbers<[1], [1], [0], [0], [0, 0, 1, 0], [], []>} : vector<16x8xf32>, vector<16x8xf32>, vector<16x16xf32> -> vector<16x16xf32>
    %cst_77 = arith.constant 0.353553385 : f32
    %88 = vector.broadcast %cst_77 : f32 to vector<16x16xf32>
    %89 = arith.mulf %87, %88 : vector<16x16xf32>
    %90 = arith.addf %89, %1 : vector<16x16xf32>
    %cst_78 = arith.constant dense<0xFF800000> : vector<16xf32>
    %91 = vector.multi_reduction <maximumf>, %90, %cst_78 [1] : vector<16x16xf32> to vector<16xf32>
    %92 = vector.shape_cast %91 : vector<16xf32> to vector<16x1xf32>
    %93 = vector.broadcast %92 : vector<16x1xf32> to vector<16x16xf32>
    %94 = arith.subf %90, %93 : vector<16x16xf32>
    %95 = math.exp %94 : vector<16x16xf32>
    %cst_79 = arith.constant dense<0.000000e+00> : vector<16xf32>
    %96 = vector.multi_reduction <add>, %95, %cst_79 [1] : vector<16x16xf32> to vector<16xf32>
    %97 = vector.shape_cast %96 : vector<16xf32> to vector<16x1xf32>
    %98 = tpu.reciprocal %97 : vector<16x1xf32> -> vector<16x1xf32>
    %99 = vector.broadcast %98 : vector<16x1xf32> to vector<16x16xf32>
    %100 = arith.mulf %95, %99 : vector<16x16xf32>
    %cst_80 = arith.constant dense<0.000000e+00> : vector<16x8xf32>
    %101 = tpu.matmul %100, %86, %cst_80 {dimension_numbers = #tpu.dot_dimension_numbers<[1], [0], [0], [1], [0, 0, 1, 1], [], []>} : vector<16x16xf32>, vector<16x8xf32>, vector<16x8xf32> -> vector<16x8xf32>
    %c0_81 = arith.constant 0 : index
    %c1_82 = arith.constant 1 : index
    %c0_83 = arith.constant 0 : index
    %c0_84 = arith.constant 0 : index
    %102 = vector.load %arg10[%c0_81, %c1_82, %c0_83, %c0_84] : memref<2x4x8x32xf32, #tpu.memory_space<vmem>>, vector<1x1x8x32xf32>
    %103 = vector.shape_cast %102 : vector<1x1x8x32xf32> to vector<8x32xf32>
    %cst_85 = arith.constant dense<0.000000e+00> : vector<16x32xf32>
    %104 = tpu.matmul %101, %103, %cst_85 {dimension_numbers = #tpu.dot_dimension_numbers<[1], [0], [0], [1], [0, 0, 1, 1], [], []>} : vector<16x8xf32>, vector<8x32xf32>, vector<16x32xf32> -> vector<16x32xf32>
    %105 = arith.addf %65, %104 : vector<16x32xf32>
    %c0_86 = arith.constant 0 : index
    %c2 = arith.constant 2 : index
    %c0_87 = arith.constant 0 : index
    %c0_88 = arith.constant 0 : index
    %106 = vector.load %arg4[%c0_86, %c2, %c0_87, %c0_88] : memref<2x4x32x8xf32, #tpu.memory_space<vmem>>, vector<1x1x32x8xf32>
    %107 = vector.shape_cast %106 : vector<1x1x32x8xf32> to vector<32x8xf32>
    %cst_89 = arith.constant dense<0.000000e+00> : vector<16x8xf32>
    %108 = tpu.matmul %26, %107, %cst_89 {dimension_numbers = #tpu.dot_dimension_numbers<[1], [0], [0], [1], [0, 0, 1, 1], [], []>} : vector<16x32xf32>, vector<32x8xf32>, vector<16x8xf32> -> vector<16x8xf32>
    %c0_90 = arith.constant 0 : index
    %c2_91 = arith.constant 2 : index
    %c0_92 = arith.constant 0 : index
    %c0_93 = arith.constant 0 : index
    %109 = vector.load %arg5[%c0_90, %c2_91, %c0_92, %c0_93] : memref<2x4x1x8xf32, #tpu.memory_space<vmem>>, vector<1x1x1x8xf32>
    %110 = vector.shape_cast %109 : vector<1x1x1x8xf32> to vector<1x8xf32>
    %111 = vector.broadcast %110 : vector<1x8xf32> to vector<16x8xf32>
    %112 = arith.addf %108, %111 : vector<16x8xf32>
    %c0_94 = arith.constant 0 : index
    %c2_95 = arith.constant 2 : index
    %c0_96 = arith.constant 0 : index
    %c0_97 = arith.constant 0 : index
    %113 = vector.load %arg6[%c0_94, %c2_95, %c0_96, %c0_97] : memref<2x4x32x8xf32, #tpu.memory_space<vmem>>, vector<1x1x32x8xf32>
    %114 = vector.shape_cast %113 : vector<1x1x32x8xf32> to vector<32x8xf32>
    %cst_98 = arith.constant dense<0.000000e+00> : vector<16x8xf32>
    %115 = tpu.matmul %26, %114, %cst_98 {dimension_numbers = #tpu.dot_dimension_numbers<[1], [0], [0], [1], [0, 0, 1, 1], [], []>} : vector<16x32xf32>, vector<32x8xf32>, vector<16x8xf32> -> vector<16x8xf32>
    %c0_99 = arith.constant 0 : index
    %c2_100 = arith.constant 2 : index
    %c0_101 = arith.constant 0 : index
    %c0_102 = arith.constant 0 : index
    %116 = vector.load %arg7[%c0_99, %c2_100, %c0_101, %c0_102] : memref<2x4x1x8xf32, #tpu.memory_space<vmem>>, vector<1x1x1x8xf32>
    %117 = vector.shape_cast %116 : vector<1x1x1x8xf32> to vector<1x8xf32>
    %118 = vector.broadcast %117 : vector<1x8xf32> to vector<16x8xf32>
    %119 = arith.addf %115, %118 : vector<16x8xf32>
    %c0_103 = arith.constant 0 : index
    %c2_104 = arith.constant 2 : index
    %c0_105 = arith.constant 0 : index
    %c0_106 = arith.constant 0 : index
    %120 = vector.load %arg8[%c0_103, %c2_104, %c0_105, %c0_106] : memref<2x4x32x8xf32, #tpu.memory_space<vmem>>, vector<1x1x32x8xf32>
    %121 = vector.shape_cast %120 : vector<1x1x32x8xf32> to vector<32x8xf32>
    %cst_107 = arith.constant dense<0.000000e+00> : vector<16x8xf32>
    %122 = tpu.matmul %26, %121, %cst_107 {dimension_numbers = #tpu.dot_dimension_numbers<[1], [0], [0], [1], [0, 0, 1, 1], [], []>} : vector<16x32xf32>, vector<32x8xf32>, vector<16x8xf32> -> vector<16x8xf32>
    %c0_108 = arith.constant 0 : index
    %c2_109 = arith.constant 2 : index
    %c0_110 = arith.constant 0 : index
    %c0_111 = arith.constant 0 : index
    %123 = vector.load %arg9[%c0_108, %c2_109, %c0_110, %c0_111] : memref<2x4x1x8xf32, #tpu.memory_space<vmem>>, vector<1x1x1x8xf32>
    %124 = vector.shape_cast %123 : vector<1x1x1x8xf32> to vector<1x8xf32>
    %125 = vector.broadcast %124 : vector<1x8xf32> to vector<16x8xf32>
    %126 = arith.addf %122, %125 : vector<16x8xf32>
    %cst_112 = arith.constant dense<0.000000e+00> : vector<16x16xf32>
    %127 = tpu.matmul %112, %119, %cst_112 {dimension_numbers = #tpu.dot_dimension_numbers<[1], [1], [0], [0], [0, 0, 1, 0], [], []>} : vector<16x8xf32>, vector<16x8xf32>, vector<16x16xf32> -> vector<16x16xf32>
    %cst_113 = arith.constant 0.353553385 : f32
    %128 = vector.broadcast %cst_113 : f32 to vector<16x16xf32>
    %129 = arith.mulf %127, %128 : vector<16x16xf32>
    %130 = arith.addf %129, %1 : vector<16x16xf32>
    %cst_114 = arith.constant dense<0xFF800000> : vector<16xf32>
    %131 = vector.multi_reduction <maximumf>, %130, %cst_114 [1] : vector<16x16xf32> to vector<16xf32>
    %132 = vector.shape_cast %131 : vector<16xf32> to vector<16x1xf32>
    %133 = vector.broadcast %132 : vector<16x1xf32> to vector<16x16xf32>
    %134 = arith.subf %130, %133 : vector<16x16xf32>
    %135 = math.exp %134 : vector<16x16xf32>
    %cst_115 = arith.constant dense<0.000000e+00> : vector<16xf32>
    %136 = vector.multi_reduction <add>, %135, %cst_115 [1] : vector<16x16xf32> to vector<16xf32>
    %137 = vector.shape_cast %136 : vector<16xf32> to vector<16x1xf32>
    %138 = tpu.reciprocal %137 : vector<16x1xf32> -> vector<16x1xf32>
    %139 = vector.broadcast %138 : vector<16x1xf32> to vector<16x16xf32>
    %140 = arith.mulf %135, %139 : vector<16x16xf32>
    %cst_116 = arith.constant dense<0.000000e+00> : vector<16x8xf32>
    %141 = tpu.matmul %140, %126, %cst_116 {dimension_numbers = #tpu.dot_dimension_numbers<[1], [0], [0], [1], [0, 0, 1, 1], [], []>} : vector<16x16xf32>, vector<16x8xf32>, vector<16x8xf32> -> vector<16x8xf32>
    %c0_117 = arith.constant 0 : index
    %c2_118 = arith.constant 2 : index
    %c0_119 = arith.constant 0 : index
    %c0_120 = arith.constant 0 : index
    %142 = vector.load %arg10[%c0_117, %c2_118, %c0_119, %c0_120] : memref<2x4x8x32xf32, #tpu.memory_space<vmem>>, vector<1x1x8x32xf32>
    %143 = vector.shape_cast %142 : vector<1x1x8x32xf32> to vector<8x32xf32>
    %cst_121 = arith.constant dense<0.000000e+00> : vector<16x32xf32>
    %144 = tpu.matmul %141, %143, %cst_121 {dimension_numbers = #tpu.dot_dimension_numbers<[1], [0], [0], [1], [0, 0, 1, 1], [], []>} : vector<16x8xf32>, vector<8x32xf32>, vector<16x32xf32> -> vector<16x32xf32>
    %145 = arith.addf %105, %144 : vector<16x32xf32>
    %c0_122 = arith.constant 0 : index
    %c3 = arith.constant 3 : index
    %c0_123 = arith.constant 0 : index
    %c0_124 = arith.constant 0 : index
    %146 = vector.load %arg4[%c0_122, %c3, %c0_123, %c0_124] : memref<2x4x32x8xf32, #tpu.memory_space<vmem>>, vector<1x1x32x8xf32>
    %147 = vector.shape_cast %146 : vector<1x1x32x8xf32> to vector<32x8xf32>
    %cst_125 = arith.constant dense<0.000000e+00> : vector<16x8xf32>
    %148 = tpu.matmul %26, %147, %cst_125 {dimension_numbers = #tpu.dot_dimension_numbers<[1], [0], [0], [1], [0, 0, 1, 1], [], []>} : vector<16x32xf32>, vector<32x8xf32>, vector<16x8xf32> -> vector<16x8xf32>
    %c0_126 = arith.constant 0 : index
    %c3_127 = arith.constant 3 : index
    %c0_128 = arith.constant 0 : index
    %c0_129 = arith.constant 0 : index
    %149 = vector.load %arg5[%c0_126, %c3_127, %c0_128, %c0_129] : memref<2x4x1x8xf32, #tpu.memory_space<vmem>>, vector<1x1x1x8xf32>
    %150 = vector.shape_cast %149 : vector<1x1x1x8xf32> to vector<1x8xf32>
    %151 = vector.broadcast %150 : vector<1x8xf32> to vector<16x8xf32>
    %152 = arith.addf %148, %151 : vector<16x8xf32>
    %c0_130 = arith.constant 0 : index
    %c3_131 = arith.constant 3 : index
    %c0_132 = arith.constant 0 : index
    %c0_133 = arith.constant 0 : index
    %153 = vector.load %arg6[%c0_130, %c3_131, %c0_132, %c0_133] : memref<2x4x32x8xf32, #tpu.memory_space<vmem>>, vector<1x1x32x8xf32>
    %154 = vector.shape_cast %153 : vector<1x1x32x8xf32> to vector<32x8xf32>
    %cst_134 = arith.constant dense<0.000000e+00> : vector<16x8xf32>
    %155 = tpu.matmul %26, %154, %cst_134 {dimension_numbers = #tpu.dot_dimension_numbers<[1], [0], [0], [1], [0, 0, 1, 1], [], []>} : vector<16x32xf32>, vector<32x8xf32>, vector<16x8xf32> -> vector<16x8xf32>
    %c0_135 = arith.constant 0 : index
    %c3_136 = arith.constant 3 : index
    %c0_137 = arith.constant 0 : index
    %c0_138 = arith.constant 0 : index
    %156 = vector.load %arg7[%c0_135, %c3_136, %c0_137, %c0_138] : memref<2x4x1x8xf32, #tpu.memory_space<vmem>>, vector<1x1x1x8xf32>
    %157 = vector.shape_cast %156 : vector<1x1x1x8xf32> to vector<1x8xf32>
    %158 = vector.broadcast %157 : vector<1x8xf32> to vector<16x8xf32>
    %159 = arith.addf %155, %158 : vector<16x8xf32>
    %c0_139 = arith.constant 0 : index
    %c3_140 = arith.constant 3 : index
    %c0_141 = arith.constant 0 : index
    %c0_142 = arith.constant 0 : index
    %160 = vector.load %arg8[%c0_139, %c3_140, %c0_141, %c0_142] : memref<2x4x32x8xf32, #tpu.memory_space<vmem>>, vector<1x1x32x8xf32>
    %161 = vector.shape_cast %160 : vector<1x1x32x8xf32> to vector<32x8xf32>
    %cst_143 = arith.constant dense<0.000000e+00> : vector<16x8xf32>
    %162 = tpu.matmul %26, %161, %cst_143 {dimension_numbers = #tpu.dot_dimension_numbers<[1], [0], [0], [1], [0, 0, 1, 1], [], []>} : vector<16x32xf32>, vector<32x8xf32>, vector<16x8xf32> -> vector<16x8xf32>
    %c0_144 = arith.constant 0 : index
    %c3_145 = arith.constant 3 : index
    %c0_146 = arith.constant 0 : index
    %c0_147 = arith.constant 0 : index
    %163 = vector.load %arg9[%c0_144, %c3_145, %c0_146, %c0_147] : memref<2x4x1x8xf32, #tpu.memory_space<vmem>>, vector<1x1x1x8xf32>
    %164 = vector.shape_cast %163 : vector<1x1x1x8xf32> to vector<1x8xf32>
    %165 = vector.broadcast %164 : vector<1x8xf32> to vector<16x8xf32>
    %166 = arith.addf %162, %165 : vector<16x8xf32>
    %cst_148 = arith.constant dense<0.000000e+00> : vector<16x16xf32>
    %167 = tpu.matmul %152, %159, %cst_148 {dimension_numbers = #tpu.dot_dimension_numbers<[1], [1], [0], [0], [0, 0, 1, 0], [], []>} : vector<16x8xf32>, vector<16x8xf32>, vector<16x16xf32> -> vector<16x16xf32>
    %cst_149 = arith.constant 0.353553385 : f32
    %168 = vector.broadcast %cst_149 : f32 to vector<16x16xf32>
    %169 = arith.mulf %167, %168 : vector<16x16xf32>
    %170 = arith.addf %169, %1 : vector<16x16xf32>
    %cst_150 = arith.constant dense<0xFF800000> : vector<16xf32>
    %171 = vector.multi_reduction <maximumf>, %170, %cst_150 [1] : vector<16x16xf32> to vector<16xf32>
    %172 = vector.shape_cast %171 : vector<16xf32> to vector<16x1xf32>
    %173 = vector.broadcast %172 : vector<16x1xf32> to vector<16x16xf32>
    %174 = arith.subf %170, %173 : vector<16x16xf32>
    %175 = math.exp %174 : vector<16x16xf32>
    %cst_151 = arith.constant dense<0.000000e+00> : vector<16xf32>
    %176 = vector.multi_reduction <add>, %175, %cst_151 [1] : vector<16x16xf32> to vector<16xf32>
    %177 = vector.shape_cast %176 : vector<16xf32> to vector<16x1xf32>
    %178 = tpu.reciprocal %177 : vector<16x1xf32> -> vector<16x1xf32>
    %179 = vector.broadcast %178 : vector<16x1xf32> to vector<16x16xf32>
    %180 = arith.mulf %175, %179 : vector<16x16xf32>
    %cst_152 = arith.constant dense<0.000000e+00> : vector<16x8xf32>
    %181 = tpu.matmul %180, %166, %cst_152 {dimension_numbers = #tpu.dot_dimension_numbers<[1], [0], [0], [1], [0, 0, 1, 1], [], []>} : vector<16x16xf32>, vector<16x8xf32>, vector<16x8xf32> -> vector<16x8xf32>
    %c0_153 = arith.constant 0 : index
    %c3_154 = arith.constant 3 : index
    %c0_155 = arith.constant 0 : index
    %c0_156 = arith.constant 0 : index
    %182 = vector.load %arg10[%c0_153, %c3_154, %c0_155, %c0_156] : memref<2x4x8x32xf32, #tpu.memory_space<vmem>>, vector<1x1x8x32xf32>
    %183 = vector.shape_cast %182 : vector<1x1x8x32xf32> to vector<8x32xf32>
    %cst_157 = arith.constant dense<0.000000e+00> : vector<16x32xf32>
    %184 = tpu.matmul %181, %183, %cst_157 {dimension_numbers = #tpu.dot_dimension_numbers<[1], [0], [0], [1], [0, 0, 1, 1], [], []>} : vector<16x8xf32>, vector<8x32xf32>, vector<16x32xf32> -> vector<16x32xf32>
    %185 = arith.addf %145, %184 : vector<16x32xf32>
    %186 = arith.addf %0, %185 : vector<16x32xf32>
    %c0_158 = arith.constant 0 : index
    %c0_159 = arith.constant 0 : index
    %c0_160 = arith.constant 0 : index
    %187 = vector.load %arg11[%c0_158, %c0_159, %c0_160] : memref<2x1x32xf32, #tpu.memory_space<vmem>>, vector<1x1x32xf32>
    %188 = vector.shape_cast %187 : vector<1x1x32xf32> to vector<1x32xf32>
    %189 = vector.broadcast %188 : vector<1x32xf32> to vector<16x32xf32>
    %190 = arith.addf %186, %189 : vector<16x32xf32>
    %c0_161 = arith.constant 0 : index
    %c0_162 = arith.constant 0 : index
    %c0_163 = arith.constant 0 : index
    %191 = vector.load %arg12[%c0_161, %c0_162, %c0_163] : memref<2x1x32xf32, #tpu.memory_space<vmem>>, vector<1x1x32xf32>
    %192 = vector.shape_cast %191 : vector<1x1x32xf32> to vector<1x32xf32>
    %c0_164 = arith.constant 0 : index
    %c0_165 = arith.constant 0 : index
    %c0_166 = arith.constant 0 : index
    %193 = vector.load %arg13[%c0_164, %c0_165, %c0_166] : memref<2x1x32xf32, #tpu.memory_space<vmem>>, vector<1x1x32xf32>
    %194 = vector.shape_cast %193 : vector<1x1x32xf32> to vector<1x32xf32>
    %cst_167 = arith.constant dense<0.000000e+00> : vector<16xf32>
    %195 = vector.multi_reduction <add>, %190, %cst_167 [1] : vector<16x32xf32> to vector<16xf32>
    %196 = vector.shape_cast %195 : vector<16xf32> to vector<16x1xf32>
    %cst_168 = arith.constant 3.200000e+01 : f32
    %197 = vector.broadcast %cst_168 : f32 to vector<16x1xf32>
    %198 = arith.divf %196, %197 : vector<16x1xf32>
    %199 = vector.broadcast %198 : vector<16x1xf32> to vector<16x32xf32>
    %200 = arith.subf %190, %199 : vector<16x32xf32>
    %201 = arith.mulf %200, %200 : vector<16x32xf32>
    %cst_169 = arith.constant dense<0.000000e+00> : vector<16xf32>
    %202 = vector.multi_reduction <add>, %201, %cst_169 [1] : vector<16x32xf32> to vector<16xf32>
    %203 = vector.shape_cast %202 : vector<16xf32> to vector<16x1xf32>
    %cst_170 = arith.constant 0.0322580636 : f32
    %204 = vector.broadcast %cst_170 : f32 to vector<16x1xf32>
    %205 = arith.mulf %203, %204 : vector<16x1xf32>
    %206 = math.sqrt %205 : vector<16x1xf32>
    %cst_171 = arith.constant 9.99999997E-7 : f32
    %207 = vector.broadcast %cst_171 : f32 to vector<16x1xf32>
    %208 = arith.addf %206, %207 : vector<16x1xf32>
    %209 = tpu.reciprocal %208 : vector<16x1xf32> -> vector<16x1xf32>
    %210 = vector.broadcast %192 : vector<1x32xf32> to vector<16x32xf32>
    %211 = vector.broadcast %209 : vector<16x1xf32> to vector<16x32xf32>
    %212 = arith.mulf %210, %211 : vector<16x32xf32>
    %213 = arith.mulf %200, %212 : vector<16x32xf32>
    %214 = vector.broadcast %194 : vector<1x32xf32> to vector<16x32xf32>
    %215 = arith.addf %213, %214 : vector<16x32xf32>
    %c0_172 = arith.constant 0 : index
    %c0_173 = arith.constant 0 : index
    %c0_174 = arith.constant 0 : index
    %216 = vector.load %arg14[%c0_172, %c0_173, %c0_174] : memref<2x32x64xf32, #tpu.memory_space<vmem>>, vector<1x32x64xf32>
    %217 = vector.shape_cast %216 : vector<1x32x64xf32> to vector<32x64xf32>
    %cst_175 = arith.constant dense<0.000000e+00> : vector<16x64xf32>
    %218 = tpu.matmul %215, %217, %cst_175 {dimension_numbers = #tpu.dot_dimension_numbers<[1], [0], [0], [1], [0, 0, 1, 1], [], []>} : vector<16x32xf32>, vector<32x64xf32>, vector<16x64xf32> -> vector<16x64xf32>
    %c0_176 = arith.constant 0 : index
    %c0_177 = arith.constant 0 : index
    %c0_178 = arith.constant 0 : index
    %219 = vector.load %arg15[%c0_176, %c0_177, %c0_178] : memref<2x1x64xf32, #tpu.memory_space<vmem>>, vector<1x1x64xf32>
    %220 = vector.shape_cast %219 : vector<1x1x64xf32> to vector<1x64xf32>
    %221 = vector.broadcast %220 : vector<1x64xf32> to vector<16x64xf32>
    %222 = arith.addf %218, %221 : vector<16x64xf32>
    %cst_179 = arith.constant 0.000000e+00 : f32
    %223 = vector.broadcast %cst_179 : f32 to vector<16x64xf32>
    %224 = arith.maximumf %222, %223 : vector<16x64xf32>
    %c0_180 = arith.constant 0 : index
    %c0_181 = arith.constant 0 : index
    %c0_182 = arith.constant 0 : index
    %225 = vector.load %arg16[%c0_180, %c0_181, %c0_182] : memref<2x64x32xf32, #tpu.memory_space<vmem>>, vector<1x64x32xf32>
    %226 = vector.shape_cast %225 : vector<1x64x32xf32> to vector<64x32xf32>
    %cst_183 = arith.constant dense<0.000000e+00> : vector<16x32xf32>
    %227 = tpu.matmul %224, %226, %cst_183 {dimension_numbers = #tpu.dot_dimension_numbers<[1], [0], [0], [1], [0, 0, 1, 1], [], []>} : vector<16x64xf32>, vector<64x32xf32>, vector<16x32xf32> -> vector<16x32xf32>
    %228 = arith.addf %190, %227 : vector<16x32xf32>
    %c0_184 = arith.constant 0 : index
    %c0_185 = arith.constant 0 : index
    %c0_186 = arith.constant 0 : index
    %229 = vector.load %arg17[%c0_184, %c0_185, %c0_186] : memref<2x1x32xf32, #tpu.memory_space<vmem>>, vector<1x1x32xf32>
    %230 = vector.shape_cast %229 : vector<1x1x32xf32> to vector<1x32xf32>
    %231 = vector.broadcast %230 : vector<1x32xf32> to vector<16x32xf32>
    %232 = arith.addf %228, %231 : vector<16x32xf32>
    %c1_187 = arith.constant 1 : index
    %c0_188 = arith.constant 0 : index
    %c0_189 = arith.constant 0 : index
    %233 = vector.load %arg2[%c1_187, %c0_188, %c0_189] : memref<2x1x32xf32, #tpu.memory_space<vmem>>, vector<1x1x32xf32>
    %234 = vector.shape_cast %233 : vector<1x1x32xf32> to vector<1x32xf32>
    %c1_190 = arith.constant 1 : index
    %c0_191 = arith.constant 0 : index
    %c0_192 = arith.constant 0 : index
    %235 = vector.load %arg3[%c1_190, %c0_191, %c0_192] : memref<2x1x32xf32, #tpu.memory_space<vmem>>, vector<1x1x32xf32>
    %236 = vector.shape_cast %235 : vector<1x1x32xf32> to vector<1x32xf32>
    %cst_193 = arith.constant dense<0.000000e+00> : vector<16xf32>
    %237 = vector.multi_reduction <add>, %232, %cst_193 [1] : vector<16x32xf32> to vector<16xf32>
    %238 = vector.shape_cast %237 : vector<16xf32> to vector<16x1xf32>
    %cst_194 = arith.constant 3.200000e+01 : f32
    %239 = vector.broadcast %cst_194 : f32 to vector<16x1xf32>
    %240 = arith.divf %238, %239 : vector<16x1xf32>
    %241 = vector.broadcast %240 : vector<16x1xf32> to vector<16x32xf32>
    %242 = arith.subf %232, %241 : vector<16x32xf32>
    %243 = arith.mulf %242, %242 : vector<16x32xf32>
    %cst_195 = arith.constant dense<0.000000e+00> : vector<16xf32>
    %244 = vector.multi_reduction <add>, %243, %cst_195 [1] : vector<16x32xf32> to vector<16xf32>
    %245 = vector.shape_cast %244 : vector<16xf32> to vector<16x1xf32>
    %cst_196 = arith.constant 0.0322580636 : f32
    %246 = vector.broadcast %cst_196 : f32 to vector<16x1xf32>
    %247 = arith.mulf %245, %246 : vector<16x1xf32>
    %248 = math.sqrt %247 : vector<16x1xf32>
    %cst_197 = arith.constant 9.99999997E-7 : f32
    %249 = vector.broadcast %cst_197 : f32 to vector<16x1xf32>
    %250 = arith.addf %248, %249 : vector<16x1xf32>
    %251 = tpu.reciprocal %250 : vector<16x1xf32> -> vector<16x1xf32>
    %252 = vector.broadcast %234 : vector<1x32xf32> to vector<16x32xf32>
    %253 = vector.broadcast %251 : vector<16x1xf32> to vector<16x32xf32>
    %254 = arith.mulf %252, %253 : vector<16x32xf32>
    %255 = arith.mulf %242, %254 : vector<16x32xf32>
    %256 = vector.broadcast %236 : vector<1x32xf32> to vector<16x32xf32>
    %257 = arith.addf %255, %256 : vector<16x32xf32>
    %c1_198 = arith.constant 1 : index
    %c0_199 = arith.constant 0 : index
    %c0_200 = arith.constant 0 : index
    %c0_201 = arith.constant 0 : index
    %258 = vector.load %arg4[%c1_198, %c0_199, %c0_200, %c0_201] : memref<2x4x32x8xf32, #tpu.memory_space<vmem>>, vector<1x1x32x8xf32>
    %259 = vector.shape_cast %258 : vector<1x1x32x8xf32> to vector<32x8xf32>
    %cst_202 = arith.constant dense<0.000000e+00> : vector<16x8xf32>
    %260 = tpu.matmul %257, %259, %cst_202 {dimension_numbers = #tpu.dot_dimension_numbers<[1], [0], [0], [1], [0, 0, 1, 1], [], []>} : vector<16x32xf32>, vector<32x8xf32>, vector<16x8xf32> -> vector<16x8xf32>
    %c1_203 = arith.constant 1 : index
    %c0_204 = arith.constant 0 : index
    %c0_205 = arith.constant 0 : index
    %c0_206 = arith.constant 0 : index
    %261 = vector.load %arg5[%c1_203, %c0_204, %c0_205, %c0_206] : memref<2x4x1x8xf32, #tpu.memory_space<vmem>>, vector<1x1x1x8xf32>
    %262 = vector.shape_cast %261 : vector<1x1x1x8xf32> to vector<1x8xf32>
    %263 = vector.broadcast %262 : vector<1x8xf32> to vector<16x8xf32>
    %264 = arith.addf %260, %263 : vector<16x8xf32>
    %c1_207 = arith.constant 1 : index
    %c0_208 = arith.constant 0 : index
    %c0_209 = arith.constant 0 : index
    %c0_210 = arith.constant 0 : index
    %265 = vector.load %arg6[%c1_207, %c0_208, %c0_209, %c0_210] : memref<2x4x32x8xf32, #tpu.memory_space<vmem>>, vector<1x1x32x8xf32>
    %266 = vector.shape_cast %265 : vector<1x1x32x8xf32> to vector<32x8xf32>
    %cst_211 = arith.constant dense<0.000000e+00> : vector<16x8xf32>
    %267 = tpu.matmul %257, %266, %cst_211 {dimension_numbers = #tpu.dot_dimension_numbers<[1], [0], [0], [1], [0, 0, 1, 1], [], []>} : vector<16x32xf32>, vector<32x8xf32>, vector<16x8xf32> -> vector<16x8xf32>
    %c1_212 = arith.constant 1 : index
    %c0_213 = arith.constant 0 : index
    %c0_214 = arith.constant 0 : index
    %c0_215 = arith.constant 0 : index
    %268 = vector.load %arg7[%c1_212, %c0_213, %c0_214, %c0_215] : memref<2x4x1x8xf32, #tpu.memory_space<vmem>>, vector<1x1x1x8xf32>
    %269 = vector.shape_cast %268 : vector<1x1x1x8xf32> to vector<1x8xf32>
    %270 = vector.broadcast %269 : vector<1x8xf32> to vector<16x8xf32>
    %271 = arith.addf %267, %270 : vector<16x8xf32>
    %c1_216 = arith.constant 1 : index
    %c0_217 = arith.constant 0 : index
    %c0_218 = arith.constant 0 : index
    %c0_219 = arith.constant 0 : index
    %272 = vector.load %arg8[%c1_216, %c0_217, %c0_218, %c0_219] : memref<2x4x32x8xf32, #tpu.memory_space<vmem>>, vector<1x1x32x8xf32>
    %273 = vector.shape_cast %272 : vector<1x1x32x8xf32> to vector<32x8xf32>
    %cst_220 = arith.constant dense<0.000000e+00> : vector<16x8xf32>
    %274 = tpu.matmul %257, %273, %cst_220 {dimension_numbers = #tpu.dot_dimension_numbers<[1], [0], [0], [1], [0, 0, 1, 1], [], []>} : vector<16x32xf32>, vector<32x8xf32>, vector<16x8xf32> -> vector<16x8xf32>
    %c1_221 = arith.constant 1 : index
    %c0_222 = arith.constant 0 : index
    %c0_223 = arith.constant 0 : index
    %c0_224 = arith.constant 0 : index
    %275 = vector.load %arg9[%c1_221, %c0_222, %c0_223, %c0_224] : memref<2x4x1x8xf32, #tpu.memory_space<vmem>>, vector<1x1x1x8xf32>
    %276 = vector.shape_cast %275 : vector<1x1x1x8xf32> to vector<1x8xf32>
    %277 = vector.broadcast %276 : vector<1x8xf32> to vector<16x8xf32>
    %278 = arith.addf %274, %277 : vector<16x8xf32>
    %cst_225 = arith.constant dense<0.000000e+00> : vector<16x16xf32>
    %279 = tpu.matmul %264, %271, %cst_225 {dimension_numbers = #tpu.dot_dimension_numbers<[1], [1], [0], [0], [0, 0, 1, 0], [], []>} : vector<16x8xf32>, vector<16x8xf32>, vector<16x16xf32> -> vector<16x16xf32>
    %cst_226 = arith.constant 0.353553385 : f32
    %280 = vector.broadcast %cst_226 : f32 to vector<16x16xf32>
    %281 = arith.mulf %279, %280 : vector<16x16xf32>
    %282 = arith.addf %281, %1 : vector<16x16xf32>
    %cst_227 = arith.constant dense<0xFF800000> : vector<16xf32>
    %283 = vector.multi_reduction <maximumf>, %282, %cst_227 [1] : vector<16x16xf32> to vector<16xf32>
    %284 = vector.shape_cast %283 : vector<16xf32> to vector<16x1xf32>
    %285 = vector.broadcast %284 : vector<16x1xf32> to vector<16x16xf32>
    %286 = arith.subf %282, %285 : vector<16x16xf32>
    %287 = math.exp %286 : vector<16x16xf32>
    %cst_228 = arith.constant dense<0.000000e+00> : vector<16xf32>
    %288 = vector.multi_reduction <add>, %287, %cst_228 [1] : vector<16x16xf32> to vector<16xf32>
    %289 = vector.shape_cast %288 : vector<16xf32> to vector<16x1xf32>
    %290 = tpu.reciprocal %289 : vector<16x1xf32> -> vector<16x1xf32>
    %291 = vector.broadcast %290 : vector<16x1xf32> to vector<16x16xf32>
    %292 = arith.mulf %287, %291 : vector<16x16xf32>
    %cst_229 = arith.constant dense<0.000000e+00> : vector<16x8xf32>
    %293 = tpu.matmul %292, %278, %cst_229 {dimension_numbers = #tpu.dot_dimension_numbers<[1], [0], [0], [1], [0, 0, 1, 1], [], []>} : vector<16x16xf32>, vector<16x8xf32>, vector<16x8xf32> -> vector<16x8xf32>
    %c1_230 = arith.constant 1 : index
    %c0_231 = arith.constant 0 : index
    %c0_232 = arith.constant 0 : index
    %c0_233 = arith.constant 0 : index
    %294 = vector.load %arg10[%c1_230, %c0_231, %c0_232, %c0_233] : memref<2x4x8x32xf32, #tpu.memory_space<vmem>>, vector<1x1x8x32xf32>
    %295 = vector.shape_cast %294 : vector<1x1x8x32xf32> to vector<8x32xf32>
    %cst_234 = arith.constant dense<0.000000e+00> : vector<16x32xf32>
    %296 = tpu.matmul %293, %295, %cst_234 {dimension_numbers = #tpu.dot_dimension_numbers<[1], [0], [0], [1], [0, 0, 1, 1], [], []>} : vector<16x8xf32>, vector<8x32xf32>, vector<16x32xf32> -> vector<16x32xf32>
    %c1_235 = arith.constant 1 : index
    %c1_236 = arith.constant 1 : index
    %c0_237 = arith.constant 0 : index
    %c0_238 = arith.constant 0 : index
    %297 = vector.load %arg4[%c1_235, %c1_236, %c0_237, %c0_238] : memref<2x4x32x8xf32, #tpu.memory_space<vmem>>, vector<1x1x32x8xf32>
    %298 = vector.shape_cast %297 : vector<1x1x32x8xf32> to vector<32x8xf32>
    %cst_239 = arith.constant dense<0.000000e+00> : vector<16x8xf32>
    %299 = tpu.matmul %257, %298, %cst_239 {dimension_numbers = #tpu.dot_dimension_numbers<[1], [0], [0], [1], [0, 0, 1, 1], [], []>} : vector<16x32xf32>, vector<32x8xf32>, vector<16x8xf32> -> vector<16x8xf32>
    %c1_240 = arith.constant 1 : index
    %c1_241 = arith.constant 1 : index
    %c0_242 = arith.constant 0 : index
    %c0_243 = arith.constant 0 : index
    %300 = vector.load %arg5[%c1_240, %c1_241, %c0_242, %c0_243] : memref<2x4x1x8xf32, #tpu.memory_space<vmem>>, vector<1x1x1x8xf32>
    %301 = vector.shape_cast %300 : vector<1x1x1x8xf32> to vector<1x8xf32>
    %302 = vector.broadcast %301 : vector<1x8xf32> to vector<16x8xf32>
    %303 = arith.addf %299, %302 : vector<16x8xf32>
    %c1_244 = arith.constant 1 : index
    %c1_245 = arith.constant 1 : index
    %c0_246 = arith.constant 0 : index
    %c0_247 = arith.constant 0 : index
    %304 = vector.load %arg6[%c1_244, %c1_245, %c0_246, %c0_247] : memref<2x4x32x8xf32, #tpu.memory_space<vmem>>, vector<1x1x32x8xf32>
    %305 = vector.shape_cast %304 : vector<1x1x32x8xf32> to vector<32x8xf32>
    %cst_248 = arith.constant dense<0.000000e+00> : vector<16x8xf32>
    %306 = tpu.matmul %257, %305, %cst_248 {dimension_numbers = #tpu.dot_dimension_numbers<[1], [0], [0], [1], [0, 0, 1, 1], [], []>} : vector<16x32xf32>, vector<32x8xf32>, vector<16x8xf32> -> vector<16x8xf32>
    %c1_249 = arith.constant 1 : index
    %c1_250 = arith.constant 1 : index
    %c0_251 = arith.constant 0 : index
    %c0_252 = arith.constant 0 : index
    %307 = vector.load %arg7[%c1_249, %c1_250, %c0_251, %c0_252] : memref<2x4x1x8xf32, #tpu.memory_space<vmem>>, vector<1x1x1x8xf32>
    %308 = vector.shape_cast %307 : vector<1x1x1x8xf32> to vector<1x8xf32>
    %309 = vector.broadcast %308 : vector<1x8xf32> to vector<16x8xf32>
    %310 = arith.addf %306, %309 : vector<16x8xf32>
    %c1_253 = arith.constant 1 : index
    %c1_254 = arith.constant 1 : index
    %c0_255 = arith.constant 0 : index
    %c0_256 = arith.constant 0 : index
    %311 = vector.load %arg8[%c1_253, %c1_254, %c0_255, %c0_256] : memref<2x4x32x8xf32, #tpu.memory_space<vmem>>, vector<1x1x32x8xf32>
    %312 = vector.shape_cast %311 : vector<1x1x32x8xf32> to vector<32x8xf32>
    %cst_257 = arith.constant dense<0.000000e+00> : vector<16x8xf32>
    %313 = tpu.matmul %257, %312, %cst_257 {dimension_numbers = #tpu.dot_dimension_numbers<[1], [0], [0], [1], [0, 0, 1, 1], [], []>} : vector<16x32xf32>, vector<32x8xf32>, vector<16x8xf32> -> vector<16x8xf32>
    %c1_258 = arith.constant 1 : index
    %c1_259 = arith.constant 1 : index
    %c0_260 = arith.constant 0 : index
    %c0_261 = arith.constant 0 : index
    %314 = vector.load %arg9[%c1_258, %c1_259, %c0_260, %c0_261] : memref<2x4x1x8xf32, #tpu.memory_space<vmem>>, vector<1x1x1x8xf32>
    %315 = vector.shape_cast %314 : vector<1x1x1x8xf32> to vector<1x8xf32>
    %316 = vector.broadcast %315 : vector<1x8xf32> to vector<16x8xf32>
    %317 = arith.addf %313, %316 : vector<16x8xf32>
    %cst_262 = arith.constant dense<0.000000e+00> : vector<16x16xf32>
    %318 = tpu.matmul %303, %310, %cst_262 {dimension_numbers = #tpu.dot_dimension_numbers<[1], [1], [0], [0], [0, 0, 1, 0], [], []>} : vector<16x8xf32>, vector<16x8xf32>, vector<16x16xf32> -> vector<16x16xf32>
    %cst_263 = arith.constant 0.353553385 : f32
    %319 = vector.broadcast %cst_263 : f32 to vector<16x16xf32>
    %320 = arith.mulf %318, %319 : vector<16x16xf32>
    %321 = arith.addf %320, %1 : vector<16x16xf32>
    %cst_264 = arith.constant dense<0xFF800000> : vector<16xf32>
    %322 = vector.multi_reduction <maximumf>, %321, %cst_264 [1] : vector<16x16xf32> to vector<16xf32>
    %323 = vector.shape_cast %322 : vector<16xf32> to vector<16x1xf32>
    %324 = vector.broadcast %323 : vector<16x1xf32> to vector<16x16xf32>
    %325 = arith.subf %321, %324 : vector<16x16xf32>
    %326 = math.exp %325 : vector<16x16xf32>
    %cst_265 = arith.constant dense<0.000000e+00> : vector<16xf32>
    %327 = vector.multi_reduction <add>, %326, %cst_265 [1] : vector<16x16xf32> to vector<16xf32>
    %328 = vector.shape_cast %327 : vector<16xf32> to vector<16x1xf32>
    %329 = tpu.reciprocal %328 : vector<16x1xf32> -> vector<16x1xf32>
    %330 = vector.broadcast %329 : vector<16x1xf32> to vector<16x16xf32>
    %331 = arith.mulf %326, %330 : vector<16x16xf32>
    %cst_266 = arith.constant dense<0.000000e+00> : vector<16x8xf32>
    %332 = tpu.matmul %331, %317, %cst_266 {dimension_numbers = #tpu.dot_dimension_numbers<[1], [0], [0], [1], [0, 0, 1, 1], [], []>} : vector<16x16xf32>, vector<16x8xf32>, vector<16x8xf32> -> vector<16x8xf32>
    %c1_267 = arith.constant 1 : index
    %c1_268 = arith.constant 1 : index
    %c0_269 = arith.constant 0 : index
    %c0_270 = arith.constant 0 : index
    %333 = vector.load %arg10[%c1_267, %c1_268, %c0_269, %c0_270] : memref<2x4x8x32xf32, #tpu.memory_space<vmem>>, vector<1x1x8x32xf32>
    %334 = vector.shape_cast %333 : vector<1x1x8x32xf32> to vector<8x32xf32>
    %cst_271 = arith.constant dense<0.000000e+00> : vector<16x32xf32>
    %335 = tpu.matmul %332, %334, %cst_271 {dimension_numbers = #tpu.dot_dimension_numbers<[1], [0], [0], [1], [0, 0, 1, 1], [], []>} : vector<16x8xf32>, vector<8x32xf32>, vector<16x32xf32> -> vector<16x32xf32>
    %336 = arith.addf %296, %335 : vector<16x32xf32>
    %c1_272 = arith.constant 1 : index
    %c2_273 = arith.constant 2 : index
    %c0_274 = arith.constant 0 : index
    %c0_275 = arith.constant 0 : index
    %337 = vector.load %arg4[%c1_272, %c2_273, %c0_274, %c0_275] : memref<2x4x32x8xf32, #tpu.memory_space<vmem>>, vector<1x1x32x8xf32>
    %338 = vector.shape_cast %337 : vector<1x1x32x8xf32> to vector<32x8xf32>
    %cst_276 = arith.constant dense<0.000000e+00> : vector<16x8xf32>
    %339 = tpu.matmul %257, %338, %cst_276 {dimension_numbers = #tpu.dot_dimension_numbers<[1], [0], [0], [1], [0, 0, 1, 1], [], []>} : vector<16x32xf32>, vector<32x8xf32>, vector<16x8xf32> -> vector<16x8xf32>
    %c1_277 = arith.constant 1 : index
    %c2_278 = arith.constant 2 : index
    %c0_279 = arith.constant 0 : index
    %c0_280 = arith.constant 0 : index
    %340 = vector.load %arg5[%c1_277, %c2_278, %c0_279, %c0_280] : memref<2x4x1x8xf32, #tpu.memory_space<vmem>>, vector<1x1x1x8xf32>
    %341 = vector.shape_cast %340 : vector<1x1x1x8xf32> to vector<1x8xf32>
    %342 = vector.broadcast %341 : vector<1x8xf32> to vector<16x8xf32>
    %343 = arith.addf %339, %342 : vector<16x8xf32>
    %c1_281 = arith.constant 1 : index
    %c2_282 = arith.constant 2 : index
    %c0_283 = arith.constant 0 : index
    %c0_284 = arith.constant 0 : index
    %344 = vector.load %arg6[%c1_281, %c2_282, %c0_283, %c0_284] : memref<2x4x32x8xf32, #tpu.memory_space<vmem>>, vector<1x1x32x8xf32>
    %345 = vector.shape_cast %344 : vector<1x1x32x8xf32> to vector<32x8xf32>
    %cst_285 = arith.constant dense<0.000000e+00> : vector<16x8xf32>
    %346 = tpu.matmul %257, %345, %cst_285 {dimension_numbers = #tpu.dot_dimension_numbers<[1], [0], [0], [1], [0, 0, 1, 1], [], []>} : vector<16x32xf32>, vector<32x8xf32>, vector<16x8xf32> -> vector<16x8xf32>
    %c1_286 = arith.constant 1 : index
    %c2_287 = arith.constant 2 : index
    %c0_288 = arith.constant 0 : index
    %c0_289 = arith.constant 0 : index
    %347 = vector.load %arg7[%c1_286, %c2_287, %c0_288, %c0_289] : memref<2x4x1x8xf32, #tpu.memory_space<vmem>>, vector<1x1x1x8xf32>
    %348 = vector.shape_cast %347 : vector<1x1x1x8xf32> to vector<1x8xf32>
    %349 = vector.broadcast %348 : vector<1x8xf32> to vector<16x8xf32>
    %350 = arith.addf %346, %349 : vector<16x8xf32>
    %c1_290 = arith.constant 1 : index
    %c2_291 = arith.constant 2 : index
    %c0_292 = arith.constant 0 : index
    %c0_293 = arith.constant 0 : index
    %351 = vector.load %arg8[%c1_290, %c2_291, %c0_292, %c0_293] : memref<2x4x32x8xf32, #tpu.memory_space<vmem>>, vector<1x1x32x8xf32>
    %352 = vector.shape_cast %351 : vector<1x1x32x8xf32> to vector<32x8xf32>
    %cst_294 = arith.constant dense<0.000000e+00> : vector<16x8xf32>
    %353 = tpu.matmul %257, %352, %cst_294 {dimension_numbers = #tpu.dot_dimension_numbers<[1], [0], [0], [1], [0, 0, 1, 1], [], []>} : vector<16x32xf32>, vector<32x8xf32>, vector<16x8xf32> -> vector<16x8xf32>
    %c1_295 = arith.constant 1 : index
    %c2_296 = arith.constant 2 : index
    %c0_297 = arith.constant 0 : index
    %c0_298 = arith.constant 0 : index
    %354 = vector.load %arg9[%c1_295, %c2_296, %c0_297, %c0_298] : memref<2x4x1x8xf32, #tpu.memory_space<vmem>>, vector<1x1x1x8xf32>
    %355 = vector.shape_cast %354 : vector<1x1x1x8xf32> to vector<1x8xf32>
    %356 = vector.broadcast %355 : vector<1x8xf32> to vector<16x8xf32>
    %357 = arith.addf %353, %356 : vector<16x8xf32>
    %cst_299 = arith.constant dense<0.000000e+00> : vector<16x16xf32>
    %358 = tpu.matmul %343, %350, %cst_299 {dimension_numbers = #tpu.dot_dimension_numbers<[1], [1], [0], [0], [0, 0, 1, 0], [], []>} : vector<16x8xf32>, vector<16x8xf32>, vector<16x16xf32> -> vector<16x16xf32>
    %cst_300 = arith.constant 0.353553385 : f32
    %359 = vector.broadcast %cst_300 : f32 to vector<16x16xf32>
    %360 = arith.mulf %358, %359 : vector<16x16xf32>
    %361 = arith.addf %360, %1 : vector<16x16xf32>
    %cst_301 = arith.constant dense<0xFF800000> : vector<16xf32>
    %362 = vector.multi_reduction <maximumf>, %361, %cst_301 [1] : vector<16x16xf32> to vector<16xf32>
    %363 = vector.shape_cast %362 : vector<16xf32> to vector<16x1xf32>
    %364 = vector.broadcast %363 : vector<16x1xf32> to vector<16x16xf32>
    %365 = arith.subf %361, %364 : vector<16x16xf32>
    %366 = math.exp %365 : vector<16x16xf32>
    %cst_302 = arith.constant dense<0.000000e+00> : vector<16xf32>
    %367 = vector.multi_reduction <add>, %366, %cst_302 [1] : vector<16x16xf32> to vector<16xf32>
    %368 = vector.shape_cast %367 : vector<16xf32> to vector<16x1xf32>
    %369 = tpu.reciprocal %368 : vector<16x1xf32> -> vector<16x1xf32>
    %370 = vector.broadcast %369 : vector<16x1xf32> to vector<16x16xf32>
    %371 = arith.mulf %366, %370 : vector<16x16xf32>
    %cst_303 = arith.constant dense<0.000000e+00> : vector<16x8xf32>
    %372 = tpu.matmul %371, %357, %cst_303 {dimension_numbers = #tpu.dot_dimension_numbers<[1], [0], [0], [1], [0, 0, 1, 1], [], []>} : vector<16x16xf32>, vector<16x8xf32>, vector<16x8xf32> -> vector<16x8xf32>
    %c1_304 = arith.constant 1 : index
    %c2_305 = arith.constant 2 : index
    %c0_306 = arith.constant 0 : index
    %c0_307 = arith.constant 0 : index
    %373 = vector.load %arg10[%c1_304, %c2_305, %c0_306, %c0_307] : memref<2x4x8x32xf32, #tpu.memory_space<vmem>>, vector<1x1x8x32xf32>
    %374 = vector.shape_cast %373 : vector<1x1x8x32xf32> to vector<8x32xf32>
    %cst_308 = arith.constant dense<0.000000e+00> : vector<16x32xf32>
    %375 = tpu.matmul %372, %374, %cst_308 {dimension_numbers = #tpu.dot_dimension_numbers<[1], [0], [0], [1], [0, 0, 1, 1], [], []>} : vector<16x8xf32>, vector<8x32xf32>, vector<16x32xf32> -> vector<16x32xf32>
    %376 = arith.addf %336, %375 : vector<16x32xf32>
    %c1_309 = arith.constant 1 : index
    %c3_310 = arith.constant 3 : index
    %c0_311 = arith.constant 0 : index
    %c0_312 = arith.constant 0 : index
    %377 = vector.load %arg4[%c1_309, %c3_310, %c0_311, %c0_312] : memref<2x4x32x8xf32, #tpu.memory_space<vmem>>, vector<1x1x32x8xf32>
    %378 = vector.shape_cast %377 : vector<1x1x32x8xf32> to vector<32x8xf32>
    %cst_313 = arith.constant dense<0.000000e+00> : vector<16x8xf32>
    %379 = tpu.matmul %257, %378, %cst_313 {dimension_numbers = #tpu.dot_dimension_numbers<[1], [0], [0], [1], [0, 0, 1, 1], [], []>} : vector<16x32xf32>, vector<32x8xf32>, vector<16x8xf32> -> vector<16x8xf32>
    %c1_314 = arith.constant 1 : index
    %c3_315 = arith.constant 3 : index
    %c0_316 = arith.constant 0 : index
    %c0_317 = arith.constant 0 : index
    %380 = vector.load %arg5[%c1_314, %c3_315, %c0_316, %c0_317] : memref<2x4x1x8xf32, #tpu.memory_space<vmem>>, vector<1x1x1x8xf32>
    %381 = vector.shape_cast %380 : vector<1x1x1x8xf32> to vector<1x8xf32>
    %382 = vector.broadcast %381 : vector<1x8xf32> to vector<16x8xf32>
    %383 = arith.addf %379, %382 : vector<16x8xf32>
    %c1_318 = arith.constant 1 : index
    %c3_319 = arith.constant 3 : index
    %c0_320 = arith.constant 0 : index
    %c0_321 = arith.constant 0 : index
    %384 = vector.load %arg6[%c1_318, %c3_319, %c0_320, %c0_321] : memref<2x4x32x8xf32, #tpu.memory_space<vmem>>, vector<1x1x32x8xf32>
    %385 = vector.shape_cast %384 : vector<1x1x32x8xf32> to vector<32x8xf32>
    %cst_322 = arith.constant dense<0.000000e+00> : vector<16x8xf32>
    %386 = tpu.matmul %257, %385, %cst_322 {dimension_numbers = #tpu.dot_dimension_numbers<[1], [0], [0], [1], [0, 0, 1, 1], [], []>} : vector<16x32xf32>, vector<32x8xf32>, vector<16x8xf32> -> vector<16x8xf32>
    %c1_323 = arith.constant 1 : index
    %c3_324 = arith.constant 3 : index
    %c0_325 = arith.constant 0 : index
    %c0_326 = arith.constant 0 : index
    %387 = vector.load %arg7[%c1_323, %c3_324, %c0_325, %c0_326] : memref<2x4x1x8xf32, #tpu.memory_space<vmem>>, vector<1x1x1x8xf32>
    %388 = vector.shape_cast %387 : vector<1x1x1x8xf32> to vector<1x8xf32>
    %389 = vector.broadcast %388 : vector<1x8xf32> to vector<16x8xf32>
    %390 = arith.addf %386, %389 : vector<16x8xf32>
    %c1_327 = arith.constant 1 : index
    %c3_328 = arith.constant 3 : index
    %c0_329 = arith.constant 0 : index
    %c0_330 = arith.constant 0 : index
    %391 = vector.load %arg8[%c1_327, %c3_328, %c0_329, %c0_330] : memref<2x4x32x8xf32, #tpu.memory_space<vmem>>, vector<1x1x32x8xf32>
    %392 = vector.shape_cast %391 : vector<1x1x32x8xf32> to vector<32x8xf32>
    %cst_331 = arith.constant dense<0.000000e+00> : vector<16x8xf32>
    %393 = tpu.matmul %257, %392, %cst_331 {dimension_numbers = #tpu.dot_dimension_numbers<[1], [0], [0], [1], [0, 0, 1, 1], [], []>} : vector<16x32xf32>, vector<32x8xf32>, vector<16x8xf32> -> vector<16x8xf32>
    %c1_332 = arith.constant 1 : index
    %c3_333 = arith.constant 3 : index
    %c0_334 = arith.constant 0 : index
    %c0_335 = arith.constant 0 : index
    %394 = vector.load %arg9[%c1_332, %c3_333, %c0_334, %c0_335] : memref<2x4x1x8xf32, #tpu.memory_space<vmem>>, vector<1x1x1x8xf32>
    %395 = vector.shape_cast %394 : vector<1x1x1x8xf32> to vector<1x8xf32>
    %396 = vector.broadcast %395 : vector<1x8xf32> to vector<16x8xf32>
    %397 = arith.addf %393, %396 : vector<16x8xf32>
    %cst_336 = arith.constant dense<0.000000e+00> : vector<16x16xf32>
    %398 = tpu.matmul %383, %390, %cst_336 {dimension_numbers = #tpu.dot_dimension_numbers<[1], [1], [0], [0], [0, 0, 1, 0], [], []>} : vector<16x8xf32>, vector<16x8xf32>, vector<16x16xf32> -> vector<16x16xf32>
    %cst_337 = arith.constant 0.353553385 : f32
    %399 = vector.broadcast %cst_337 : f32 to vector<16x16xf32>
    %400 = arith.mulf %398, %399 : vector<16x16xf32>
    %401 = arith.addf %400, %1 : vector<16x16xf32>
    %cst_338 = arith.constant dense<0xFF800000> : vector<16xf32>
    %402 = vector.multi_reduction <maximumf>, %401, %cst_338 [1] : vector<16x16xf32> to vector<16xf32>
    %403 = vector.shape_cast %402 : vector<16xf32> to vector<16x1xf32>
    %404 = vector.broadcast %403 : vector<16x1xf32> to vector<16x16xf32>
    %405 = arith.subf %401, %404 : vector<16x16xf32>
    %406 = math.exp %405 : vector<16x16xf32>
    %cst_339 = arith.constant dense<0.000000e+00> : vector<16xf32>
    %407 = vector.multi_reduction <add>, %406, %cst_339 [1] : vector<16x16xf32> to vector<16xf32>
    %408 = vector.shape_cast %407 : vector<16xf32> to vector<16x1xf32>
    %409 = tpu.reciprocal %408 : vector<16x1xf32> -> vector<16x1xf32>
    %410 = vector.broadcast %409 : vector<16x1xf32> to vector<16x16xf32>
    %411 = arith.mulf %406, %410 : vector<16x16xf32>
    %cst_340 = arith.constant dense<0.000000e+00> : vector<16x8xf32>
    %412 = tpu.matmul %411, %397, %cst_340 {dimension_numbers = #tpu.dot_dimension_numbers<[1], [0], [0], [1], [0, 0, 1, 1], [], []>} : vector<16x16xf32>, vector<16x8xf32>, vector<16x8xf32> -> vector<16x8xf32>
    %c1_341 = arith.constant 1 : index
    %c3_342 = arith.constant 3 : index
    %c0_343 = arith.constant 0 : index
    %c0_344 = arith.constant 0 : index
    %413 = vector.load %arg10[%c1_341, %c3_342, %c0_343, %c0_344] : memref<2x4x8x32xf32, #tpu.memory_space<vmem>>, vector<1x1x8x32xf32>
    %414 = vector.shape_cast %413 : vector<1x1x8x32xf32> to vector<8x32xf32>
    %cst_345 = arith.constant dense<0.000000e+00> : vector<16x32xf32>
    %415 = tpu.matmul %412, %414, %cst_345 {dimension_numbers = #tpu.dot_dimension_numbers<[1], [0], [0], [1], [0, 0, 1, 1], [], []>} : vector<16x8xf32>, vector<8x32xf32>, vector<16x32xf32> -> vector<16x32xf32>
    %416 = arith.addf %376, %415 : vector<16x32xf32>
    %417 = arith.addf %232, %416 : vector<16x32xf32>
    %c1_346 = arith.constant 1 : index
    %c0_347 = arith.constant 0 : index
    %c0_348 = arith.constant 0 : index
    %418 = vector.load %arg11[%c1_346, %c0_347, %c0_348] : memref<2x1x32xf32, #tpu.memory_space<vmem>>, vector<1x1x32xf32>
    %419 = vector.shape_cast %418 : vector<1x1x32xf32> to vector<1x32xf32>
    %420 = vector.broadcast %419 : vector<1x32xf32> to vector<16x32xf32>
    %421 = arith.addf %417, %420 : vector<16x32xf32>
    %c1_349 = arith.constant 1 : index
    %c0_350 = arith.constant 0 : index
    %c0_351 = arith.constant 0 : index
    %422 = vector.load %arg12[%c1_349, %c0_350, %c0_351] : memref<2x1x32xf32, #tpu.memory_space<vmem>>, vector<1x1x32xf32>
    %423 = vector.shape_cast %422 : vector<1x1x32xf32> to vector<1x32xf32>
    %c1_352 = arith.constant 1 : index
    %c0_353 = arith.constant 0 : index
    %c0_354 = arith.constant 0 : index
    %424 = vector.load %arg13[%c1_352, %c0_353, %c0_354] : memref<2x1x32xf32, #tpu.memory_space<vmem>>, vector<1x1x32xf32>
    %425 = vector.shape_cast %424 : vector<1x1x32xf32> to vector<1x32xf32>
    %cst_355 = arith.constant dense<0.000000e+00> : vector<16xf32>
    %426 = vector.multi_reduction <add>, %421, %cst_355 [1] : vector<16x32xf32> to vector<16xf32>
    %427 = vector.shape_cast %426 : vector<16xf32> to vector<16x1xf32>
    %cst_356 = arith.constant 3.200000e+01 : f32
    %428 = vector.broadcast %cst_356 : f32 to vector<16x1xf32>
    %429 = arith.divf %427, %428 : vector<16x1xf32>
    %430 = vector.broadcast %429 : vector<16x1xf32> to vector<16x32xf32>
    %431 = arith.subf %421, %430 : vector<16x32xf32>
    %432 = arith.mulf %431, %431 : vector<16x32xf32>
    %cst_357 = arith.constant dense<0.000000e+00> : vector<16xf32>
    %433 = vector.multi_reduction <add>, %432, %cst_357 [1] : vector<16x32xf32> to vector<16xf32>
    %434 = vector.shape_cast %433 : vector<16xf32> to vector<16x1xf32>
    %cst_358 = arith.constant 0.0322580636 : f32
    %435 = vector.broadcast %cst_358 : f32 to vector<16x1xf32>
    %436 = arith.mulf %434, %435 : vector<16x1xf32>
    %437 = math.sqrt %436 : vector<16x1xf32>
    %cst_359 = arith.constant 9.99999997E-7 : f32
    %438 = vector.broadcast %cst_359 : f32 to vector<16x1xf32>
    %439 = arith.addf %437, %438 : vector<16x1xf32>
    %440 = tpu.reciprocal %439 : vector<16x1xf32> -> vector<16x1xf32>
    %441 = vector.broadcast %423 : vector<1x32xf32> to vector<16x32xf32>
    %442 = vector.broadcast %440 : vector<16x1xf32> to vector<16x32xf32>
    %443 = arith.mulf %441, %442 : vector<16x32xf32>
    %444 = arith.mulf %431, %443 : vector<16x32xf32>
    %445 = vector.broadcast %425 : vector<1x32xf32> to vector<16x32xf32>
    %446 = arith.addf %444, %445 : vector<16x32xf32>
    %c1_360 = arith.constant 1 : index
    %c0_361 = arith.constant 0 : index
    %c0_362 = arith.constant 0 : index
    %447 = vector.load %arg14[%c1_360, %c0_361, %c0_362] : memref<2x32x64xf32, #tpu.memory_space<vmem>>, vector<1x32x64xf32>
    %448 = vector.shape_cast %447 : vector<1x32x64xf32> to vector<32x64xf32>
    %cst_363 = arith.constant dense<0.000000e+00> : vector<16x64xf32>
    %449 = tpu.matmul %446, %448, %cst_363 {dimension_numbers = #tpu.dot_dimension_numbers<[1], [0], [0], [1], [0, 0, 1, 1], [], []>} : vector<16x32xf32>, vector<32x64xf32>, vector<16x64xf32> -> vector<16x64xf32>
    %c1_364 = arith.constant 1 : index
    %c0_365 = arith.constant 0 : index
    %c0_366 = arith.constant 0 : index
    %450 = vector.load %arg15[%c1_364, %c0_365, %c0_366] : memref<2x1x64xf32, #tpu.memory_space<vmem>>, vector<1x1x64xf32>
    %451 = vector.shape_cast %450 : vector<1x1x64xf32> to vector<1x64xf32>
    %452 = vector.broadcast %451 : vector<1x64xf32> to vector<16x64xf32>
    %453 = arith.addf %449, %452 : vector<16x64xf32>
    %cst_367 = arith.constant 0.000000e+00 : f32
    %454 = vector.broadcast %cst_367 : f32 to vector<16x64xf32>
    %455 = arith.maximumf %453, %454 : vector<16x64xf32>
    %c1_368 = arith.constant 1 : index
    %c0_369 = arith.constant 0 : index
    %c0_370 = arith.constant 0 : index
    %456 = vector.load %arg16[%c1_368, %c0_369, %c0_370] : memref<2x64x32xf32, #tpu.memory_space<vmem>>, vector<1x64x32xf32>
    %457 = vector.shape_cast %456 : vector<1x64x32xf32> to vector<64x32xf32>
    %cst_371 = arith.constant dense<0.000000e+00> : vector<16x32xf32>
    %458 = tpu.matmul %455, %457, %cst_371 {dimension_numbers = #tpu.dot_dimension_numbers<[1], [0], [0], [1], [0, 0, 1, 1], [], []>} : vector<16x64xf32>, vector<64x32xf32>, vector<16x32xf32> -> vector<16x32xf32>
    %459 = arith.addf %421, %458 : vector<16x32xf32>
    %c1_372 = arith.constant 1 : index
    %c0_373 = arith.constant 0 : index
    %c0_374 = arith.constant 0 : index
    %460 = vector.load %arg17[%c1_372, %c0_373, %c0_374] : memref<2x1x32xf32, #tpu.memory_space<vmem>>, vector<1x1x32xf32>
    %461 = vector.shape_cast %460 : vector<1x1x32xf32> to vector<1x32xf32>
    %462 = vector.broadcast %461 : vector<1x32xf32> to vector<16x32xf32>
    %463 = arith.addf %459, %462 : vector<16x32xf32>
    %c0_375 = arith.constant 0 : index
    %c0_376 = arith.constant 0 : index
    %464 = vector.load %arg18[%c0_375, %c0_376] : memref<1x32xf32, #tpu.memory_space<vmem>>, vector<1x32xf32>
    %c0_377 = arith.constant 0 : index
    %c0_378 = arith.constant 0 : index
    %465 = vector.load %arg19[%c0_377, %c0_378] : memref<1x32xf32, #tpu.memory_space<vmem>>, vector<1x32xf32>
    %cst_379 = arith.constant dense<0.000000e+00> : vector<16xf32>
    %466 = vector.multi_reduction <add>, %463, %cst_379 [1] : vector<16x32xf32> to vector<16xf32>
    %467 = vector.shape_cast %466 : vector<16xf32> to vector<16x1xf32>
    %cst_380 = arith.constant 3.200000e+01 : f32
    %468 = vector.broadcast %cst_380 : f32 to vector<16x1xf32>
    %469 = arith.divf %467, %468 : vector<16x1xf32>
    %470 = vector.broadcast %469 : vector<16x1xf32> to vector<16x32xf32>
    %471 = arith.subf %463, %470 : vector<16x32xf32>
    %472 = arith.mulf %471, %471 : vector<16x32xf32>
    %cst_381 = arith.constant dense<0.000000e+00> : vector<16xf32>
    %473 = vector.multi_reduction <add>, %472, %cst_381 [1] : vector<16x32xf32> to vector<16xf32>
    %474 = vector.shape_cast %473 : vector<16xf32> to vector<16x1xf32>
    %cst_382 = arith.constant 0.0322580636 : f32
    %475 = vector.broadcast %cst_382 : f32 to vector<16x1xf32>
    %476 = arith.mulf %474, %475 : vector<16x1xf32>
    %477 = math.sqrt %476 : vector<16x1xf32>
    %cst_383 = arith.constant 9.99999997E-7 : f32
    %478 = vector.broadcast %cst_383 : f32 to vector<16x1xf32>
    %479 = arith.addf %477, %478 : vector<16x1xf32>
    %480 = tpu.reciprocal %479 : vector<16x1xf32> -> vector<16x1xf32>
    %481 = vector.broadcast %464 : vector<1x32xf32> to vector<16x32xf32>
    %482 = vector.broadcast %480 : vector<16x1xf32> to vector<16x32xf32>
    %483 = arith.mulf %481, %482 : vector<16x32xf32>
    %484 = arith.mulf %471, %483 : vector<16x32xf32>
    %485 = vector.broadcast %465 : vector<1x32xf32> to vector<16x32xf32>
    %486 = arith.addf %484, %485 : vector<16x32xf32>
    %c0_384 = arith.constant 0 : index
    %c0_385 = arith.constant 0 : index
    %487 = vector.load %arg20[%c0_384, %c0_385] : memref<16x32xf32, #tpu.memory_space<vmem>>, vector<16x32xf32>
    tpu.vector_store %arg20[%c0_384, %c0_385], %486 {strides = array<i32>} : memref<16x32xf32, #tpu.memory_space<vmem>>, vector<16x32xf32>,
    return
  }
}

</mosaic_0001>

<bundles_post_ra>
// kernel: tpu_custom_call.1
= control target key start
LH: loop header
LB: loop body
LE: loop exit
PB: predicated region body
PF: predicated region fallthrough
CT: control target
= control target key end

     0   :  { %s7295_s0 = inlined_call_operand.vmem [shape: f32[16,32], index: 0, kind: input, shape index: {}]   ;;  %s7296_s1 = inlined_call_operand.vmem [shape: f32[16,16], index: 1, kind: input, shape index: {}]   ;;  %s7297_s2 = inlined_call_operand.vmem [shape: f32[2,1,32], index: 2, kind: input, shape index: {}]   ;;  %s7298_s3 = inlined_call_operand.vmem [shape: f32[2,1,32], index: 3, kind: input, shape index: {}]   ;;  %s7299_s4 = inlined_call_operand.vmem [shape: f32[2,4,32,8], index: 4, kind: input, shape index: {}]   ;;  %s7300_s5 = inlined_call_operand.vmem [shape: f32[2,4,1,8], index: 5, kind: input, shape index: {}]   ;;  %s7301_s6 = inlined_call_operand.vmem [shape: f32[2,4,32,8], index: 6, kind: input, shape index: {}]   ;;  %s7302_s7 = inlined_call_operand.vmem [shape: f32[2,4,1,8], index: 7, kind: input, shape index: {}]   ;;  %s7303_s8 = inlined_call_operand.vmem [shape: f32[2,4,32,8], index: 8, kind: input, shape index: {}]   ;;  %s7304_s9 = inlined_call_operand.vmem [shape: f32[2,4,1,8], index: 9, kind: input, shape index: {}]   ;;  %s7305_s10 = inlined_call_operand.vmem [shape: f32[2,4,8,32], index: 10, kind: input, shape index: {}]   ;;  %s7306_s11 = inlined_call_operand.vmem [shape: f32[2,1,32], index: 11, kind: input, shape index: {}]   ;;  %s7307_s12 = inlined_call_operand.vmem [shape: f32[2,1,32], index: 12, kind: input, shape index: {}]   ;;  %s7308_s13 = inlined_call_operand.vmem [shape: f32[2,1,32], index: 13, kind: input, shape index: {}]   ;;  %s7309_s14 = inlined_call_operand.vmem [shape: f32[2,32,64], index: 14, kind: input, shape index: {}]   ;;  %s7310_s15 = inlined_call_operand.vmem [shape: f32[2,1,64], index: 15, kind: input, shape index: {}]   ;;  %s7311_s16 = inlined_call_operand.vmem [shape: f32[2,64,32], index: 16, kind: input, shape index: {}]   ;;  %s7312_s17 = inlined_call_operand.vmem [shape: f32[2,1,32], index: 17, kind: input, shape index: {}]   ;;  %s7313_s18 = inlined_call_operand.vmem [shape: f32[1,32], index: 18, kind: input, shape index: {}]   ;;  %s7314_s19 = inlined_call_operand.vmem [shape: f32[1,32], index: 19, kind: input, shape index: {}]   ;;  %s7315_s20 = inlined_call_operand.hbm [shape: f32[16,32], index: 20, kind: output, shape index: {}]  }
   0x1   :  { %7321 = sst [smem:[#allocation5_spill]] %s7295_s0 }
   0x2   :  { %7322 = sst [smem:[#allocation6_spill]] %s7296_s1 }
   0x3   :  { %7323 = sst [smem:[#allocation7_spill]] %s7297_s2 }
   0x4   :  { %7324 = sst [smem:[#allocation8_spill]] %s7298_s3 }
   0x5   :  { %7325 = sst [smem:[#allocation9_spill]] %s7299_s4 }
   0x6   :  { %s7326_s23 = sld [smem:[#allocation5_spill]]  ;;  %vm72_vm0 = vcmask 261120  }
   0xc   :  { %v6416_v0 = vld [vmem:[%s7326_s23] sm:$0xff]  ;;  %v6421_v1 = vld [vmem:[%s7326_s23 + $0x8] sm:$0xff] }
   0xd   :  { %25 = vsyncpa [#allocation3], 0  ;;  %v73_v2 = vsel %vm72_vm0, %v6416_v0, 0.0  ;;  %v76_v3 = vsel %vm72_vm0, %v6421_v1, 0.0  ;;  %s7327_s26 = sld [smem:[#allocation9_spill]]  ;;  %v225_v15 = vld [vmem:[%s7301_s6 + $0x18] sm:$0xff] }
   0xe   :  { %74 = vadd.xlane.f32.xlu0 %v73_v2  ;;  %5709 = vmatprep.subr.mxu1 %v225_v15  ;;  %v224_v17 = vld [vmem:[%s7301_s6 + $0x10] sm:$0xff]  ;;  %v223_v19 = vld [vmem:[%s7301_s6 + $0x8] sm:$0xff]  ;;  %v222_v21 = vld [vmem:[%s7301_s6] sm:$0xff]  ;;  %s7328_s30 = sld [smem:[#allocation7_spill]]  ;;  %vm394_vm5 = vcmask 64512   ;;  %vm486_vm6 = vcmask 130048  }
   0xf   :  { %5710 = vmatpush3.msra.mxu1 %v225_v15  ;;  %v311_v22 = vld [vmem:[%s7303_s8 + $0x18] sm:$0xff]  ;;  %s7329_s1 = sld [smem:[#allocation8_spill]]  ;;  %v310_v49 = vld [vmem:[%s7303_s8 + $0x10] sm:$0xff]  ;;  %v309_v50 = vld [vmem:[%s7303_s8 + $0x8] sm:$0xff]  ;;  %vm2470_vm11 = vcmask 523264  }
  0x10   :  { %5711 = vmatprep.subr.mxu1 %v224_v17  ;;  %v308_v51 = vld [vmem:[%s7303_s8] sm:$0xff]  ;;  %s7330_s27 = sld [smem:[#allocation6_spill]] }
  0x11   :  { %5712 = vmatpush3.msra.mxu1 %v224_v17  ;;  %v5148_v52 = vld [vmem:[%s7302_s7] ss:$0 sm:$0xff] }
  0x12   :  { %77 = vadd.xlane.f32.xlu0 %v76_v3  ;;  %5713 = vmatprep.subr.mxu1 %v223_v19  ;;  %v5145_v56 = vld [vmem:[%s7300_s5] ss:$0 sm:$0xff] }
  0x13   :  { %v133_v14 = vld [vmem:[%s7327_s26 + $0x18] sm:$0xff]  ;;  %v132_v16 = vld [vmem:[%s7327_s26 + $0x10] sm:$0xff]  ;;  %v131_v18 = vld [vmem:[%s7327_s26 + $0x8] sm:$0xff]  ;;  %5714 = vmatpush3.msra.mxu1 %v223_v19 }
  0x14   :  { %5698 = vmatprep.subr.mxu0 %v133_v14  ;;  %v130_v20 = vld [vmem:[%s7327_s26] sm:$0xff]  ;;  %5715 = vmatprep.subr.mxu1 %v222_v21  ;;  %v5163_v62 = vld [vmem:[%s7327_s26 + $0x38] sm:$0xff] }
  0x15   :  { %5699 = vmatpush3.msra.mxu0 %v133_v14  ;;  %5716 = vmatpush3.msra.mxu1 %v222_v21  ;;  %v5143_v39 = vld [vmem:[%s7328_s30] ss:$0 sm:$0xff] }
  0x16   :  { %5700 = vmatprep.subr.mxu0 %v132_v16  ;;  %v5144_v42 = vld [vmem:[%s7329_s1] ss:$0 sm:$0xff]  ;;  %v6549_v14 = vld [vmem:[%s7330_s27 + $0x8] sm:$0xff] }
  0x17   :  { %5701 = vmatpush3.msra.mxu0 %v132_v16  ;;  %v5151_v61 = vld [vmem:[%s7304_s9] ss:$0 sm:$0xff] }
  0x18   :  { %5702 = vmatprep.subr.mxu0 %v131_v18  ;;  %v6554_v17 = vld [vmem:[%s7330_s27] sm:$0xff] }
  0x19   :  { %5703 = vmatpush3.msra.mxu0 %v131_v18 }
  0x1a   :  { %5704 = vmatprep.subr.mxu0 %v130_v20 }
  0x1b   :  { %5705 = vmatpush3.msra.mxu0 %v130_v20 }
  0x1c   :  { %5720 = vmatprep.subr.mxu0 %v311_v22 }
  0x97   :  { %v75_v4 = vpop.xlane.xlu0 %74 }
  0x98   :  { %v80_v5 = vmul.f32 0.03125, %v75_v4 }
  0x9a   :  { %v6428_v6 = vsub.f32 %v6416_v0, %v80_v5 }
  0x9b   :  { %v78_v7 = vpop.xlane.xlu0 %77 }
  0x9c   :  { %v81_v8 = vmul.f32 0.03125, %v78_v7  ;;  %v84_v9 = vmul.f32 %v6428_v6, %v6428_v6  ;;  %v5161_v7 = vld [vmem:[%s7327_s26 + $0x28] sm:$0xff] }
  0x9e   :  { %v6433_v10 = vsub.f32 %v6421_v1, %v81_v8  ;;  %v86_v11 = vsel %vm72_vm0, %v84_v9, 0.0  ;;  %v5160_v8 = vld [vmem:[%s7327_s26 + $0x20] sm:$0xff]  ;;  %v5179_v9 = vld [vmem:[%s7303_s8 + $0x38] sm:$0xff] }
  0x9f   :  { %87 = vadd.xlane.f32.xlu1 %v86_v11  ;;  %v5177_v11 = vld [vmem:[%s7303_s8 + $0x28] sm:$0xff] }
  0xa0   :  { %v85_v12 = vmul.f32 %v6433_v10, %v6433_v10 }
  0xa2   :  { %v89_v13 = vsel %vm72_vm0, %v85_v12, 0.0  ;;  %v5176_v12 = vld [vmem:[%s7303_s8 + $0x20] sm:$0xff] }
  0xa3   :  { %90 = vadd.xlane.f32.xlu1 %v89_v13 }
 0x128   :  { %v88_v23 = vpop.xlane.xlu1 %87 }
 0x129   :  { %v92_v24 = vmul.f32 0.032258064, %v88_v23 }
 0x12b   :  { %6177 = vrsqrt.f32 %v92_v24  ;;  %vm96_vm1 = vcmp.eq.f32.partialorder %v92_v24, inf  ;;  %v99_v29 = vand.u32 2147483648, %v92_v24  ;;  %vm98_vm2 = vcmp.eq.f32.partialorder %v92_v24, 0.0 }
 0x12c   :  { %v91_v25 = vpop.xlane.xlu1 %90 }
 0x12d   :  { %v93_v26 = vmul.f32 0.032258064, %v91_v25 }
 0x12f   :  { %6179 = vrsqrt.f32 %v93_v26  ;;  %vm103_vm3 = vcmp.eq.f32.partialorder %v93_v26, inf  ;;  %v106_v35 = vand.u32 2147483648, %v93_v26  ;;  %vm105_vm4 = vcmp.eq.f32.partialorder %v93_v26, 0.0 }
 0x138   :  { %v6178_v27 = vpop.eup %6177 }
 0x139   :  { %v95_v28 = vmul.f32 %v6178_v27, %v92_v24 }
 0x13b   :  { %v97_v30 = vsel %vm96_vm1, %v92_v24, %v95_v28 }
 0x13c   :  { %v6180_v31 = vpop.eup %6179  ;;  %v100_v32 = vsel %vm98_vm2, %v99_v29, %v97_v30 }
 0x13d   :  { %v108_v33 = vadd.f32 1e-06, %v100_v32  ;;  %v102_v34 = vmul.f32 %v6180_v31, %v93_v26 }
 0x13f   :  { %6181 = vrcp.f32 %v108_v33  ;;  %v104_v36 = vsel %vm103_vm3, %v93_v26, %v102_v34 }
 0x140   :  { %v107_v37 = vsel %vm105_vm4, %v106_v35, %v104_v36  ;;  %v5171_v36 = vld [vmem:[%s7301_s6 + $0x38] sm:$0xff] }
 0x141   :  { %v109_v38 = vadd.f32 1e-06, %v107_v37 }
 0x143   :  { %6183 = vrcp.f32 %v109_v38 }
 0x14c   :  { %v6182_v40 = vpop.eup %6181 }
 0x14d   :  { %v118_v41 = vmul.f32 %v6182_v40, %v5143_v39 }
 0x14f   :  { %v120_v43 = vmul.f32 %v118_v41, %v6428_v6  ;;  %v5162_v6 = vld [vmem:[%s7327_s26 + $0x30] sm:$0xff] }
 0x150   :  { %v6184_v44 = vpop.eup %6183 }
 0x151   :  { %v6473_v45 = vadd.f32 %v5144_v42, %v120_v43  ;;  %v119_v46 = vmul.f32 %v6184_v44, %v5143_v39  ;;  %v5170_v43 = vld [vmem:[%s7301_s6 + $0x30] sm:$0xff]  ;;  %v5169_v44 = vld [vmem:[%s7301_s6 + $0x28] sm:$0xff] }
 0x153   :  { %v121_v47 = vmul.f32 %v119_v46, %v6433_v10  ;;  %5706 = vmatprep.mubr.msk.f32.mxu0 %vm72_vm0, %v6473_v45  ;;  %5717 = vmatprep.mubr.msk.f32.mxu1 %vm72_vm0, %v6473_v45  ;;  %v5178_v10 = vld [vmem:[%s7303_s8 + $0x30] sm:$0xff]  ;;  %v5168_v46 = vld [vmem:[%s7301_s6 + $0x20] sm:$0xff] }
 0x155   :  { %v6480_v48 = vadd.f32 %v5144_v42, %v121_v47 }
 0x157   :  { %5707 = vmatmul.mubr.msk.f32.vlgmr.msra.gmra.mxu0 %vm72_vm0, %v6480_v48  ;;  %5718 = vmatmul.mubr.msk.f32.vlgmr.msra.gmra.mxu1 %vm72_vm0, %v6480_v48 }
 0x158   :  { %5721 = vmatpush3.msra.mxu0 %v311_v22  ;;  %5728 = vmatprep.mubr.msk.f32.mxu0 %vm72_vm0, %v6473_v45  ;;  %v5165_v22 = vld [vmem:[%s7300_s5 + $0x1] ss:$0 sm:$0xff] }
 0x159   :  { %5722 = vmatprep.subr.mxu0 %v310_v49 }
 0x15a   :  { %5723 = vmatpush3.msra.mxu0 %v310_v49 }
 0x15b   :  { %5724 = vmatprep.subr.mxu0 %v309_v50 }
 0x15c   :  { %5725 = vmatpush3.msra.mxu0 %v309_v50  ;;  %v590_v50 = vld [vmem:[%s7305_s10] sm:$0xff] }
 0x15d   :  { %5726 = vmatprep.subr.mxu0 %v308_v51 }
 0x15e   :  { %5727 = vmatpush3.msra.mxu0 %v308_v51  ;;  %v5206_v51 = vld [vmem:[%s7301_s6 + $0x58] sm:$0xff] }
 0x15f   :  { %5729 = vmatmul.mubr.msk.f32.vlgmr.msra.gmra.mxu0 %vm72_vm0, %v6480_v48 }
 0x217   :  { %v5708_v53 = vpop.f32.mrf.mxu0  ;;  %v5719_v54 = vpop.f32.mrf.mxu1 }
 0x218   :  { %v305_v55 = vadd.f32 %v5719_v54, %v5148_v52  ;;  %v219_v2 = vadd.f32 %v5708_v53, %v5145_v56  ;;  %v5205_v54 = vld [vmem:[%s7301_s6 + $0x50] sm:$0xff] }
 0x219   :  { %v213_v57 = vpop.f32.mrf.mxu0  ;;  %v299_v58 = vpop.f32.mrf.mxu1 }
 0x21a   :  { %v214_v59 = vadd.f32 %v5145_v56, %v213_v57  ;;  %v300_v60 = vadd.f32 %v5148_v52, %v299_v58  ;;  %5731 = vmatprep.subr.msk.mxu1 %vm394_vm5, %v305_v55  ;;  %v5173_v56 = vld [vmem:[%s7302_s7 + $0x1] ss:$0 sm:$0xff] }
 0x21b   :  { %5732 = vmatpush3.xpose.msk.msra.mxu1 %vm394_vm5, %v305_v55  ;;  %v5204_v55 = vld [vmem:[%s7301_s6 + $0x48] sm:$0xff]  ;;  %v5203_v57 = vld [vmem:[%s7301_s6 + $0x40] sm:$0xff] }
 0x21c   :  { %5733 = vmatprep.subr.msk.mxu1 %vm394_vm5, %v300_v60  ;;  %5735 = vmatprep.mubr.msk.f32.mxu1 %vm394_vm5, %v214_v59 }
 0x21f   :  { %v5730_v63 = vpop.f32.mrf.mxu0  ;;  %5734 = vmatpush3.xpose.msk.msra.mxu1 %vm394_vm5, %v300_v60 }
 0x220   :  { %v391_v3 = vadd.f32 %v5730_v63, %v5151_v61  ;;  %5745 = vmatprep.subr.mxu1 %v5163_v62  ;;  %v5181_v63 = vld [vmem:[%s7304_s9 + $0x1] ss:$0 sm:$0xff] }
 0x221   :  { %v385_v4 = vpop.f32.mrf.mxu0 }
 0x222   :  { %v386_v5 = vadd.f32 %v5151_v61, %v385_v4  ;;  %5738 = vmatprep.subr.mxu0 %v391_v3  ;;  %5736 = vmatmul.mubr.msk.f32.vlgmr.msra.gmra.mxu1 %vm394_vm5, %v219_v2 }
 0x223   :  { %5739 = vmatpush3.msra.mxu0 %v391_v3  ;;  %5746 = vmatpush3.msra.mxu1 %v5163_v62 }
 0x224   :  { %5740 = vmatprep.subr.mxu0 %v386_v5  ;;  %5753 = vmatprep.mubr.msk.f32.mxu1 %vm72_vm0, %v6473_v45 }
 0x225   :  { %5741 = vmatpush3.msra.mxu0 %v386_v5  ;;  %5747 = vmatprep.subr.mxu1 %v5162_v6 }
 0x226   :  { %5748 = vmatpush3.msra.mxu1 %v5162_v6  ;;  %5756 = vmatprep.subr.mxu0 %v5171_v36 }
 0x227   :  { %5749 = vmatprep.subr.mxu1 %v5161_v7 }
 0x228   :  { %5750 = vmatpush3.msra.mxu1 %v5161_v7  ;;  %v5208_v7 = vld [vmem:[%s7302_s7 + $0x2] ss:$0 sm:$0xff] }
 0x229   :  { %5751 = vmatprep.subr.mxu1 %v5160_v8 }
 0x22a   :  { %5752 = vmatpush3.msra.mxu1 %v5160_v8 }
 0x22b   :  { %5754 = vmatmul.mubr.msk.f32.vlgmr.msra.gmra.mxu1 %vm72_vm0, %v6480_v48  ;;  %5767 = vmatprep.subr.mxu1 %v5179_v9 }
 0x22c   :  { %5768 = vmatpush3.msra.mxu1 %v5179_v9  ;;  %5775 = vmatprep.mubr.msk.f32.mxu1 %vm72_vm0, %v6473_v45 }
 0x22d   :  { %5769 = vmatprep.subr.mxu1 %v5178_v10 }
 0x22e   :  { %5770 = vmatpush3.msra.mxu1 %v5178_v10 }
 0x22f   :  { %5771 = vmatprep.subr.mxu1 %v5177_v11 }
 0x230   :  { %5772 = vmatpush3.msra.mxu1 %v5177_v11 }
 0x231   :  { %5773 = vmatprep.subr.mxu1 %v5176_v12 }
 0x232   :  { %5774 = vmatpush3.msra.mxu1 %v5176_v12 }
 0x233   :  { %5776 = vmatmul.mubr.msk.f32.vlgmr.msra.gmra.mxu1 %vm72_vm0, %v6480_v48  ;;  %5797 = vmatprep.subr.mxu1 %v590_v50 }
 0x234   :  { %5798 = vmatpush3.msra.mxu1 %v590_v50  ;;  %v5211_v50 = vld [vmem:[%s7303_s8 + $0x40] sm:$0xff] }
 0x235   :  { %5813 = vmatprep.subr.mxu1 %v5206_v51 }
 0x2e2   :  { %v5737_v13 = vpop.f32.mrf.mxu1 }
 0x2e3   :  { %v483_v15 = vmul.f32 0.35355338, %v5737_v13 }
 0x2e4   :  { %v473_v16 = vpop.f32.mrf.mxu1 }
 0x2e5   :  { %v482_v18 = vmul.f32 0.35355338, %v473_v16  ;;  %v485_v19 = vadd.f32 %v483_v15, %v6549_v14 }
 0x2e7   :  { %v490_v20 = vsel %vm486_vm6, %v485_v19, -inf  ;;  %v484_v21 = vadd.f32 %v482_v18, %v6554_v17 }
 0x2e8   :  { %491 = vmax.xlane.f32.xlu1 %v490_v20 }
 0x2e9   :  { %v487_v23 = vsel %vm486_vm6, %v484_v21, -inf }
 0x2ea   :  { %488 = vmax.xlane.f32.xlu0 %v487_v23 }
 0x2eb   :  { %v5755_v24 = vpop.f32.mrf.mxu1 }
 0x2ec   :  { %v6563_v25 = vadd.f32 %v5755_v24, %v5165_v22 }
 0x2ed   :  { %v670_v47 = vpop.f32.mrf.mxu1 }
 0x2ee   :  { %v671_v49 = vadd.f32 %v5165_v22, %v670_v47  ;;  %v5213_v47 = vld [vmem:[%s7303_s8 + $0x50] sm:$0xff] }
 0x2f3   :  { %v5777_v62 = vpop.f32.mrf.mxu1 }
 0x2f4   :  { %v852_v2 = vadd.f32 %v5777_v62, %v5181_v63 }
 0x2f5   :  { %v846_v3 = vpop.f32.mrf.mxu1 }
 0x2f6   :  { %v847_v4 = vadd.f32 %v5181_v63, %v846_v3 }
 0x371   :  { %v492_v26 = vpop.xlane.xlu1 %491 }
 0x372   :  { %v494_v27 = vsub.f32 %v485_v19, %v492_v26 }
 0x373   :  { %v489_v28 = vpop.xlane.xlu0 %488 }
 0x374   :  { %v497_v29 = vmul.f32 1.442695, %v494_v27  ;;  %v493_v30 = vsub.f32 %v484_v21, %v489_v28 }
 0x376   :  { %6185 = vpow2.f32 %v497_v29  ;;  %v495_v31 = vmul.f32 1.442695, %v493_v30 }
 0x378   :  { %6187 = vpow2.f32 %v495_v31 }
 0x383   :  { %v6186_v32 = vpop.eup %6185 }
 0x384   :  { %v502_v33 = vsel %vm486_vm6, %v6186_v32, 0.0 }
 0x385   :  { %v6188_v34 = vpop.eup %6187  ;;  %503 = vadd.xlane.f32.xlu1 %v502_v33 }
 0x386   :  { %v499_v35 = vsel %vm486_vm6, %v6188_v34, 0.0 }
 0x387   :  { %500 = vadd.xlane.f32.xlu0 %v499_v35 }
 0x40e   :  { %v504_v37 = vpop.xlane.xlu1 %503 }
 0x40f   :  { %6189 = vrcp.f32 %v504_v37 }
 0x410   :  { %v501_v38 = vpop.xlane.xlu0 %500 }
 0x411   :  { %6191 = vrcp.f32 %v501_v38 }
 0x41c   :  { %v6190_v39 = vpop.eup %6189 }
 0x41d   :  { %v508_v42 = vmul.f32 %v6190_v39, %v6186_v32  ;;  %v5190_v32 = vld [vmem:[%s7305_s10 + $0x8] sm:$0xff]  ;;  %v5198_v39 = vld [vmem:[%s7327_s26 + $0x58] sm:$0xff] }
 0x41e   :  { %v6192_v40 = vpop.eup %6191 }
 0x41f   :  { %v507_v41 = vmul.f32 %v6192_v40, %v6188_v34 }
 0x421   :  { %5742 = vmatprep.mubr.msk.f32.mxu0 %vm486_vm6, %v507_v41 }
 0x422   :  { %5743 = vmatmul.mubr.msk.f32.vlgmr.msra.gmra.mxu0 %vm486_vm6, %v508_v42  ;;  %v5197_v42 = vld [vmem:[%s7327_s26 + $0x50] sm:$0xff] }
 0x423   :  { %5757 = vmatpush3.msra.mxu0 %v5171_v36  ;;  %5764 = vmatprep.mubr.msk.f32.mxu0 %vm72_vm0, %v6473_v45 }
 0x424   :  { %5758 = vmatprep.subr.mxu0 %v5170_v43 }
 0x425   :  { %5759 = vmatpush3.msra.mxu0 %v5170_v43  ;;  %v5196_v43 = vld [vmem:[%s7327_s26 + $0x48] sm:$0xff] }
 0x426   :  { %5760 = vmatprep.subr.mxu0 %v5169_v44 }
 0x427   :  { %5761 = vmatpush3.msra.mxu0 %v5169_v44  ;;  %v5195_v44 = vld [vmem:[%s7327_s26 + $0x40] sm:$0xff] }
 0x428   :  { %5762 = vmatprep.subr.mxu0 %v5168_v46 }
 0x429   :  { %5763 = vmatpush3.msra.mxu0 %v5168_v46  ;;  %v5214_v46 = vld [vmem:[%s7303_s8 + $0x58] sm:$0xff] }
 0x42a   :  { %5765 = vmatmul.mubr.msk.f32.vlgmr.msra.gmra.mxu0 %vm72_vm0, %v6480_v48 }
 0x42b   :  { %5782 = vmatprep.mubr.msk.f32.mxu0 %vm394_vm5, %v671_v49  ;;  %v5212_v49 = vld [vmem:[%s7303_s8 + $0x48] sm:$0xff] }
 0x4e2   :  { %v5744_v52 = vpop.f32.mrf.mxu0 }
 0x4e4   :  { %v581_v53 = vpop.f32.mrf.mxu0 }
 0x4e5   :  { %5799 = vmatprep.mubr.msk.f32.mxu1 %vm394_vm5, %v581_v53 }
 0x4e6   :  { %5800 = vmatmul.mubr.msk.f32.vlgmr.msra.gmra.mxu1 %vm394_vm5, %v5744_v52 }
 0x4e7   :  { %5814 = vmatpush3.msra.mxu1 %v5206_v51  ;;  %5821 = vmatprep.mubr.msk.f32.mxu1 %vm72_vm0, %v6473_v45 }
 0x4e8   :  { %5815 = vmatprep.subr.mxu1 %v5205_v54 }
 0x4e9   :  { %5816 = vmatpush3.msra.mxu1 %v5205_v54  ;;  %v5200_v54 = vld [vmem:[%s7300_s5 + $0x2] ss:$0 sm:$0xff] }
 0x4ea   :  { %v5766_v58 = vpop.f32.mrf.mxu0  ;;  %5817 = vmatprep.subr.mxu1 %v5204_v55 }
 0x4eb   :  { %v764_v59 = vadd.f32 %v5766_v58, %v5173_v56  ;;  %5818 = vmatpush3.msra.mxu1 %v5204_v55  ;;  %v5216_v58 = vld [vmem:[%s7304_s9 + $0x2] ss:$0 sm:$0xff] }
 0x4ec   :  { %v758_v60 = vpop.f32.mrf.mxu0  ;;  %5819 = vmatprep.subr.mxu1 %v5203_v57 }
 0x4ed   :  { %v759_v61 = vadd.f32 %v5173_v56, %v758_v60  ;;  %5778 = vmatprep.subr.msk.mxu0 %vm394_vm5, %v764_v59  ;;  %5820 = vmatpush3.msra.mxu1 %v5203_v57 }
 0x4ee   :  { %5779 = vmatpush3.xpose.msk.msra.mxu0 %vm394_vm5, %v764_v59  ;;  %5822 = vmatmul.mubr.msk.f32.vlgmr.msra.gmra.mxu1 %vm72_vm0, %v6480_v48 }
 0x4ef   :  { %5780 = vmatprep.subr.msk.mxu0 %vm394_vm5, %v759_v61 }
 0x4f2   :  { %5781 = vmatpush3.xpose.msk.msra.mxu0 %vm394_vm5, %v759_v61 }
 0x4f3   :  { %5785 = vmatprep.subr.mxu0 %v852_v2 }
 0x4f5   :  { %5783 = vmatmul.mubr.msk.f32.vlgmr.msra.gmra.mxu0 %vm394_vm5, %v6563_v25 }
 0x4f6   :  { %5786 = vmatpush3.msra.mxu0 %v852_v2 }
 0x4f7   :  { %5787 = vmatprep.subr.mxu0 %v847_v4 }
 0x4f8   :  { %5788 = vmatpush3.msra.mxu0 %v847_v4 }
 0x4f9   :  { %5792 = vmatprep.subr.mxu0 %v5190_v32 }
 0x5a6   :  { %v6619_v5 = vpop.f32.mrf.mxu1 }
 0x5a8   :  { %v6621_v6 = vpop.f32.mrf.mxu1 }
 0x5ae   :  { %v5823_v8 = vpop.f32.mrf.mxu1 }
 0x5af   :  { %v1386_v9 = vadd.f32 %v5823_v8, %v5208_v7 }
 0x5b0   :  { %v1380_v10 = vpop.f32.mrf.mxu1 }
 0x5b1   :  { %v1381_v11 = vadd.f32 %v5208_v7, %v1380_v10  ;;  %5835 = vmatprep.subr.msk.mxu1 %vm394_vm5, %v1386_v9 }
 0x5b2   :  { %5836 = vmatpush3.xpose.msk.msra.mxu1 %vm394_vm5, %v1386_v9 }
 0x5b3   :  { %5837 = vmatprep.subr.msk.mxu1 %vm394_vm5, %v1381_v11 }
 0x5b5   :  { %v5784_v12 = vpop.f32.mrf.mxu0 }
 0x5b6   :  { %v943_v13 = vmul.f32 0.35355338, %v5784_v12  ;;  %5838 = vmatpush3.xpose.msk.msra.mxu1 %vm394_vm5, %v1381_v11 }
 0x5b7   :  { %v933_v15 = vpop.f32.mrf.mxu0 }
 0x5b8   :  { %v942_v16 = vmul.f32 0.35355338, %v933_v15  ;;  %v945_v18 = vadd.f32 %v943_v13, %v6549_v14 }
 0x5ba   :  { %v949_v19 = vsel %vm486_vm6, %v945_v18, -inf  ;;  %v944_v20 = vadd.f32 %v942_v16, %v6554_v17 }
 0x5bb   :  { %950 = vmax.xlane.f32.xlu1 %v949_v19 }
 0x5bc   :  { %v946_v21 = vsel %vm486_vm6, %v944_v20, -inf }
 0x5bd   :  { %947 = vmax.xlane.f32.xlu0 %v946_v21 }
 0x644   :  { %v951_v22 = vpop.xlane.xlu1 %950 }
 0x645   :  { %v953_v23 = vsub.f32 %v945_v18, %v951_v22 }
 0x646   :  { %v948_v24 = vpop.xlane.xlu0 %947 }
 0x647   :  { %v956_v25 = vmul.f32 1.442695, %v953_v23  ;;  %v952_v26 = vsub.f32 %v944_v20, %v948_v24  ;;  %v5231_v23 = vld [vmem:[%s7327_s26 + $0x78] sm:$0xff]  ;;  %v5225_v24 = vld [vmem:[%s7305_s10 + $0x10] sm:$0xff] }
 0x648   :  { %5849 = vmatprep.subr.mxu1 %v5225_v24 }
 0x649   :  { %6193 = vpow2.f32 %v956_v25  ;;  %v954_v27 = vmul.f32 1.442695, %v952_v26 }
 0x64b   :  { %6195 = vpow2.f32 %v954_v27 }
 0x656   :  { %v6194_v28 = vpop.eup %6193 }
 0x657   :  { %v961_v29 = vsel %vm486_vm6, %v6194_v28, 0.0 }
 0x658   :  { %v6196_v30 = vpop.eup %6195  ;;  %962 = vadd.xlane.f32.xlu1 %v961_v29 }
 0x659   :  { %v958_v31 = vsel %vm486_vm6, %v6196_v30, 0.0 }
 0x65a   :  { %959 = vadd.xlane.f32.xlu0 %v958_v31  ;;  %v5230_v31 = vld [vmem:[%s7327_s26 + $0x70] sm:$0xff] }
 0x6e1   :  { %v963_v33 = vpop.xlane.xlu1 %962 }
 0x6e2   :  { %6197 = vrcp.f32 %v963_v33  ;;  %v5228_v33 = vld [vmem:[%s7327_s26 + $0x60] sm:$0xff] }
 0x6e3   :  { %v960_v34 = vpop.xlane.xlu0 %959 }
 0x6e4   :  { %6199 = vrcp.f32 %v960_v34  ;;  %v5247_v34 = vld [vmem:[%s7303_s8 + $0x78] sm:$0xff] }
 0x6ef   :  { %v6198_v35 = vpop.eup %6197 }
 0x6f0   :  { %v967_v38 = vmul.f32 %v6198_v35, %v6194_v28  ;;  %v5246_v35 = vld [vmem:[%s7303_s8 + $0x70] sm:$0xff] }
 0x6f1   :  { %v6200_v36 = vpop.eup %6199 }
 0x6f2   :  { %v966_v37 = vmul.f32 %v6200_v36, %v6196_v30  ;;  %v5245_v36 = vld [vmem:[%s7303_s8 + $0x68] sm:$0xff] }
 0x6f4   :  { %5789 = vmatprep.mubr.msk.f32.mxu0 %vm486_vm6, %v966_v37  ;;  %v5244_v37 = vld [vmem:[%s7303_s8 + $0x60] sm:$0xff] }
 0x6f5   :  { %5790 = vmatmul.mubr.msk.f32.vlgmr.msra.gmra.mxu0 %vm486_vm6, %v967_v38  ;;  %v5239_v38 = vld [vmem:[%s7301_s6 + $0x78] sm:$0xff] }
 0x6f6   :  { %5793 = vmatpush3.msra.mxu0 %v5190_v32  ;;  %v5229_v32 = vld [vmem:[%s7327_s26 + $0x68] sm:$0xff] }
 0x6f7   :  { %5802 = vmatprep.subr.mxu0 %v5198_v39 }
 0x7b5   :  { %v5791_v40 = vpop.f32.mrf.mxu0 }
 0x7b7   :  { %v1040_v41 = vpop.f32.mrf.mxu0 }
 0x7b8   :  { %5794 = vmatprep.mubr.msk.f32.mxu0 %vm394_vm5, %v1040_v41  ;;  %v5238_v41 = vld [vmem:[%s7301_s6 + $0x70] sm:$0xff] }
 0x7b9   :  { %5795 = vmatmul.mubr.msk.f32.vlgmr.msra.gmra.mxu0 %vm394_vm5, %v5791_v40 }
 0x7ba   :  { %5803 = vmatpush3.msra.mxu0 %v5198_v39  ;;  %5810 = vmatprep.mubr.msk.f32.mxu0 %vm72_vm0, %v6473_v45 }
 0x7bb   :  { %5804 = vmatprep.subr.mxu0 %v5197_v42 }
 0x7bc   :  { %5805 = vmatpush3.msra.mxu0 %v5197_v42  ;;  %v5237_v42 = vld [vmem:[%s7301_s6 + $0x68] sm:$0xff] }
 0x7bd   :  { %5806 = vmatprep.subr.mxu0 %v5196_v43 }
 0x7be   :  { %5807 = vmatpush3.msra.mxu0 %v5196_v43  ;;  %v5233_v43 = vld [vmem:[%s7300_s5 + $0x3] ss:$0 sm:$0xff] }
 0x7bf   :  { %5808 = vmatprep.subr.mxu0 %v5195_v44 }
 0x7c0   :  { %5809 = vmatpush3.msra.mxu0 %v5195_v44  ;;  %v5236_v44 = vld [vmem:[%s7301_s6 + $0x60] sm:$0xff] }
 0x7c1   :  { %5811 = vmatmul.mubr.msk.f32.vlgmr.msra.gmra.mxu0 %vm72_vm0, %v6480_v48  ;;  %5824 = vmatprep.subr.mxu0 %v5214_v46 }
 0x7c2   :  { %5825 = vmatpush3.msra.mxu0 %v5214_v46  ;;  %5832 = vmatprep.mubr.msk.f32.mxu0 %vm72_vm0, %v6473_v45 }
 0x7c3   :  { %5826 = vmatprep.subr.mxu0 %v5213_v47 }
 0x7c4   :  { %5827 = vmatpush3.msra.mxu0 %v5213_v47 }
 0x7c5   :  { %5828 = vmatprep.subr.mxu0 %v5212_v49 }
 0x7c6   :  { %5829 = vmatpush3.msra.mxu0 %v5212_v49 }
 0x7c7   :  { %5830 = vmatprep.subr.mxu0 %v5211_v50 }
 0x7c8   :  { %5831 = vmatpush3.msra.mxu0 %v5211_v50  ;;  %v5249_v50 = vld [vmem:[%s7304_s9 + $0x3] ss:$0 sm:$0xff] }
 0x7c9   :  { %5833 = vmatmul.mubr.msk.f32.vlgmr.msra.gmra.mxu0 %vm72_vm0, %v6480_v48 }
 0x879   :  { %v6675_v51 = vpop.f32.mrf.mxu0 }
 0x87b   :  { %v6677_v52 = vpop.f32.mrf.mxu0 }
 0x881   :  { %v5812_v53 = vpop.f32.mrf.mxu0 }
 0x882   :  { %v1298_v57 = vadd.f32 %v5812_v53, %v5200_v54 }
 0x883   :  { %v1292_v55 = vpop.f32.mrf.mxu0 }
 0x884   :  { %v1293_v56 = vadd.f32 %v5200_v54, %v1292_v55 }
 0x886   :  { %5839 = vmatprep.mubr.msk.f32.mxu1 %vm394_vm5, %v1293_v56 }
 0x887   :  { %5840 = vmatmul.mubr.msk.f32.vlgmr.msra.gmra.mxu1 %vm394_vm5, %v1298_v57  ;;  %v1210_v57 = vadd.f32 %v6619_v5, %v6675_v51 }
 0x888   :  { %5850 = vmatpush3.msra.mxu1 %v5225_v24 }
 0x889   :  { %v5834_v59 = vpop.f32.mrf.mxu0  ;;  %5865 = vmatprep.subr.mxu1 %v5239_v38 }
 0x88a   :  { %v1474_v60 = vadd.f32 %v5834_v59, %v5216_v58 }
 0x88b   :  { %v1468_v61 = vpop.f32.mrf.mxu0 }
 0x88c   :  { %v1469_v62 = vadd.f32 %v5216_v58, %v1468_v61  ;;  %5842 = vmatprep.subr.mxu0 %v1474_v60 }
 0x88d   :  { %5843 = vmatpush3.msra.mxu0 %v1474_v60 }
 0x88e   :  { %5844 = vmatprep.subr.mxu0 %v1469_v62 }
 0x88f   :  { %5845 = vmatpush3.msra.mxu0 %v1469_v62  ;;  %v5241_v62 = vld [vmem:[%s7302_s7 + $0x3] ss:$0 sm:$0xff] }
 0x890   :  { %5854 = vmatprep.subr.mxu0 %v5231_v23 }
 0x947   :  { %v5841_v63 = vpop.f32.mrf.mxu1 }
 0x948   :  { %v1565_v2 = vmul.f32 0.35355338, %v5841_v63 }
 0x949   :  { %v1555_v3 = vpop.f32.mrf.mxu1 }
 0x94a   :  { %v1564_v4 = vmul.f32 0.35355338, %v1555_v3  ;;  %v1567_v7 = vadd.f32 %v1565_v2, %v6549_v14 }
 0x94c   :  { %v1571_v8 = vsel %vm486_vm6, %v1567_v7, -inf  ;;  %v1566_v9 = vadd.f32 %v1564_v4, %v6554_v17 }
 0x94d   :  { %1572 = vmax.xlane.f32.xlu1 %v1571_v8 }
 0x94e   :  { %v1568_v10 = vsel %vm486_vm6, %v1566_v9, -inf }
 0x94f   :  { %1569 = vmax.xlane.f32.xlu0 %v1568_v10 }
 0x9d6   :  { %v1573_v11 = vpop.xlane.xlu1 %1572 }
 0x9d7   :  { %v1575_v12 = vsub.f32 %v1567_v7, %v1573_v11 }
 0x9d8   :  { %v1570_v13 = vpop.xlane.xlu0 %1569 }
 0x9d9   :  { %v1578_v15 = vmul.f32 1.442695, %v1575_v12  ;;  %v1574_v16 = vsub.f32 %v1566_v9, %v1570_v13 }
 0x9db   :  { %6201 = vpow2.f32 %v1578_v15  ;;  %v1576_v18 = vmul.f32 1.442695, %v1574_v16 }
 0x9dd   :  { %6203 = vpow2.f32 %v1576_v18 }
 0x9e8   :  { %v6202_v19 = vpop.eup %6201 }
 0x9e9   :  { %v1583_v20 = vsel %vm486_vm6, %v6202_v19, 0.0 }
 0x9ea   :  { %v6204_v21 = vpop.eup %6203  ;;  %1584 = vadd.xlane.f32.xlu1 %v1583_v20 }
 0x9eb   :  { %v1580_v22 = vsel %vm486_vm6, %v6204_v21, 0.0 }
 0x9ec   :  { %1581 = vadd.xlane.f32.xlu0 %v1580_v22 }
 0xa73   :  { %v1585_v25 = vpop.xlane.xlu1 %1584 }
 0xa74   :  { %6205 = vrcp.f32 %v1585_v25 }
 0xa75   :  { %v1582_v26 = vpop.xlane.xlu0 %1581 }
 0xa76   :  { %6207 = vrcp.f32 %v1582_v26 }
 0xa81   :  { %v6206_v27 = vpop.eup %6205 }
 0xa82   :  { %v1589_v30 = vmul.f32 %v6206_v27, %v6202_v19 }
 0xa83   :  { %v6208_v28 = vpop.eup %6207 }
 0xa84   :  { %v1588_v29 = vmul.f32 %v6208_v28, %v6204_v21 }
 0xa86   :  { %5846 = vmatprep.mubr.msk.f32.mxu0 %vm486_vm6, %v1588_v29 }
 0xa87   :  { %5847 = vmatmul.mubr.msk.f32.vlgmr.msra.gmra.mxu0 %vm486_vm6, %v1589_v30 }
 0xa88   :  { %5855 = vmatpush3.msra.mxu0 %v5231_v23  ;;  %5862 = vmatprep.mubr.msk.f32.mxu0 %vm72_vm0, %v6473_v45 }
 0xa89   :  { %5856 = vmatprep.subr.mxu0 %v5230_v31 }
 0xa8a   :  { %5857 = vmatpush3.msra.mxu0 %v5230_v31 }
 0xa8b   :  { %5858 = vmatprep.subr.mxu0 %v5229_v32 }
 0xa8c   :  { %5859 = vmatpush3.msra.mxu0 %v5229_v32  ;;  %v5261_v32 = vld [vmem:[%s7306_s11] ss:$0 sm:$0xff] }
 0xa8d   :  { %5860 = vmatprep.subr.mxu0 %v5228_v33 }
 0xa8e   :  { %5861 = vmatpush3.msra.mxu0 %v5228_v33 }
 0xa8f   :  { %5863 = vmatmul.mubr.msk.f32.vlgmr.msra.gmra.mxu0 %vm72_vm0, %v6480_v48  ;;  %5876 = vmatprep.subr.mxu0 %v5247_v34 }
 0xa90   :  { %5877 = vmatpush3.msra.mxu0 %v5247_v34  ;;  %5884 = vmatprep.mubr.msk.f32.mxu0 %vm72_vm0, %v6473_v45 }
 0xa91   :  { %5878 = vmatprep.subr.mxu0 %v5246_v35 }
 0xa92   :  { %5879 = vmatpush3.msra.mxu0 %v5246_v35 }
 0xa93   :  { %5880 = vmatprep.subr.mxu0 %v5245_v36 }
 0xa94   :  { %5881 = vmatpush3.msra.mxu0 %v5245_v36 }
 0xa95   :  { %5882 = vmatprep.subr.mxu0 %v5244_v37 }
 0xa96   :  { %5883 = vmatpush3.msra.mxu0 %v5244_v37 }
 0xa97   :  { %5885 = vmatmul.mubr.msk.f32.vlgmr.msra.gmra.mxu0 %vm72_vm0, %v6480_v48 }
 0xb47   :  { %v5848_v39 = vpop.f32.mrf.mxu0 }
 0xb49   :  { %v1662_v40 = vpop.f32.mrf.mxu0 }
 0xb4a   :  { %5851 = vmatprep.mubr.msk.f32.mxu1 %vm394_vm5, %v1662_v40 }
 0xb4b   :  { %5852 = vmatmul.mubr.msk.f32.vlgmr.msra.gmra.mxu1 %vm394_vm5, %v5848_v39 }
 0xb4c   :  { %5866 = vmatpush3.msra.mxu1 %v5239_v38  ;;  %5873 = vmatprep.mubr.msk.f32.mxu1 %vm72_vm0, %v6473_v45 }
 0xb4d   :  { %5867 = vmatprep.subr.mxu1 %v5238_v41 }
 0xb4e   :  { %5868 = vmatpush3.msra.mxu1 %v5238_v41 }
 0xb4f   :  { %v5864_v46 = vpop.f32.mrf.mxu0  ;;  %5869 = vmatprep.subr.mxu1 %v5237_v42 }
 0xb50   :  { %v1841_v47 = vadd.f32 %v5864_v46, %v5233_v43  ;;  %5870 = vmatpush3.msra.mxu1 %v5237_v42 }
 0xb51   :  { %v1835_v49 = vpop.f32.mrf.mxu0  ;;  %5871 = vmatprep.subr.mxu1 %v5236_v44 }
 0xb52   :  { %v1836_v45 = vadd.f32 %v5233_v43, %v1835_v49  ;;  %5872 = vmatpush3.msra.mxu1 %v5236_v44 }
 0xb53   :  { %5874 = vmatmul.mubr.msk.f32.vlgmr.msra.gmra.mxu1 %vm72_vm0, %v6480_v48  ;;  %v1205_v48 = vadd.f32 %v6621_v6, %v6677_v52 }
 0xb54   :  { %5891 = vmatprep.mubr.msk.f32.mxu1 %vm394_vm5, %v1836_v45 }
 0xb57   :  { %v5886_v53 = vpop.f32.mrf.mxu0 }
 0xb58   :  { %v2017_v54 = vadd.f32 %v5886_v53, %v5249_v50  ;;  %v2370_v53 = vld [vmem:[%s7309_s14 + $0x10] sm:$0xff] }
 0xb59   :  { %v2011_v55 = vpop.f32.mrf.mxu0 }
 0xb5a   :  { %v2012_v56 = vadd.f32 %v5249_v50, %v2011_v55  ;;  %5894 = vmatprep.subr.mxu0 %v2017_v54  ;;  %v2371_v50 = vld [vmem:[%s7309_s14 + $0x18] sm:$0xff]  ;;  %v2368_v55 = vld [vmem:[%s7309_s14] sm:$0xff] }
 0xb5b   :  { %5895 = vmatpush3.msra.mxu0 %v2017_v54  ;;  %v2369_v54 = vld [vmem:[%s7309_s14 + $0x8] sm:$0xff] }
 0xb5c   :  { %5896 = vmatprep.subr.mxu0 %v2012_v56 }
 0xb5d   :  { %5897 = vmatpush3.msra.mxu0 %v2012_v56  ;;  %v2469_v56 = vld [vmem:[%s7311_s16 + $0x38] sm:$0xff] }
 0xb5e   :  { %5906 = vmatprep.subr.mxu0 %v2371_v50 }
 0xc0b   :  { %v5853_v58 = vpop.f32.mrf.mxu1 }
 0xc0c   :  { %v1755_v59 = vadd.f32 %v5853_v58, %v1210_v57  ;;  %v2468_v57 = vld [vmem:[%s7311_s16 + $0x30] sm:$0xff]  ;;  %v2467_v58 = vld [vmem:[%s7311_s16 + $0x28] sm:$0xff] }
 0xc0d   :  { %v1745_v60 = vpop.f32.mrf.mxu1 }
 0xc0e   :  { %v1754_v61 = vadd.f32 %v1745_v60, %v1205_v48  ;;  %v2466_v48 = vld [vmem:[%s7311_s16 + $0x20] sm:$0xff] }
 0xc13   :  { %v5875_v63 = vpop.f32.mrf.mxu1 }
 0xc14   :  { %v1929_v2 = vadd.f32 %v5875_v63, %v5241_v62 }
 0xc15   :  { %v1923_v3 = vpop.f32.mrf.mxu1 }
 0xc16   :  { %v1924_v4 = vadd.f32 %v5241_v62, %v1923_v3  ;;  %5887 = vmatprep.subr.msk.mxu1 %vm394_vm5, %v1929_v2 }
 0xc17   :  { %5888 = vmatpush3.xpose.msk.msra.mxu1 %vm394_vm5, %v1929_v2 }
 0xc18   :  { %5889 = vmatprep.subr.msk.mxu1 %vm394_vm5, %v1924_v4 }
 0xc1b   :  { %5890 = vmatpush3.xpose.msk.msra.mxu1 %vm394_vm5, %v1924_v4 }
 0xc1e   :  { %5892 = vmatmul.mubr.msk.f32.vlgmr.msra.gmra.mxu1 %vm394_vm5, %v1841_v47 }
 0xcde   :  { %v5893_v5 = vpop.f32.mrf.mxu1 }
 0xcdf   :  { %v2108_v6 = vmul.f32 0.35355338, %v5893_v5 }
 0xce0   :  { %v2098_v51 = vpop.f32.mrf.mxu1 }
 0xce1   :  { %v2107_v52 = vmul.f32 0.35355338, %v2098_v51  ;;  %v2110_v7 = vadd.f32 %v2108_v6, %v6549_v14 }
 0xce3   :  { %v2114_v8 = vsel %vm486_vm6, %v2110_v7, -inf  ;;  %v2109_v9 = vadd.f32 %v2107_v52, %v6554_v17  ;;  %v5258_v17 = vld [vmem:[%s7305_s10 + $0x18] sm:$0xff] }
 0xce4   :  { %2115 = vmax.xlane.f32.xlu1 %v2114_v8  ;;  %5901 = vmatprep.subr.mxu1 %v5258_v17 }
 0xce5   :  { %v2111_v10 = vsel %vm486_vm6, %v2109_v9, -inf  ;;  %5902 = vmatpush3.msra.mxu1 %v5258_v17  ;;  %v2465_v17 = vld [vmem:[%s7311_s16 + $0x18] sm:$0xff] }
 0xce6   :  { %2112 = vmax.xlane.f32.xlu0 %v2111_v10  ;;  %5917 = vmatprep.subr.mxu1 %v2469_v56 }
 0xd6d   :  { %v2116_v11 = vpop.xlane.xlu1 %2115 }
 0xd6e   :  { %v2118_v12 = vsub.f32 %v2110_v7, %v2116_v11  ;;  %v5262_v11 = vld [vmem:[%s7307_s12] ss:$0 sm:$0xff] }
 0xd6f   :  { %v2113_v13 = vpop.xlane.xlu0 %2112 }
 0xd70   :  { %v2121_v15 = vmul.f32 1.442695, %v2118_v12  ;;  %v2117_v16 = vsub.f32 %v2109_v9, %v2113_v13 }
 0xd72   :  { %6209 = vpow2.f32 %v2121_v15  ;;  %v2119_v18 = vmul.f32 1.442695, %v2117_v16 }
 0xd74   :  { %6211 = vpow2.f32 %v2119_v18 }
 0xd7f   :  { %v6210_v19 = vpop.eup %6209 }
 0xd80   :  { %v2126_v20 = vsel %vm486_vm6, %v6210_v19, 0.0 }
 0xd81   :  { %v6212_v14 = vpop.eup %6211  ;;  %2127 = vadd.xlane.f32.xlu1 %v2126_v20 }
 0xd82   :  { %v2123_v21 = vsel %vm486_vm6, %v6212_v14, 0.0 }
 0xd83   :  { %2124 = vadd.xlane.f32.xlu0 %v2123_v21 }
 0xe0a   :  { %v2128_v22 = vpop.xlane.xlu1 %2127 }
 0xe0b   :  { %6213 = vrcp.f32 %v2128_v22  ;;  %v2464_v22 = vld [vmem:[%s7311_s16 + $0x10] sm:$0xff] }
 0xe0c   :  { %v2125_v23 = vpop.xlane.xlu0 %2124 }
 0xe0d   :  { %6215 = vrcp.f32 %v2125_v23  ;;  %v2463_v23 = vld [vmem:[%s7311_s16 + $0x8] sm:$0xff] }
 0xe18   :  { %v6214_v24 = vpop.eup %6213 }
 0xe19   :  { %v2132_v27 = vmul.f32 %v6214_v24, %v6210_v19  ;;  %v5263_v19 = vld [vmem:[%s7308_s13] ss:$0 sm:$0xff] }
 0xe1a   :  { %v6216_v25 = vpop.eup %6215  ;;  %v2462_v24 = vld [vmem:[%s7311_s16] sm:$0xff] }
 0xe1b   :  { %v2131_v26 = vmul.f32 %v6216_v25, %v6212_v14  ;;  %v5264_v25 = vld [vmem:[%s7310_s15] ss:$0 sm:$0xff] }
 0xe1d   :  { %5898 = vmatprep.mubr.msk.f32.mxu0 %vm486_vm6, %v2131_v26 }
 0xe1e   :  { %5899 = vmatmul.mubr.msk.f32.vlgmr.msra.gmra.mxu0 %vm486_vm6, %v2132_v27 }
 0xe1f   :  { %5907 = vmatpush3.msra.mxu0 %v2371_v50  ;;  %v5277_v50 = vld [vmem:[%s7327_s26 + $0x98] sm:$0xff] }
 0xe20   :  { %5908 = vmatprep.subr.mxu0 %v2370_v53 }
 0xe21   :  { %5909 = vmatpush3.msra.mxu0 %v2370_v53  ;;  %v5293_v53 = vld [vmem:[%s7303_s8 + $0x98] sm:$0xff] }
 0xe22   :  { %5910 = vmatprep.subr.mxu0 %v2369_v54 }
 0xe23   :  { %5911 = vmatpush3.msra.mxu0 %v2369_v54  ;;  %v5276_v54 = vld [vmem:[%s7327_s26 + $0x90] sm:$0xff] }
 0xe24   :  { %5912 = vmatprep.subr.mxu0 %v2368_v55 }
 0xe25   :  { %5913 = vmatpush3.msra.mxu0 %v2368_v55  ;;  %v5292_v55 = vld [vmem:[%s7303_s8 + $0x90] sm:$0xff] }
 0xe26   :  { %5936 = vmatprep.subr.mxu0 %v5277_v50 }
 0xede   :  { %v5900_v28 = vpop.f32.mrf.mxu0 }
 0xee0   :  { %v2205_v29 = vpop.f32.mrf.mxu0 }
 0xee1   :  { %5903 = vmatprep.mubr.msk.f32.mxu1 %vm394_vm5, %v2205_v29 }
 0xee2   :  { %5904 = vmatmul.mubr.msk.f32.vlgmr.msra.gmra.mxu1 %vm394_vm5, %v5900_v28 }
 0xee3   :  { %5918 = vmatpush3.msra.mxu1 %v2469_v56  ;;  %v5275_v56 = vld [vmem:[%s7327_s26 + $0x88] sm:$0xff] }
 0xee4   :  { %5919 = vmatprep.subr.mxu1 %v2468_v57 }
 0xee5   :  { %5920 = vmatpush3.msra.mxu1 %v2468_v57  ;;  %v5291_v57 = vld [vmem:[%s7303_s8 + $0x88] sm:$0xff] }
 0xee6   :  { %5921 = vmatprep.subr.mxu1 %v2467_v58 }
 0xee7   :  { %5922 = vmatpush3.msra.mxu1 %v2467_v58  ;;  %v5274_v58 = vld [vmem:[%s7327_s26 + $0x80] sm:$0xff] }
 0xee8   :  { %5923 = vmatprep.subr.mxu1 %v2466_v48 }
 0xee9   :  { %5924 = vmatpush3.msra.mxu1 %v2466_v48  ;;  %v5290_v48 = vld [vmem:[%s7303_s8 + $0x80] sm:$0xff] }
 0xeea   :  { %5925 = vmatprep.subr.mxu1 %v2465_v17 }
 0xeeb   :  { %5926 = vmatpush3.msra.mxu1 %v2465_v17 }
 0xeec   :  { %5927 = vmatprep.subr.mxu1 %v2464_v22 }
 0xeed   :  { %5928 = vmatpush3.msra.mxu1 %v2464_v22  ;;  %v5284_v22 = vld [vmem:[%s7301_s6 + $0x90] sm:$0xff] }
 0xeee   :  { %5929 = vmatprep.subr.mxu1 %v2463_v23 }
 0xeef   :  { %5930 = vmatpush3.msra.mxu1 %v2463_v23  ;;  %v5283_v23 = vld [vmem:[%s7301_s6 + $0x88] sm:$0xff] }
 0xef0   :  { %5931 = vmatprep.subr.mxu1 %v2462_v24 }
 0xef1   :  { %5932 = vmatpush3.msra.mxu1 %v2462_v24  ;;  %v5282_v24 = vld [vmem:[%s7301_s6 + $0x80] sm:$0xff] }
 0xef2   :  { %5958 = vmatprep.subr.mxu1 %v5293_v53 }
 0xfa2   :  { %v5905_v30 = vpop.f32.mrf.mxu1 }
 0xfa3   :  { %v2298_v31 = vadd.f32 %v5905_v30, %v1755_v59 }
 0xfa4   :  { %v2288_v33 = vpop.f32.mrf.mxu1 }
 0xfa5   :  { %v2300_v34 = vadd.f32 %v2298_v31, %v6421_v1  ;;  %v2297_v35 = vadd.f32 %v2288_v33, %v1754_v61  ;;  %v5269_v33 = vld [vmem:[%s7312_s17] ss:$0 sm:$0xff] }
 0xfa7   :  { %v6784_v36 = vadd.f32 %v5261_v32, %v2300_v34  ;;  %v2299_v37 = vadd.f32 %v2297_v35, %v6416_v0 }
 0xfa9   :  { %v6787_v38 = vadd.f32 %v5261_v32, %v2299_v37  ;;  %v2315_v39 = vsel %vm72_vm0, %v6784_v36, 0.0 }
 0xfaa   :  { %2316 = vadd.xlane.f32.xlu1 %v2315_v39 }
 0xfab   :  { %v2312_v40 = vsel %vm72_vm0, %v6787_v38, 0.0 }
 0xfac   :  { %2313 = vadd.xlane.f32.xlu0 %v2312_v40 }
0x1033   :  { %v2317_v41 = vpop.xlane.xlu1 %2316 }
0x1034   :  { %v2319_v42 = vmul.f32 0.03125, %v2317_v41 }
0x1035   :  { %v2314_v43 = vpop.xlane.xlu0 %2313 }
0x1036   :  { %v2321_v1 = vsub.f32 %v6784_v36, %v2319_v42  ;;  %v2318_v44 = vmul.f32 0.03125, %v2314_v43 }
0x1038   :  { %v2320_v46 = vsub.f32 %v6787_v38, %v2318_v44  ;;  %v2323_v47 = vmul.f32 %v2321_v1, %v2321_v1 }
0x103a   :  { %v2327_v0 = vsel %vm72_vm0, %v2323_v47, 0.0  ;;  %v2322_v49 = vmul.f32 %v2320_v46, %v2320_v46 }
0x103b   :  { %2328 = vadd.xlane.f32.xlu1 %v2327_v0 }
0x103c   :  { %v2324_v45 = vsel %vm72_vm0, %v2322_v49, 0.0 }
0x103d   :  { %2325 = vadd.xlane.f32.xlu0 %v2324_v45 }
0x10c4   :  { %v2329_v59 = vpop.xlane.xlu1 %2328 }
0x10c5   :  { %v2331_v60 = vmul.f32 0.032258064, %v2329_v59  ;;  %v5285_v59 = vld [vmem:[%s7301_s6 + $0x98] sm:$0xff] }
0x10c6   :  { %v2326_v61 = vpop.xlane.xlu0 %2325 }
0x10c7   :  { %6217 = vrsqrt.f32 %v2331_v60  ;;  %v2330_v62 = vmul.f32 0.032258064, %v2326_v61  ;;  %vm2341_vm7 = vcmp.eq.f32.partialorder %v2331_v60, inf  ;;  %v2344_v3 = vand.u32 2147483648, %v2331_v60 }
0x10c8   :  { %vm2343_vm8 = vcmp.eq.f32.partialorder %v2331_v60, 0.0 }
0x10c9   :  { %6219 = vrsqrt.f32 %v2330_v62  ;;  %vm2334_vm9 = vcmp.eq.f32.partialorder %v2330_v62, inf  ;;  %v2337_v7 = vand.u32 2147483648, %v2330_v62  ;;  %vm2336_vm10 = vcmp.eq.f32.partialorder %v2330_v62, 0.0 }
0x10d4   :  { %v6218_v63 = vpop.eup %6217 }
0x10d5   :  { %v2340_v2 = vmul.f32 %v6218_v63, %v2331_v60 }
0x10d6   :  { %v6220_v4 = vpop.eup %6219 }
0x10d7   :  { %v2342_v5 = vsel %vm2341_vm7, %v2331_v60, %v2340_v2  ;;  %v2333_v51 = vmul.f32 %v6220_v4, %v2330_v62 }
0x10d8   :  { %v2345_v6 = vsel %vm2343_vm8, %v2344_v3, %v2342_v5 }
0x10d9   :  { %v2347_v52 = vadd.f32 1e-06, %v2345_v6  ;;  %v2335_v8 = vsel %vm2334_vm9, %v2330_v62, %v2333_v51 }
0x10da   :  { %v2338_v9 = vsel %vm2336_vm10, %v2337_v7, %v2335_v8 }
0x10db   :  { %6221 = vrcp.f32 %v2347_v52  ;;  %v2346_v10 = vadd.f32 1e-06, %v2338_v9 }
0x10dd   :  { %6223 = vrcp.f32 %v2346_v10 }
0x10e8   :  { %v6222_v12 = vpop.eup %6221 }
0x10e9   :  { %v2357_v13 = vmul.f32 %v6222_v12, %v5262_v11  ;;  %v5272_v12 = vld [vmem:[%s7328_s30 + $0x1] ss:$0 sm:$0xff] }
0x10ea   :  { %v6224_v15 = vpop.eup %6223 }
0x10eb   :  { %v2356_v16 = vmul.f32 %v6224_v15, %v5262_v11  ;;  %v2359_v18 = vmul.f32 %v2357_v13, %v2321_v1 }
0x10ed   :  { %v2358_v20 = vmul.f32 %v2356_v16, %v2320_v46  ;;  %v2367_v21 = vadd.f32 %v5263_v19, %v2359_v18 }
0x10ef   :  { %v2366_v14 = vadd.f32 %v5263_v19, %v2358_v20  ;;  %v5273_v20 = vld [vmem:[%s7329_s1 + $0x1] ss:$0 sm:$0xff] }
0x10f1   :  { %5914 = vmatprep.mubr.msk.f32.mxu0 %vm72_vm0, %v2366_v14 }
0x10f2   :  { %5915 = vmatmul.mubr.msk.f32.vlgmr.msra.gmra.mxu0 %vm72_vm0, %v2367_v21 }
0x10f3   :  { %5937 = vmatpush3.msra.mxu0 %v5277_v50 }
0x10f4   :  { %5938 = vmatprep.subr.mxu0 %v5276_v54 }
0x10f5   :  { %5939 = vmatpush3.msra.mxu0 %v5276_v54  ;;  %v6972_v54 = vld [vmem:[%s7330_s27] sm:$0xff] }
0x10f6   :  { %5940 = vmatprep.subr.mxu0 %v5275_v56 }
0x10f7   :  { %5941 = vmatpush3.msra.mxu0 %v5275_v56  ;;  %v5318_v56 = vld [vmem:[%s7302_s7 + $0x5] ss:$0 sm:$0xff] }
0x10f8   :  { %5942 = vmatprep.subr.mxu0 %v5274_v58 }
0x10f9   :  { %5943 = vmatpush3.msra.mxu0 %v5274_v58 }
0x10fa   :  { %5947 = vmatprep.subr.mxu0 %v5285_v59 }
0x11b2   :  { %v5916_v26 = vpop.f32.mrf.mxu0 }
0x11b3   :  { %v2457_v27 = vadd.f32 %v5916_v26, %v5264_v25 }
0x11b4   :  { %v2451_v28 = vpop.f32.mrf.mxu0 }
0x11b5   :  { %v2452_v29 = vadd.f32 %v5264_v25, %v2451_v28  ;;  %v2461_v31 = vmax.f32 %v2457_v27, 0.0  ;;  %v5295_v25 = vld [vmem:[%s7304_s9 + $0x4] ss:$0 sm:$0xff] }
0x11b7   :  { %v2460_v30 = vmax.f32 %v2452_v29, 0.0  ;;  %v5279_v29 = vld [vmem:[%s7300_s5 + $0x4] ss:$0 sm:$0xff] }
0x11b9   :  { %5933 = vmatprep.mubr.msk.f32.mxu1 %vm2470_vm11, %v2460_v30 }
0x11ba   :  { %5934 = vmatmul.mubr.msk.f32.vlgmr.msra.gmra.mxu1 %vm2470_vm11, %v2461_v31 }
0x11bb   :  { %5959 = vmatpush3.msra.mxu1 %v5293_v53 }
0x11bc   :  { %5960 = vmatprep.subr.mxu1 %v5292_v55 }
0x11bd   :  { %5961 = vmatpush3.msra.mxu1 %v5292_v55 }
0x11be   :  { %5962 = vmatprep.subr.mxu1 %v5291_v57 }
0x11bf   :  { %5963 = vmatpush3.msra.mxu1 %v5291_v57 }
0x11c0   :  { %5964 = vmatprep.subr.mxu1 %v5290_v48 }
0x11c1   :  { %5965 = vmatpush3.msra.mxu1 %v5290_v48 }
0x127a   :  { %v5935_v32 = vpop.f32.mrf.mxu1 }
0x127b   :  { %v2553_v34 = vadd.f32 %v5935_v32, %v6784_v36 }
0x127c   :  { %v2543_v35 = vpop.f32.mrf.mxu1 }
0x127d   :  { %v6850_v37 = vadd.f32 %v5269_v33, %v2553_v34  ;;  %v2552_v39 = vadd.f32 %v2543_v35, %v6787_v38  ;;  %v5287_v34 = vld [vmem:[%s7302_s7 + $0x4] ss:$0 sm:$0xff] }
0x127f   :  { %v6853_v40 = vadd.f32 %v5269_v33, %v2552_v39  ;;  %v2570_v41 = vsel %vm72_vm0, %v6850_v37, 0.0 }
0x1280   :  { %2571 = vadd.xlane.f32.xlu1 %v2570_v41 }
0x1281   :  { %v2567_v42 = vsel %vm72_vm0, %v6853_v40, 0.0 }
0x1282   :  { %2568 = vadd.xlane.f32.xlu0 %v2567_v42 }
0x1309   :  { %v2572_v43 = vpop.xlane.xlu1 %2571 }
0x130a   :  { %v2574_v1 = vmul.f32 0.03125, %v2572_v43  ;;  %v5316_v43 = vld [vmem:[%s7301_s6 + $0xb8] sm:$0xff] }
0x130b   :  { %v2569_v44 = vpop.xlane.xlu0 %2568 }
0x130c   :  { %v6860_v36 = vsub.f32 %v6850_v37, %v2574_v1  ;;  %v2573_v46 = vmul.f32 0.03125, %v2569_v44  ;;  %v5315_v44 = vld [vmem:[%s7301_s6 + $0xb0] sm:$0xff] }
0x130e   :  { %v6863_v47 = vsub.f32 %v6853_v40, %v2573_v46  ;;  %v2578_v38 = vmul.f32 %v6860_v36, %v6860_v36  ;;  %v5313_v46 = vld [vmem:[%s7301_s6 + $0xa0] sm:$0xff] }
0x1310   :  { %v2582_v0 = vsel %vm72_vm0, %v2578_v38, 0.0  ;;  %v2577_v49 = vmul.f32 %v6863_v47, %v6863_v47 }
0x1311   :  { %2583 = vadd.xlane.f32.xlu1 %v2582_v0 }
0x1312   :  { %v2579_v45 = vsel %vm72_vm0, %v2577_v49, 0.0 }
0x1313   :  { %2580 = vadd.xlane.f32.xlu0 %v2579_v45  ;;  %v6965_v45 = vld [vmem:[%s7330_s27 + $0x8] sm:$0xff] }
0x139a   :  { %v2584_v60 = vpop.xlane.xlu1 %2583 }
0x139b   :  { %v2586_v61 = vmul.f32 0.032258064, %v2584_v60 }
0x139c   :  { %v2581_v62 = vpop.xlane.xlu0 %2580 }
0x139d   :  { %6225 = vrsqrt.f32 %v2586_v61  ;;  %v2585_v63 = vmul.f32 0.032258064, %v2581_v62  ;;  %vm2596_vm12 = vcmp.eq.f32.partialorder %v2586_v61, inf  ;;  %v2599_v4 = vand.u32 2147483648, %v2586_v61 }
0x139e   :  { %vm2598_vm13 = vcmp.eq.f32.partialorder %v2586_v61, 0.0 }
0x139f   :  { %6227 = vrsqrt.f32 %v2585_v63  ;;  %vm2589_vm14 = vcmp.eq.f32.partialorder %v2585_v63, inf  ;;  %v2592_v8 = vand.u32 2147483648, %v2585_v63  ;;  %vm2591_vm15 = vcmp.eq.f32.partialorder %v2585_v63, 0.0 }
0x13aa   :  { %v6226_v2 = vpop.eup %6225 }
0x13ab   :  { %v2595_v3 = vmul.f32 %v6226_v2, %v2586_v61 }
0x13ac   :  { %v6228_v5 = vpop.eup %6227 }
0x13ad   :  { %v2597_v6 = vsel %vm2596_vm12, %v2586_v61, %v2595_v3  ;;  %v2588_v52 = vmul.f32 %v6228_v5, %v2585_v63 }
0x13ae   :  { %v2600_v51 = vsel %vm2598_vm13, %v2599_v4, %v2597_v6 }
0x13af   :  { %v2602_v7 = vadd.f32 1e-06, %v2600_v51  ;;  %v2590_v9 = vsel %vm2589_vm14, %v2585_v63, %v2588_v52 }
0x13b0   :  { %v2593_v10 = vsel %vm2591_vm15, %v2592_v8, %v2590_v9 }
0x13b1   :  { %6229 = vrcp.f32 %v2602_v7  ;;  %v2601_v11 = vadd.f32 1e-06, %v2593_v10  ;;  %v5308_v7 = vld [vmem:[%s7327_s26 + $0xb8] sm:$0xff] }
0x13b3   :  { %6231 = vrcp.f32 %v2601_v11 }
0x13be   :  { %v6230_v13 = vpop.eup %6229 }
0x13bf   :  { %v2612_v15 = vmul.f32 %v6230_v13, %v5272_v12 }
0x13c0   :  { %v6232_v16 = vpop.eup %6231 }
0x13c1   :  { %v2611_v18 = vmul.f32 %v6232_v16, %v5272_v12  ;;  %v2614_v19 = vmul.f32 %v2612_v15, %v6860_v36  ;;  %v5314_v36 = vld [vmem:[%s7301_s6 + $0xa8] sm:$0xff]  ;;  %v5307_v15 = vld [vmem:[%s7327_s26 + $0xb0] sm:$0xff] }
0x13c2   :  { %v5306_v16 = vld [vmem:[%s7327_s26 + $0xa8] sm:$0xff] }
0x13c3   :  { %v2613_v14 = vmul.f32 %v2611_v18, %v6863_v47  ;;  %v6908_v17 = vadd.f32 %v5273_v20, %v2614_v19  ;;  %v5305_v18 = vld [vmem:[%s7327_s26 + $0xa0] sm:$0xff]  ;;  %v5324_v19 = vld [vmem:[%s7303_s8 + $0xb8] sm:$0xff] }
0x13c5   :  { %v6906_v21 = vadd.f32 %v5273_v20, %v2613_v14  ;;  %v5323_v20 = vld [vmem:[%s7303_s8 + $0xb0] sm:$0xff]  ;;  %v5322_v14 = vld [vmem:[%s7303_s8 + $0xa8] sm:$0xff] }
0x13c7   :  { %5944 = vmatprep.mubr.msk.f32.mxu0 %vm72_vm0, %v6906_v21  ;;  %5966 = vmatprep.mubr.msk.f32.mxu1 %vm72_vm0, %v6906_v21 }
0x13c8   :  { %5945 = vmatmul.mubr.msk.f32.vlgmr.msra.gmra.mxu0 %vm72_vm0, %v6908_v17  ;;  %5967 = vmatmul.mubr.msk.f32.vlgmr.msra.gmra.mxu1 %vm72_vm0, %v6908_v17 }
0x13c9   :  { %5948 = vmatpush3.msra.mxu0 %v5285_v59  ;;  %5955 = vmatprep.mubr.msk.f32.mxu0 %vm72_vm0, %v6906_v21 }
0x13ca   :  { %5949 = vmatprep.subr.mxu0 %v5284_v22 }
0x13cb   :  { %5950 = vmatpush3.msra.mxu0 %v5284_v22  ;;  %v5321_v22 = vld [vmem:[%s7303_s8 + $0xa0] sm:$0xff] }
0x13cc   :  { %5951 = vmatprep.subr.mxu0 %v5283_v23 }
0x13cd   :  { %5952 = vmatpush3.msra.mxu0 %v5283_v23 }
0x13ce   :  { %5953 = vmatprep.subr.mxu0 %v5282_v24 }
0x13cf   :  { %5954 = vmatpush3.msra.mxu0 %v5282_v24 }
0x13d0   :  { %5956 = vmatmul.mubr.msk.f32.vlgmr.msra.gmra.mxu0 %vm72_vm0, %v6908_v17 }
0x1488   :  { %v5946_v26 = vpop.f32.mrf.mxu0  ;;  %v5968_v27 = vpop.f32.mrf.mxu1 }
0x1489   :  { %v2890_v28 = vadd.f32 %v5968_v27, %v5295_v25  ;;  %v2714_v1 = vadd.f32 %v5946_v26, %v5279_v29  ;;  %v5310_v26 = vld [vmem:[%s7300_s5 + $0x5] ss:$0 sm:$0xff] }
0x148a   :  { %v2708_v30 = vpop.f32.mrf.mxu0  ;;  %v2884_v31 = vpop.f32.mrf.mxu1 }
0x148b   :  { %v2709_v32 = vadd.f32 %v5279_v29, %v2708_v30  ;;  %v2885_v33 = vadd.f32 %v5295_v25, %v2884_v31  ;;  %5976 = vmatprep.subr.mxu1 %v2890_v28  ;;  %v5326_v30 = vld [vmem:[%s7304_s9 + $0x5] ss:$0 sm:$0xff] }
0x148c   :  { %5977 = vmatpush3.msra.mxu1 %v2890_v28 }
0x148d   :  { %5973 = vmatprep.mubr.msk.f32.mxu0 %vm394_vm5, %v2709_v32  ;;  %5978 = vmatprep.subr.mxu1 %v2885_v33 }
0x148e   :  { %5979 = vmatpush3.msra.mxu1 %v2885_v33 }
0x148f   :  { %5983 = vmatprep.subr.mxu1 %v5308_v7 }
0x1490   :  { %v5957_v35 = vpop.f32.mrf.mxu0 }
0x1491   :  { %v2802_v39 = vadd.f32 %v5957_v35, %v5287_v34 }
0x1492   :  { %v2796_v41 = vpop.f32.mrf.mxu0 }
0x1493   :  { %v2797_v42 = vadd.f32 %v5287_v34, %v2796_v41  ;;  %5969 = vmatprep.subr.msk.mxu0 %vm394_vm5, %v2802_v39 }
0x1494   :  { %5970 = vmatpush3.xpose.msk.msra.mxu0 %vm394_vm5, %v2802_v39 }
0x1495   :  { %5971 = vmatprep.subr.msk.mxu0 %vm394_vm5, %v2797_v42 }
0x1498   :  { %5972 = vmatpush3.xpose.msk.msra.mxu0 %vm394_vm5, %v2797_v42 }
0x1499   :  { %5994 = vmatprep.subr.mxu0 %v5316_v43 }
0x149b   :  { %5974 = vmatmul.mubr.msk.f32.vlgmr.msra.gmra.mxu0 %vm394_vm5, %v2714_v1 }
0x149c   :  { %5995 = vmatpush3.msra.mxu0 %v5316_v43  ;;  %6002 = vmatprep.mubr.msk.f32.mxu0 %vm72_vm0, %v6906_v21 }
0x149d   :  { %5996 = vmatprep.subr.mxu0 %v5315_v44 }
0x149e   :  { %5997 = vmatpush3.msra.mxu0 %v5315_v44 }
0x149f   :  { %5998 = vmatprep.subr.mxu0 %v5314_v36 }
0x14a0   :  { %5999 = vmatpush3.msra.mxu0 %v5314_v36 }
0x14a1   :  { %6000 = vmatprep.subr.mxu0 %v5313_v46 }
0x14a2   :  { %6001 = vmatpush3.msra.mxu0 %v5313_v46 }
0x14a3   :  { %6003 = vmatmul.mubr.msk.f32.vlgmr.msra.gmra.mxu0 %vm72_vm0, %v6908_v17 }
0x155b   :  { %v5975_v47 = vpop.f32.mrf.mxu0 }
0x155c   :  { %v2981_v38 = vmul.f32 0.35355338, %v5975_v47 }
0x155d   :  { %v2971_v0 = vpop.f32.mrf.mxu0 }
0x155e   :  { %v2980_v49 = vmul.f32 0.35355338, %v2971_v0  ;;  %v2983_v50 = vadd.f32 %v6965_v45, %v2981_v38 }
0x1560   :  { %v2987_v53 = vsel %vm486_vm6, %v2983_v50, -inf  ;;  %v2982_v55 = vadd.f32 %v6972_v54, %v2980_v49 }
0x1561   :  { %2988 = vmax.xlane.f32.xlu1 %v2987_v53 }
0x1562   :  { %v2984_v57 = vsel %vm486_vm6, %v2982_v55, -inf }
0x1563   :  { %v6004_v58 = vpop.f32.mrf.mxu0  ;;  %2985 = vmax.xlane.f32.xlu0 %v2984_v57 }
0x1564   :  { %v3262_v48 = vadd.f32 %v6004_v58, %v5318_v56  ;;  %v5304_v58 = vld [vmem:[%s7305_s10 + $0x20] sm:$0xff] }
0x1565   :  { %v3256_v59 = vpop.f32.mrf.mxu0 }
0x1566   :  { %v3257_v60 = vadd.f32 %v5318_v56, %v3256_v59  ;;  %6016 = vmatprep.subr.msk.mxu0 %vm394_vm5, %v3262_v48 }
0x1567   :  { %6017 = vmatpush3.xpose.msk.msra.mxu0 %vm394_vm5, %v3262_v48  ;;  %v5335_v48 = vld [vmem:[%s7305_s10 + $0x28] sm:$0xff] }
0x1568   :  { %6018 = vmatprep.subr.msk.mxu0 %vm394_vm5, %v3257_v60 }
0x156b   :  { %6019 = vmatpush3.xpose.msk.msra.mxu0 %vm394_vm5, %v3257_v60 }
0x156c   :  { %6030 = vmatprep.subr.mxu0 %v5335_v48 }
0x15ea   :  { %v2989_v61 = vpop.xlane.xlu1 %2988 }
0x15eb   :  { %v2991_v62 = vsub.f32 %v2983_v50, %v2989_v61 }
0x15ec   :  { %v2986_v63 = vpop.xlane.xlu0 %2985 }
0x15ed   :  { %v2994_v2 = vmul.f32 1.442695, %v2991_v62  ;;  %v2990_v3 = vsub.f32 %v2982_v55, %v2986_v63 }
0x15ef   :  { %6233 = vpow2.f32 %v2994_v2  ;;  %v2992_v4 = vmul.f32 1.442695, %v2990_v3  ;;  %v5351_v3 = vld [vmem:[%s7301_s6 + $0xd8] sm:$0xff] }
0x15f1   :  { %6235 = vpow2.f32 %v2992_v4  ;;  %v5350_v4 = vld [vmem:[%s7301_s6 + $0xd0] sm:$0xff] }
0x15fc   :  { %v6234_v5 = vpop.eup %6233 }
0x15fd   :  { %v2999_v6 = vsel %vm486_vm6, %v6234_v5, 0.0 }
0x15fe   :  { %v6236_v51 = vpop.eup %6235  ;;  %3000 = vadd.xlane.f32.xlu1 %v2999_v6  ;;  %v5348_v6 = vld [vmem:[%s7301_s6 + $0xc0] sm:$0xff] }
0x15ff   :  { %v2996_v52 = vsel %vm486_vm6, %v6236_v51, 0.0 }
0x1600   :  { %2997 = vadd.xlane.f32.xlu0 %v2996_v52 }
0x1687   :  { %v3001_v8 = vpop.xlane.xlu1 %3000 }
0x1688   :  { %6237 = vrcp.f32 %v3001_v8  ;;  %v5342_v8 = vld [vmem:[%s7327_s26 + $0xd0] sm:$0xff] }
0x1689   :  { %v2998_v9 = vpop.xlane.xlu0 %2997 }
0x168a   :  { %6239 = vrcp.f32 %v2998_v9  ;;  %v5341_v9 = vld [vmem:[%s7327_s26 + $0xc8] sm:$0xff] }
0x1695   :  { %v6238_v10 = vpop.eup %6237 }
0x1696   :  { %v3005_v13 = vmul.f32 %v6238_v10, %v6234_v5  ;;  %v5349_v5 = vld [vmem:[%s7301_s6 + $0xc8] sm:$0xff] }
0x1697   :  { %v6240_v11 = vpop.eup %6239 }
0x1698   :  { %v3004_v12 = vmul.f32 %v6240_v11, %v6236_v51  ;;  %v5343_v51 = vld [vmem:[%s7327_s26 + $0xd8] sm:$0xff]  ;;  %v5340_v11 = vld [vmem:[%s7327_s26 + $0xc0] sm:$0xff] }
0x169a   :  { %5980 = vmatprep.mubr.msk.f32.mxu1 %vm486_vm6, %v3004_v12  ;;  %v5359_v12 = vld [vmem:[%s7303_s8 + $0xd8] sm:$0xff] }
0x169b   :  { %5981 = vmatmul.mubr.msk.f32.vlgmr.msra.gmra.mxu1 %vm486_vm6, %v3005_v13 }
0x169c   :  { %5984 = vmatpush3.msra.mxu1 %v5308_v7  ;;  %5991 = vmatprep.mubr.msk.f32.mxu1 %vm72_vm0, %v6906_v21 }
0x169d   :  { %5985 = vmatprep.subr.mxu1 %v5307_v15 }
0x169e   :  { %5986 = vmatpush3.msra.mxu1 %v5307_v15  ;;  %v5353_v15 = vld [vmem:[%s7302_s7 + $0x6] ss:$0 sm:$0xff] }
0x169f   :  { %5987 = vmatprep.subr.mxu1 %v5306_v16 }
0x16a0   :  { %5988 = vmatpush3.msra.mxu1 %v5306_v16  ;;  %v5358_v16 = vld [vmem:[%s7303_s8 + $0xd0] sm:$0xff] }
0x16a1   :  { %5989 = vmatprep.subr.mxu1 %v5305_v18 }
0x16a2   :  { %5990 = vmatpush3.msra.mxu1 %v5305_v18 }
0x16a3   :  { %5992 = vmatmul.mubr.msk.f32.vlgmr.msra.gmra.mxu1 %vm72_vm0, %v6908_v17  ;;  %6005 = vmatprep.subr.mxu1 %v5324_v19 }
0x16a4   :  { %6006 = vmatpush3.msra.mxu1 %v5324_v19  ;;  %6013 = vmatprep.mubr.msk.f32.mxu1 %vm72_vm0, %v6906_v21 }
0x16a5   :  { %6007 = vmatprep.subr.mxu1 %v5323_v20 }
0x16a6   :  { %6008 = vmatpush3.msra.mxu1 %v5323_v20  ;;  %v5357_v20 = vld [vmem:[%s7303_s8 + $0xc8] sm:$0xff] }
0x16a7   :  { %6009 = vmatprep.subr.mxu1 %v5322_v14 }
0x16a8   :  { %6010 = vmatpush3.msra.mxu1 %v5322_v14 }
0x16a9   :  { %6011 = vmatprep.subr.mxu1 %v5321_v22 }
0x16aa   :  { %6012 = vmatpush3.msra.mxu1 %v5321_v22 }
0x16ab   :  { %6014 = vmatmul.mubr.msk.f32.vlgmr.msra.gmra.mxu1 %vm72_vm0, %v6908_v17 }
0x175b   :  { %v5982_v23 = vpop.f32.mrf.mxu1 }
0x175d   :  { %v3078_v24 = vpop.f32.mrf.mxu1 }
0x1763   :  { %v5993_v25 = vpop.f32.mrf.mxu1 }
0x1764   :  { %v3174_v29 = vadd.f32 %v5993_v25, %v5310_v26 }
0x1765   :  { %v3168_v27 = vpop.f32.mrf.mxu1 }
0x1766   :  { %v3169_v28 = vadd.f32 %v5310_v26, %v3168_v27  ;;  %v5345_v27 = vld [vmem:[%s7300_s5 + $0x6] ss:$0 sm:$0xff] }
0x1768   :  { %6020 = vmatprep.mubr.msk.f32.mxu0 %vm394_vm5, %v3169_v28 }
0x1769   :  { %6021 = vmatmul.mubr.msk.f32.vlgmr.msra.gmra.mxu0 %vm394_vm5, %v3174_v29 }
0x176a   :  { %6031 = vmatpush3.msra.mxu0 %v5335_v48  ;;  %v5376_v48 = vld [vmem:[%s7327_s26 + $0xf8] sm:$0xff] }
0x176b   :  { %v6015_v31 = vpop.f32.mrf.mxu1  ;;  %6040 = vmatprep.subr.mxu0 %v5343_v51 }
0x176c   :  { %v3350_v32 = vadd.f32 %v6015_v31, %v5326_v30  ;;  %v5361_v31 = vld [vmem:[%s7304_s9 + $0x6] ss:$0 sm:$0xff] }
0x176d   :  { %v3344_v33 = vpop.f32.mrf.mxu1 }
0x176e   :  { %v3345_v34 = vadd.f32 %v5326_v30, %v3344_v33  ;;  %6023 = vmatprep.subr.mxu1 %v3350_v32 }
0x176f   :  { %6024 = vmatpush3.msra.mxu1 %v3350_v32 }
0x1770   :  { %6025 = vmatprep.subr.mxu1 %v3345_v34 }
0x1771   :  { %6026 = vmatpush3.msra.mxu1 %v3345_v34 }
0x1772   :  { %6035 = vmatprep.subr.mxu1 %v5304_v58 }
0x1829   :  { %v6022_v35 = vpop.f32.mrf.mxu0 }
0x182a   :  { %v3441_v39 = vmul.f32 0.35355338, %v6022_v35 }
0x182b   :  { %v3431_v41 = vpop.f32.mrf.mxu0 }
0x182c   :  { %v3440_v42 = vmul.f32 0.35355338, %v3431_v41  ;;  %v3443_v43 = vadd.f32 %v6965_v45, %v3441_v39 }
0x182e   :  { %v3447_v1 = vsel %vm486_vm6, %v3443_v43, -inf  ;;  %v3442_v44 = vadd.f32 %v6972_v54, %v3440_v42 }
0x182f   :  { %3448 = vmax.xlane.f32.xlu1 %v3447_v1 }
0x1830   :  { %v3444_v36 = vsel %vm486_vm6, %v3442_v44, -inf }
0x1831   :  { %3445 = vmax.xlane.f32.xlu0 %v3444_v36 }
0x18b8   :  { %v3449_v46 = vpop.xlane.xlu1 %3448 }
0x18b9   :  { %v3451_v47 = vsub.f32 %v3443_v43, %v3449_v46 }
0x18ba   :  { %v3446_v38 = vpop.xlane.xlu0 %3445 }
0x18bb   :  { %v3454_v0 = vmul.f32 1.442695, %v3451_v47  ;;  %v3450_v49 = vsub.f32 %v3442_v44, %v3446_v38 }
0x18bd   :  { %6241 = vpow2.f32 %v3454_v0  ;;  %v3452_v50 = vmul.f32 1.442695, %v3450_v49 }
0x18bf   :  { %6243 = vpow2.f32 %v3452_v50 }
0x18ca   :  { %v6242_v53 = vpop.eup %6241 }
0x18cb   :  { %v3459_v55 = vsel %vm486_vm6, %v6242_v53, 0.0 }
0x18cc   :  { %v6244_v56 = vpop.eup %6243  ;;  %3460 = vadd.xlane.f32.xlu1 %v3459_v55 }
0x18cd   :  { %v3456_v57 = vsel %vm486_vm6, %v6244_v56, 0.0 }
0x18ce   :  { %3457 = vadd.xlane.f32.xlu0 %v3456_v57 }
0x1955   :  { %v3461_v59 = vpop.xlane.xlu1 %3460 }
0x1956   :  { %6245 = vrcp.f32 %v3461_v59  ;;  %v5370_v59 = vld [vmem:[%s7305_s10 + $0x30] sm:$0xff] }
0x1957   :  { %v3458_v60 = vpop.xlane.xlu0 %3457 }
0x1958   :  { %6247 = vrcp.f32 %v3458_v60 }
0x1963   :  { %v6246_v61 = vpop.eup %6245 }
0x1964   :  { %v3465_v2 = vmul.f32 %v6246_v61, %v6242_v53 }
0x1965   :  { %v6248_v62 = vpop.eup %6247 }
0x1966   :  { %v3464_v63 = vmul.f32 %v6248_v62, %v6244_v56 }
0x1968   :  { %6027 = vmatprep.mubr.msk.f32.mxu1 %vm486_vm6, %v3464_v63 }
0x1969   :  { %6028 = vmatmul.mubr.msk.f32.vlgmr.msra.gmra.mxu1 %vm486_vm6, %v3465_v2 }
0x196a   :  { %6037 = vmatprep.mubr.msk.f32.mxu1 %vm394_vm5, %v3078_v24  ;;  %6036 = vmatpush3.msra.mxu1 %v5304_v58 }
0x196b   :  { %6051 = vmatprep.subr.mxu1 %v5351_v3 }
0x196d   :  { %6038 = vmatmul.mubr.msk.f32.vlgmr.msra.gmra.mxu1 %vm394_vm5, %v5982_v23  ;;  %v5356_v23 = vld [vmem:[%s7303_s8 + $0xc0] sm:$0xff] }
0x196e   :  { %6052 = vmatpush3.msra.mxu1 %v5351_v3  ;;  %6059 = vmatprep.mubr.msk.f32.mxu1 %vm72_vm0, %v6906_v21 }
0x196f   :  { %6053 = vmatprep.subr.mxu1 %v5350_v4 }
0x1970   :  { %6054 = vmatpush3.msra.mxu1 %v5350_v4  ;;  %v5375_v4 = vld [vmem:[%s7327_s26 + $0xf0] sm:$0xff] }
0x1971   :  { %6055 = vmatprep.subr.mxu1 %v5349_v5 }
0x1972   :  { %6056 = vmatpush3.msra.mxu1 %v5349_v5  ;;  %v5374_v5 = vld [vmem:[%s7327_s26 + $0xe8] sm:$0xff] }
0x1973   :  { %6057 = vmatprep.subr.mxu1 %v5348_v6 }
0x1974   :  { %6058 = vmatpush3.msra.mxu1 %v5348_v6  ;;  %v5373_v6 = vld [vmem:[%s7327_s26 + $0xe0] sm:$0xff] }
0x1975   :  { %6060 = vmatmul.mubr.msk.f32.vlgmr.msra.gmra.mxu1 %vm72_vm0, %v6908_v17 }
0x1a29   :  { %v6029_v52 = vpop.f32.mrf.mxu1 }
0x1a2b   :  { %v3538_v7 = vpop.f32.mrf.mxu1 }
0x1a2c   :  { %6032 = vmatprep.mubr.msk.f32.mxu0 %vm394_vm5, %v3538_v7  ;;  %v5390_v7 = vld [vmem:[%s7303_s8 + $0xe8] sm:$0xff] }
0x1a2d   :  { %6033 = vmatmul.mubr.msk.f32.vlgmr.msra.gmra.mxu0 %vm394_vm5, %v6029_v52  ;;  %v7072_v10 = vpop.f32.mrf.mxu1  ;;  %v5391_v52 = vld [vmem:[%s7303_s8 + $0xf0] sm:$0xff] }
0x1a2e   :  { %6041 = vmatpush3.msra.mxu0 %v5343_v51  ;;  %6048 = vmatprep.mubr.msk.f32.mxu0 %vm72_vm0, %v6906_v21  ;;  %v5392_v51 = vld [vmem:[%s7303_s8 + $0xf8] sm:$0xff] }
0x1a2f   :  { %6042 = vmatprep.subr.mxu0 %v5342_v8  ;;  %v7080_v13 = vpop.f32.mrf.mxu1 }
0x1a30   :  { %6043 = vmatpush3.msra.mxu0 %v5342_v8  ;;  %v5389_v8 = vld [vmem:[%s7303_s8 + $0xe0] sm:$0xff]  ;;  %s6305_s8 = smov [#allocation2]  }
0x1a31   :  { %6044 = vmatprep.subr.mxu0 %v5341_v9  ;;  %s5132_s3 = sshll.u32 %s6305_s8, 4  ;;  %s5133_s3 = int_to_ptr.vmem [resolvable:$true] %s5132_s3 }
0x1a32   :  { %6045 = vmatpush3.msra.mxu0 %v5341_v9  ;;  %v5384_v9 = vld [vmem:[%s7301_s6 + $0xf8] sm:$0xff]  ;;  %p6288_p1 = scmp.lt.s32.totalorder %s5133_s3, %s5133_s3 }
0x1a33   :  { %6046 = vmatprep.subr.mxu0 %v5340_v11 }
0x1a34   :  { %6047 = vmatpush3.msra.mxu0 %v5340_v11 }
0x1a35   :  { %6049 = vmatmul.mubr.msk.f32.vlgmr.msra.gmra.mxu0 %vm72_vm0, %v6908_v17  ;;  %v6061_v18 = vpop.f32.mrf.mxu1  ;;  %6062 = vmatprep.subr.mxu0 %v5359_v12 }
0x1a36   :  { %v3884_v19 = vadd.f32 %v6061_v18, %v5353_v15  ;;  %6063 = vmatpush3.msra.mxu0 %v5359_v12  ;;  %6070 = vmatprep.mubr.msk.f32.mxu0 %vm72_vm0, %v6906_v21  ;;  %v5378_v18 = vld [vmem:[%s7300_s5 + $0x7] ss:$0 sm:$0xff] }
0x1a37   :  { %v3878_v14 = vpop.f32.mrf.mxu1  ;;  %6064 = vmatprep.subr.mxu0 %v5358_v16 }
0x1a38   :  { %v3879_v22 = vadd.f32 %v5353_v15, %v3878_v14  ;;  %6065 = vmatpush3.msra.mxu0 %v5358_v16  ;;  %6073 = vmatprep.subr.msk.mxu1 %vm394_vm5, %v3884_v19  ;;  %v5383_v15 = vld [vmem:[%s7301_s6 + $0xf0] sm:$0xff]  ;;  %v5382_v16 = vld [vmem:[%s7301_s6 + $0xe8] sm:$0xff] }
0x1a39   :  { %6066 = vmatprep.subr.mxu0 %v5357_v20  ;;  %6074 = vmatpush3.xpose.msk.msra.mxu1 %vm394_vm5, %v3884_v19  ;;  %v5381_v19 = vld [vmem:[%s7301_s6 + $0xe0] sm:$0xff] }
0x1a3a   :  { %6067 = vmatpush3.msra.mxu0 %v5357_v20  ;;  %6075 = vmatprep.subr.msk.mxu1 %vm394_vm5, %v3879_v22 }
0x1a3b   :  { %6068 = vmatprep.subr.mxu0 %v5356_v23 }
0x1a3c   :  { %6069 = vmatpush3.msra.mxu0 %v5356_v23  ;;  %v5394_v23 = vld [vmem:[%s7304_s9 + $0x7] ss:$0 sm:$0xff] }
0x1a3d   :  { %6071 = vmatmul.mubr.msk.f32.vlgmr.msra.gmra.mxu0 %vm72_vm0, %v6908_v17  ;;  %6076 = vmatpush3.xpose.msk.msra.mxu1 %vm394_vm5, %v3879_v22 }
0x1a3e   :  { %6087 = vmatprep.subr.mxu1 %v5370_v59 }
0x1aed   :  { %v7104_v24 = vpop.f32.mrf.mxu0 }
0x1aef   :  { %v7106_v25 = vpop.f32.mrf.mxu0 }
0x1af5   :  { %v6050_v26 = vpop.f32.mrf.mxu0 }
0x1af6   :  { %v3796_v30 = vadd.f32 %v6050_v26, %v5345_v27 }
0x1af7   :  { %v3790_v28 = vpop.f32.mrf.mxu0 }
0x1af8   :  { %v3791_v29 = vadd.f32 %v5345_v27, %v3790_v28 }
0x1afa   :  { %6077 = vmatprep.mubr.msk.f32.mxu1 %vm394_vm5, %v3791_v29 }
0x1afb   :  { %6078 = vmatmul.mubr.msk.f32.vlgmr.msra.gmra.mxu1 %vm394_vm5, %v3796_v30  ;;  %v3708_v30 = vadd.f32 %v7072_v10, %v7104_v24 }
0x1afc   :  { %6088 = vmatpush3.msra.mxu1 %v5370_v59 }
0x1afd   :  { %v6072_v32 = vpop.f32.mrf.mxu0  ;;  %6103 = vmatprep.subr.mxu1 %v5384_v9 }
0x1afe   :  { %v3972_v33 = vadd.f32 %v6072_v32, %v5361_v31 }
0x1aff   :  { %v3966_v34 = vpop.f32.mrf.mxu0 }
0x1b00   :  { %v3967_v35 = vadd.f32 %v5361_v31, %v3966_v34  ;;  %6080 = vmatprep.subr.mxu0 %v3972_v33 }
0x1b01   :  { %6081 = vmatpush3.msra.mxu0 %v3972_v33 }
0x1b02   :  { %6082 = vmatprep.subr.mxu0 %v3967_v35 }
0x1b03   :  { %6083 = vmatpush3.msra.mxu0 %v3967_v35  ;;  %v5386_v35 = vld [vmem:[%s7302_s7 + $0x7] ss:$0 sm:$0xff] }
0x1b04   :  { %6092 = vmatprep.subr.mxu0 %v5376_v48 }
0x1bbb   :  { %v6079_v39 = vpop.f32.mrf.mxu1 }
0x1bbc   :  { %v4063_v41 = vmul.f32 0.35355338, %v6079_v39 }
0x1bbd   :  { %v4053_v42 = vpop.f32.mrf.mxu1 }
0x1bbe   :  { %v4062_v43 = vmul.f32 0.35355338, %v4053_v42  ;;  %v4065_v1 = vadd.f32 %v6965_v45, %v4063_v41 }
0x1bc0   :  { %v4069_v44 = vsel %vm486_vm6, %v4065_v1, -inf  ;;  %v4064_v36 = vadd.f32 %v6972_v54, %v4062_v43 }
0x1bc1   :  { %4070 = vmax.xlane.f32.xlu1 %v4069_v44 }
0x1bc2   :  { %v4066_v46 = vsel %vm486_vm6, %v4064_v36, -inf }
0x1bc3   :  { %4067 = vmax.xlane.f32.xlu0 %v4066_v46 }
0x1c4a   :  { %v4071_v47 = vpop.xlane.xlu1 %4070 }
0x1c4b   :  { %v4073_v38 = vsub.f32 %v4065_v1, %v4071_v47 }
0x1c4c   :  { %v4068_v0 = vpop.xlane.xlu0 %4067 }
0x1c4d   :  { %v4076_v49 = vmul.f32 1.442695, %v4073_v38  ;;  %v4072_v50 = vsub.f32 %v4064_v36, %v4068_v0 }
0x1c4f   :  { %6249 = vpow2.f32 %v4076_v49  ;;  %v4074_v53 = vmul.f32 1.442695, %v4072_v50 }
0x1c51   :  { %6251 = vpow2.f32 %v4074_v53 }
0x1c5c   :  { %v6250_v55 = vpop.eup %6249 }
0x1c5d   :  { %v4081_v56 = vsel %vm486_vm6, %v6250_v55, 0.0 }
0x1c5e   :  { %v6252_v57 = vpop.eup %6251  ;;  %4082 = vadd.xlane.f32.xlu1 %v4081_v56 }
0x1c5f   :  { %v4078_v58 = vsel %vm486_vm6, %v6252_v57, 0.0 }
0x1c60   :  { %4079 = vadd.xlane.f32.xlu0 %v4078_v58 }
0x1ce7   :  { %v4083_v60 = vpop.xlane.xlu1 %4082 }
0x1ce8   :  { %6253 = vrcp.f32 %v4083_v60 }
0x1ce9   :  { %v4080_v61 = vpop.xlane.xlu0 %4079 }
0x1cea   :  { %6255 = vrcp.f32 %v4080_v61 }
0x1cf5   :  { %v6254_v62 = vpop.eup %6253 }
0x1cf6   :  { %v4087_v3 = vmul.f32 %v6254_v62, %v6250_v55 }
0x1cf7   :  { %v6256_v63 = vpop.eup %6255 }
0x1cf8   :  { %v4086_v2 = vmul.f32 %v6256_v63, %v6252_v57 }
0x1cfa   :  { %6084 = vmatprep.mubr.msk.f32.mxu0 %vm486_vm6, %v4086_v2 }
0x1cfb   :  { %6085 = vmatmul.mubr.msk.f32.vlgmr.msra.gmra.mxu0 %vm486_vm6, %v4087_v3 }
0x1cfc   :  { %6093 = vmatpush3.msra.mxu0 %v5376_v48  ;;  %6100 = vmatprep.mubr.msk.f32.mxu0 %vm72_vm0, %v6906_v21 }
0x1cfd   :  { %6094 = vmatprep.subr.mxu0 %v5375_v4 }
0x1cfe   :  { %6095 = vmatpush3.msra.mxu0 %v5375_v4 }
0x1cff   :  { %6096 = vmatprep.subr.mxu0 %v5374_v5 }
0x1d00   :  { %6097 = vmatpush3.msra.mxu0 %v5374_v5  ;;  %v5407_v5 = vld [vmem:[%s7306_s11 + $0x1] ss:$0 sm:$0xff] }
0x1d01   :  { %6098 = vmatprep.subr.mxu0 %v5373_v6 }
0x1d02   :  { %6099 = vmatpush3.msra.mxu0 %v5373_v6 }
0x1d03   :  { %6101 = vmatmul.mubr.msk.f32.vlgmr.msra.gmra.mxu0 %vm72_vm0, %v6908_v17  ;;  %6114 = vmatprep.subr.mxu0 %v5392_v51 }
0x1d04   :  { %6115 = vmatpush3.msra.mxu0 %v5392_v51  ;;  %6122 = vmatprep.mubr.msk.f32.mxu0 %vm72_vm0, %v6906_v21 }
0x1d05   :  { %6116 = vmatprep.subr.mxu0 %v5391_v52 }
0x1d06   :  { %6117 = vmatpush3.msra.mxu0 %v5391_v52 }
0x1d07   :  { %6118 = vmatprep.subr.mxu0 %v5390_v7 }
0x1d08   :  { %6119 = vmatpush3.msra.mxu0 %v5390_v7 }
0x1d09   :  { %6120 = vmatprep.subr.mxu0 %v5389_v8 }
0x1d0a   :  { %6121 = vmatpush3.msra.mxu0 %v5389_v8 }
0x1d0b   :  { %6123 = vmatmul.mubr.msk.f32.vlgmr.msra.gmra.mxu0 %vm72_vm0, %v6908_v17 }
0x1dbb   :  { %v6086_v11 = vpop.f32.mrf.mxu0 }
0x1dbd   :  { %v4160_v12 = vpop.f32.mrf.mxu0 }
0x1dbe   :  { %6089 = vmatprep.mubr.msk.f32.mxu1 %vm394_vm5, %v4160_v12 }
0x1dbf   :  { %6090 = vmatmul.mubr.msk.f32.vlgmr.msra.gmra.mxu1 %vm394_vm5, %v6086_v11 }
0x1dc0   :  { %6104 = vmatpush3.msra.mxu1 %v5384_v9  ;;  %6111 = vmatprep.mubr.msk.f32.mxu1 %vm72_vm0, %v6906_v21 }
0x1dc1   :  { %6105 = vmatprep.subr.mxu1 %v5383_v15 }
0x1dc2   :  { %6106 = vmatpush3.msra.mxu1 %v5383_v15 }
0x1dc3   :  { %v6102_v20 = vpop.f32.mrf.mxu0  ;;  %6107 = vmatprep.subr.mxu1 %v5382_v16 }
0x1dc4   :  { %v4339_v14 = vadd.f32 %v6102_v20, %v5378_v18  ;;  %6108 = vmatpush3.msra.mxu1 %v5382_v16 }
0x1dc5   :  { %v4333_v22 = vpop.f32.mrf.mxu0  ;;  %6109 = vmatprep.subr.mxu1 %v5381_v19 }
0x1dc6   :  { %v4334_v21 = vadd.f32 %v5378_v18, %v4333_v22  ;;  %6110 = vmatpush3.msra.mxu1 %v5381_v19 }
0x1dc7   :  { %6112 = vmatmul.mubr.msk.f32.vlgmr.msra.gmra.mxu1 %vm72_vm0, %v6908_v17  ;;  %v3703_v17 = vadd.f32 %v7080_v13, %v7106_v25 }
0x1dc8   :  { %6129 = vmatprep.mubr.msk.f32.mxu1 %vm394_vm5, %v4334_v21 }
0x1dcb   :  { %v6124_v26 = vpop.f32.mrf.mxu0 }
0x1dcc   :  { %v4515_v27 = vadd.f32 %v6124_v26, %v5394_v23  ;;  %v5414_v26 = vld [vmem:[%s7309_s14 + $0x30] sm:$0xff] }
0x1dcd   :  { %v4509_v28 = vpop.f32.mrf.mxu0 }
0x1dce   :  { %v4510_v29 = vadd.f32 %v5394_v23, %v4509_v28  ;;  %6132 = vmatprep.subr.mxu0 %v4515_v27  ;;  %v5415_v23 = vld [vmem:[%s7309_s14 + $0x38] sm:$0xff]  ;;  %v5412_v28 = vld [vmem:[%s7309_s14 + $0x20] sm:$0xff] }
0x1dcf   :  { %6133 = vmatpush3.msra.mxu0 %v4515_v27  ;;  %v5413_v27 = vld [vmem:[%s7309_s14 + $0x28] sm:$0xff] }
0x1dd0   :  { %6134 = vmatprep.subr.mxu0 %v4510_v29 }
0x1dd1   :  { %6135 = vmatpush3.msra.mxu0 %v4510_v29  ;;  %v5427_v29 = vld [vmem:[%s7311_s16 + $0x78] sm:$0xff] }
0x1dd2   :  { %6144 = vmatprep.subr.mxu0 %v5415_v23 }
0x1e7f   :  { %v6091_v31 = vpop.f32.mrf.mxu1 }
0x1e80   :  { %v4253_v32 = vadd.f32 %v6091_v31, %v3708_v30  ;;  %v5426_v30 = vld [vmem:[%s7311_s16 + $0x70] sm:$0xff]  ;;  %v5425_v31 = vld [vmem:[%s7311_s16 + $0x68] sm:$0xff] }
0x1e81   :  { %v4243_v33 = vpop.f32.mrf.mxu1 }
0x1e82   :  { %v4252_v34 = vadd.f32 %v4243_v33, %v3703_v17  ;;  %v5424_v17 = vld [vmem:[%s7311_s16 + $0x60] sm:$0xff] }
0x1e87   :  { %v6113_v39 = vpop.f32.mrf.mxu1 }
0x1e88   :  { %v4427_v41 = vadd.f32 %v6113_v39, %v5386_v35 }
0x1e89   :  { %v4421_v42 = vpop.f32.mrf.mxu1 }
0x1e8a   :  { %v4422_v43 = vadd.f32 %v5386_v35, %v4421_v42  ;;  %6125 = vmatprep.subr.msk.mxu1 %vm394_vm5, %v4427_v41 }
0x1e8b   :  { %6126 = vmatpush3.xpose.msk.msra.mxu1 %vm394_vm5, %v4427_v41 }
0x1e8c   :  { %6127 = vmatprep.subr.msk.mxu1 %vm394_vm5, %v4422_v43 }
0x1e8f   :  { %6128 = vmatpush3.xpose.msk.msra.mxu1 %vm394_vm5, %v4422_v43 }
0x1e92   :  { %6130 = vmatmul.mubr.msk.f32.vlgmr.msra.gmra.mxu1 %vm394_vm5, %v4339_v14 }
0x1f52   :  { %v6131_v10 = vpop.f32.mrf.mxu1 }
0x1f53   :  { %v4606_v13 = vmul.f32 0.35355338, %v6131_v10 }
0x1f54   :  { %v4596_v24 = vpop.f32.mrf.mxu1 }
0x1f55   :  { %v4605_v25 = vmul.f32 0.35355338, %v4596_v24  ;;  %v4608_v1 = vadd.f32 %v6965_v45, %v4606_v13 }
0x1f57   :  { %v4612_v44 = vsel %vm486_vm6, %v4608_v1, -inf  ;;  %v4607_v36 = vadd.f32 %v6972_v54, %v4605_v25  ;;  %v5403_v54 = vld [vmem:[%s7305_s10 + $0x38] sm:$0xff] }
0x1f58   :  { %4613 = vmax.xlane.f32.xlu1 %v4612_v44  ;;  %6139 = vmatprep.subr.mxu1 %v5403_v54 }
0x1f59   :  { %v4609_v46 = vsel %vm486_vm6, %v4607_v36, -inf  ;;  %6140 = vmatpush3.msra.mxu1 %v5403_v54  ;;  %v5423_v54 = vld [vmem:[%s7311_s16 + $0x58] sm:$0xff] }
0x1f5a   :  { %4610 = vmax.xlane.f32.xlu0 %v4609_v46  ;;  %6155 = vmatprep.subr.mxu1 %v5427_v29 }
0x1fe1   :  { %v4614_v47 = vpop.xlane.xlu1 %4613 }
0x1fe2   :  { %v4616_v38 = vsub.f32 %v4608_v1, %v4614_v47  ;;  %v5410_v47 = vld [vmem:[%s7307_s12 + $0x1] ss:$0 sm:$0xff] }
0x1fe3   :  { %v4611_v0 = vpop.xlane.xlu0 %4610 }
0x1fe4   :  { %v4619_v49 = vmul.f32 1.442695, %v4616_v38  ;;  %v4615_v50 = vsub.f32 %v4607_v36, %v4611_v0 }
0x1fe6   :  { %6257 = vpow2.f32 %v4619_v49  ;;  %v4617_v53 = vmul.f32 1.442695, %v4615_v50 }
0x1fe8   :  { %6259 = vpow2.f32 %v4617_v53 }
0x1ff3   :  { %v6258_v55 = vpop.eup %6257 }
0x1ff4   :  { %v4624_v56 = vsel %vm486_vm6, %v6258_v55, 0.0 }
0x1ff5   :  { %v6260_v45 = vpop.eup %6259  ;;  %4625 = vadd.xlane.f32.xlu1 %v4624_v56 }
0x1ff6   :  { %v4621_v57 = vsel %vm486_vm6, %v6260_v45, 0.0 }
0x1ff7   :  { %4622 = vadd.xlane.f32.xlu0 %v4621_v57 }
0x207e   :  { %v4626_v58 = vpop.xlane.xlu1 %4625 }
0x207f   :  { %6261 = vrcp.f32 %v4626_v58  ;;  %v5422_v58 = vld [vmem:[%s7311_s16 + $0x50] sm:$0xff] }
0x2080   :  { %v4623_v48 = vpop.xlane.xlu0 %4622 }
0x2081   :  { %6263 = vrcp.f32 %v4623_v48  ;;  %v5421_v48 = vld [vmem:[%s7311_s16 + $0x48] sm:$0xff] }
0x208c   :  { %v6262_v59 = vpop.eup %6261 }
0x208d   :  { %v4630_v62 = vmul.f32 %v6262_v59, %v6258_v55  ;;  %v5411_v55 = vld [vmem:[%s7308_s13 + $0x1] ss:$0 sm:$0xff] }
0x208e   :  { %v6264_v60 = vpop.eup %6263  ;;  %v5420_v59 = vld [vmem:[%s7311_s16 + $0x40] sm:$0xff] }
0x208f   :  { %v4629_v61 = vmul.f32 %v6264_v60, %v6260_v45  ;;  %v5417_v60 = vld [vmem:[%s7310_s15 + $0x1] ss:$0 sm:$0xff] }
0x2091   :  { %6136 = vmatprep.mubr.msk.f32.mxu0 %vm486_vm6, %v4629_v61 }
0x2092   :  { %6137 = vmatmul.mubr.msk.f32.vlgmr.msra.gmra.mxu0 %vm486_vm6, %v4630_v62 }
0x2093   :  { %6145 = vmatpush3.msra.mxu0 %v5415_v23 }
0x2094   :  { %6146 = vmatprep.subr.mxu0 %v5414_v26 }
0x2095   :  { %6147 = vmatpush3.msra.mxu0 %v5414_v26 }
0x2096   :  { %6148 = vmatprep.subr.mxu0 %v5413_v27 }
0x2097   :  { %6149 = vmatpush3.msra.mxu0 %v5413_v27 }
0x2098   :  { %6150 = vmatprep.subr.mxu0 %v5412_v28 }
0x2099   :  { %6151 = vmatpush3.msra.mxu0 %v5412_v28 }
0x2152   :  { %v6138_v63 = vpop.f32.mrf.mxu0 }
0x2154   :  { %v4703_v2 = vpop.f32.mrf.mxu0 }
0x2155   :  { %6141 = vmatprep.mubr.msk.f32.mxu1 %vm394_vm5, %v4703_v2 }
0x2156   :  { %6142 = vmatmul.mubr.msk.f32.vlgmr.msra.gmra.mxu1 %vm394_vm5, %v6138_v63 }
0x2157   :  { %6156 = vmatpush3.msra.mxu1 %v5427_v29 }
0x2158   :  { %6157 = vmatprep.subr.mxu1 %v5426_v30 }
0x2159   :  { %6158 = vmatpush3.msra.mxu1 %v5426_v30 }
0x215a   :  { %6159 = vmatprep.subr.mxu1 %v5425_v31 }
0x215b   :  { %6160 = vmatpush3.msra.mxu1 %v5425_v31 }
0x215c   :  { %6161 = vmatprep.subr.mxu1 %v5424_v17 }
0x215d   :  { %6162 = vmatpush3.msra.mxu1 %v5424_v17 }
0x215e   :  { %6163 = vmatprep.subr.mxu1 %v5423_v54 }
0x215f   :  { %6164 = vmatpush3.msra.mxu1 %v5423_v54 }
0x2160   :  { %6165 = vmatprep.subr.mxu1 %v5422_v58 }
0x2161   :  { %6166 = vmatpush3.msra.mxu1 %v5422_v58 }
0x2162   :  { %6167 = vmatprep.subr.mxu1 %v5421_v48 }
0x2163   :  { %6168 = vmatpush3.msra.mxu1 %v5421_v48 }
0x2164   :  { %6169 = vmatprep.subr.mxu1 %v5420_v59 }
0x2165   :  { %6170 = vmatpush3.msra.mxu1 %v5420_v59 }
0x2216   :  { %v6143_v3 = vpop.f32.mrf.mxu1 }
0x2217   :  { %v4796_v4 = vadd.f32 %v6143_v3, %v4253_v32 }
0x2218   :  { %v4786_v6 = vpop.f32.mrf.mxu1 }
0x2219   :  { %v4798_v51 = vadd.f32 %v4796_v4, %v6850_v37  ;;  %v4795_v52 = vadd.f32 %v4786_v6, %v4252_v34  ;;  %v5431_v6 = vld [vmem:[%s7312_s17 + $0x1] ss:$0 sm:$0xff] }
0x221b   :  { %v7213_v7 = vadd.f32 %v5407_v5, %v4798_v51  ;;  %v4797_v8 = vadd.f32 %v4795_v52, %v6853_v40 }
0x221d   :  { %v7216_v9 = vadd.f32 %v5407_v5, %v4797_v8  ;;  %v4816_v11 = vsel %vm72_vm0, %v7213_v7, 0.0 }
0x221e   :  { %4817 = vadd.xlane.f32.xlu1 %v4816_v11 }
0x221f   :  { %v4813_v12 = vsel %vm72_vm0, %v7216_v9, 0.0 }
0x2220   :  { %4814 = vadd.xlane.f32.xlu0 %v4813_v12 }
0x22a7   :  { %v4818_v15 = vpop.xlane.xlu1 %4817 }
0x22a8   :  { %v4820_v16 = vmul.f32 0.03125, %v4818_v15 }
0x22a9   :  { %v4815_v18 = vpop.xlane.xlu0 %4814 }
0x22aa   :  { %v4822_v37 = vsub.f32 %v7213_v7, %v4820_v16  ;;  %v4819_v19 = vmul.f32 0.03125, %v4815_v18 }
0x22ac   :  { %v4821_v20 = vsub.f32 %v7216_v9, %v4819_v19  ;;  %v4824_v14 = vmul.f32 %v4822_v37, %v4822_v37 }
0x22ae   :  { %v4828_v40 = vsel %vm72_vm0, %v4824_v14, 0.0  ;;  %v4823_v22 = vmul.f32 %v4821_v20, %v4821_v20 }
0x22af   :  { %4829 = vadd.xlane.f32.xlu1 %v4828_v40 }
0x22b0   :  { %v4825_v21 = vsel %vm72_vm0, %v4823_v22, 0.0 }
0x22b1   :  { %4826 = vadd.xlane.f32.xlu0 %v4825_v21 }
0x2338   :  { %v4830_v32 = vpop.xlane.xlu1 %4829 }
0x2339   :  { %v4832_v33 = vmul.f32 0.032258064, %v4830_v32 }
0x233a   :  { %v4827_v34 = vpop.xlane.xlu0 %4826 }
0x233b   :  { %6265 = vrsqrt.f32 %v4832_v33  ;;  %v4831_v35 = vmul.f32 0.032258064, %v4827_v34  ;;  %vm4842_vm1 = vcmp.eq.f32.partialorder %v4832_v33, inf  ;;  %v4845_v42 = vand.u32 2147483648, %v4832_v33 }
0x233c   :  { %vm4844_vm2 = vcmp.eq.f32.partialorder %v4832_v33, 0.0 }
0x233d   :  { %6267 = vrsqrt.f32 %v4831_v35  ;;  %vm4835_vm3 = vcmp.eq.f32.partialorder %v4831_v35, inf  ;;  %v4838_v1 = vand.u32 2147483648, %v4831_v35  ;;  %vm4837_vm4 = vcmp.eq.f32.partialorder %v4831_v35, 0.0 }
0x2348   :  { %v6266_v39 = vpop.eup %6265 }
0x2349   :  { %v4841_v41 = vmul.f32 %v6266_v39, %v4832_v33 }
0x234a   :  { %v6268_v43 = vpop.eup %6267 }
0x234b   :  { %v4843_v10 = vsel %vm4842_vm1, %v4832_v33, %v4841_v41  ;;  %v4834_v24 = vmul.f32 %v6268_v43, %v4831_v35 }
0x234c   :  { %v4846_v13 = vsel %vm4844_vm2, %v4845_v42, %v4843_v10  ;;  %v5432_v10 = vld [vmem:[%s7313_s18] ss:$0 sm:$0xff]  ;;  %s6283_s18 = scalar_lea.vmem %s5133_s3, 256 }
0x234d   :  { %v4848_v25 = vadd.f32 1e-06, %v4846_v13  ;;  %v4836_v44 = vsel %vm4835_vm3, %v4831_v35, %v4834_v24  ;;  %p6284_p0 = scmp.ne.s32.totalorder %s5133_s3, %s6283_s18  ;;  %p6289_p2 = scmp.lt.s32.totalorder %s6283_s18, %s6283_s18 }
0x234e   :  { %v4839_v36 = vsel %vm4837_vm4, %v4838_v1, %v4836_v44 }
0x234f   :  { %6269 = vrcp.f32 %v4848_v25  ;;  %v4847_v46 = vadd.f32 1e-06, %v4839_v36  ;;  %v5433_v25 = vld [vmem:[%s7314_s19] ss:$0 sm:$0xff]  ;;  %p6290_p3 = por %p6289_p2, %p6288_p1 }
0x2351   :  { %6271 = vrcp.f32 %v4847_v46  ;;  %p6291_p4 = pnand %p6290_p3, %p6284_p0 }
0x235c   :  { %v6270_v38 = vpop.eup %6269 }
0x235d   :  { %v4858_v0 = vmul.f32 %v6270_v38, %v5410_v47 }
0x235e   :  { %v6272_v49 = vpop.eup %6271 }
0x235f   :  { %v4857_v50 = vmul.f32 %v6272_v49, %v5410_v47  ;;  %v4860_v53 = vmul.f32 %v4858_v0, %v4822_v37 }
0x2361   :  { %v4859_v56 = vmul.f32 %v4857_v50, %v4821_v20  ;;  %v4868_v57 = vadd.f32 %v5411_v55, %v4860_v53 }
0x2363   :  { %v4867_v45 = vadd.f32 %v5411_v55, %v4859_v56 }
0x2365   :  { %6152 = vmatprep.mubr.msk.f32.mxu0 %vm72_vm0, %v4867_v45 }
0x2366   :  { %6153 = vmatmul.mubr.msk.f32.vlgmr.msra.gmra.mxu0 %vm72_vm0, %v4868_v57 }
0x2426   :  { %v6154_v61 = vpop.f32.mrf.mxu0 }
0x2427   :  { %v4960_v62 = vadd.f32 %v6154_v61, %v5417_v60 }
0x2428   :  { %v4954_v63 = vpop.f32.mrf.mxu0 }
0x2429   :  { %v4955_v2 = vadd.f32 %v5417_v60, %v4954_v63  ;;  %v4964_v4 = vmax.f32 %v4960_v62, 0.0 }
0x242b   :  { %v4963_v3 = vmax.f32 %v4955_v2, 0.0 }
0x242d   :  { %6171 = vmatprep.mubr.msk.f32.mxu1 %vm2470_vm11, %v4963_v3 }
0x242e   :  { %6172 = vmatmul.mubr.msk.f32.vlgmr.msra.gmra.mxu1 %vm2470_vm11, %v4964_v4 }
0x24ee   :  { %v6173_v5 = vpop.f32.mrf.mxu1 }
0x24ef   :  { %v5056_v51 = vadd.f32 %v6173_v5, %v7213_v7 }
0x24f0   :  { %v5046_v52 = vpop.f32.mrf.mxu1 }
0x24f1   :  { %v5055_v8 = vadd.f32 %v5046_v52, %v7216_v9  ;;  %v5066_v11 = vadd.f32 %v5431_v6, %v5056_v51 }
0x24f3   :  { %v5072_v12 = vsel %vm72_vm0, %v5066_v11, 0.0  ;;  %v5065_v15 = vadd.f32 %v5431_v6, %v5055_v8 }
0x24f4   :  { %5073 = vadd.xlane.f32.xlu1 %v5072_v12 }
0x24f5   :  { %v5069_v16 = vsel %vm72_vm0, %v5065_v15, 0.0 }
0x24f6   :  { %5070 = vadd.xlane.f32.xlu0 %v5069_v16 }
0x257d   :  { %v5074_v18 = vpop.xlane.xlu1 %5073 }
0x257e   :  { %v5076_v37 = vmul.f32 0.03125, %v5074_v18 }
0x257f   :  { %v5071_v19 = vpop.xlane.xlu0 %5070 }
0x2580   :  { %v5078_v20 = vsub.f32 %v5066_v11, %v5076_v37  ;;  %v5075_v14 = vmul.f32 0.03125, %v5071_v19 }
0x2582   :  { %v5077_v40 = vsub.f32 %v5065_v15, %v5075_v14  ;;  %v5080_v22 = vmul.f32 %v5078_v20, %v5078_v20 }
0x2584   :  { %v5084_v7 = vsel %vm72_vm0, %v5080_v22, 0.0  ;;  %v5079_v21 = vmul.f32 %v5077_v40, %v5077_v40 }
0x2585   :  { %5085 = vadd.xlane.f32.xlu1 %v5084_v7 }
0x2586   :  { %v5081_v9 = vsel %vm72_vm0, %v5079_v21, 0.0 }
0x2587   :  { %5082 = vadd.xlane.f32.xlu0 %v5081_v9 }
0x260e   :  { %v5086_v23 = vpop.xlane.xlu1 %5085 }
0x260f   :  { %v5088_v26 = vmul.f32 0.032258064, %v5086_v23 }
0x2610   :  { %v5083_v27 = vpop.xlane.xlu0 %5082 }
0x2611   :  { %6273 = vrsqrt.f32 %v5088_v26  ;;  %v5087_v28 = vmul.f32 0.032258064, %v5083_v27  ;;  %vm5098_vm5 = vcmp.eq.f32.partialorder %v5088_v26, inf  ;;  %v5101_v31 = vand.u32 2147483648, %v5088_v26 }
0x2612   :  { %vm5100_vm6 = vcmp.eq.f32.partialorder %v5088_v26, 0.0 }
0x2613   :  { %6275 = vrsqrt.f32 %v5087_v28  ;;  %vm5091_vm7 = vcmp.eq.f32.partialorder %v5087_v28, inf  ;;  %v5094_v39 = vand.u32 2147483648, %v5087_v28  ;;  %vm5093_vm8 = vcmp.eq.f32.partialorder %v5087_v28, 0.0 }
0x261e   :  { %v6274_v29 = vpop.eup %6273 }
0x261f   :  { %v5097_v30 = vmul.f32 %v6274_v29, %v5088_v26 }
0x2620   :  { %v6276_v17 = vpop.eup %6275 }
0x2621   :  { %v5099_v32 = vsel %vm5098_vm5, %v5088_v26, %v5097_v30  ;;  %v5090_v34 = vmul.f32 %v6276_v17, %v5087_v28 }
0x2622   :  { %v5102_v33 = vsel %vm5100_vm6, %v5101_v31, %v5099_v32 }
0x2623   :  { %v5104_v35 = vadd.f32 1e-06, %v5102_v33  ;;  %v5092_v41 = vsel %vm5091_vm7, %v5087_v28, %v5090_v34 }
0x2624   :  { %v5095_v42 = vsel %vm5093_vm8, %v5094_v39, %v5092_v41 }
0x2625   :  { %6277 = vrcp.f32 %v5104_v35  ;;  %v5103_v43 = vadd.f32 1e-06, %v5095_v42 }
0x2627   :  { %6279 = vrcp.f32 %v5103_v43 }
0x2632   :  { %v6278_v13 = vpop.eup %6277 }
0x2633   :  { %v5114_v24 = vmul.f32 %v6278_v13, %v5432_v10 }
0x2634   :  { %v6280_v1 = vpop.eup %6279 }
0x2635   :  { %v5116_v44 = vmul.f32 %v5114_v24, %v5078_v20  ;;  %v5113_v36 = vmul.f32 %v6280_v1, %v5432_v10 }
0x2637   :  { %v5124_v46 = vadd.f32 %v5433_v25, %v5116_v44  ;;  %v5115_v47 = vmul.f32 %v5113_v36, %v5077_v40 }
0x2639   :  { %5126 = vst.msk [vmem:[#allocation2 + $0x8] sm:$0xff] %vm72_vm0, %v5124_v46  ;;  %v5123_v38 = vadd.f32 %v5433_v25, %v5115_v47 }
0x263b   :  { %5125 = vst.msk [vmem:[#allocation2] sm:$0xff] %vm72_vm0, %v5123_v38 }
0x263c   :  { %6294 = shalt.err (!%p6291_p4)
}
0x263d   :  { %s6306_s19 = smov 128   ;;  %s6307_s28 = smov 8  }
0x263e   :  { %5138 = dma.vmem_to_hbm [thread:$0]  %s5133_s3, 256, %s7315_s20, [#allocation3], %s6306_s19, %s6306_s19, %s6307_s28  }
0x263f   :  { %6303 = dma.done.wait [#allocation3], 256  }
0x2640   :  { %6304 = vsyncadd [#allocation3], 4294967040 }
0x2641   :  { %5142 = vsyncpa [#allocation3], 1 }

</bundles_post_ra>
